<compile_context>
chip_gen: v5e
topology: v5e:2x2
jax: 0.10.0
libtpu: 0.0.40
codegen_flags: <defaults>
</compile_context>

<pallas_src>
import math
import numpy as np
import jax
import jax.numpy as jnp
from jax.experimental import pallas as pl
from jax.experimental.pallas import tpu as pltpu

# ----------------------------- model hyper-params -----------------------------
D = 128            # transformer dim
H = 4              # attention heads
DH = D // H        # head dim
FF = 4 * D         # MLP hidden
Q = 3              # num codec (RVQ) levels
C = 128            # codec categories per level
NUM_COND = 32      # conditioning vocab
V_TRUE = NUM_COND + Q * C + 1   # global embedding size (last id = MASK)
MASK_ID = V_TRUE - 1
VP = 512           # padded embedding rows (>= V_TRUE, lane/sublane friendly)
EPS = 1e-5
SCALE = 1.0 / math.sqrt(DH)

# time-axis tiles (review: >=128; use 256 on v6e/v7x)
TQ = 128
TKV = 128

VMEM_LIMIT = 32 * 1024 * 1024
NEG_BIG = -1.0e30


# ------------------------------ shared math ------------------------------------
def _layernorm(x, g, b):
    mu = jnp.mean(x, axis=-1, keepdims=True)
    var = jnp.mean((x - mu) ** 2, axis=-1, keepdims=True)
    return (x - mu) * jax.lax.rsqrt(var + EPS) * g + b


def _gelu(x):
    return 0.5 * x * (1.0 + jnp.tanh(0.7978845608028654 * (x + 0.044715 * x * x * x)))


# ------------------------------ kernel A: embed + fused QKV ---------------------
def embed_qkv_kernel(tok_ref, emb_ref, ln1g_ref, ln1b_ref, wq_ref, wkv_ref,
                     x_ref, q_ref, kv_ref):
    tq, nk = tok_ref.shape
    vp = emb_ref.shape[0]
    tok = tok_ref[...]                                            # (TQ, K) int32
    iota_v = jax.lax.broadcasted_iota(jnp.int32, (tq, vp), 1)
    multi = jnp.zeros((tq, vp), jnp.int32)
    for s in range(nk):                                           # static, K tiny
        multi = multi + (iota_v == tok[:, s:s + 1]).astype(jnp.int32)
    multi16 = multi.astype(jnp.bfloat16)                          # single wide cast
    # nn.Embedding(tokens).sum(dim=1) == multi_hot_counts @ emb  (one bf16 matmul)
    x = jnp.dot(multi16, emb_ref[...], preferred_element_type=jnp.float32)
    x_ref[...] = x                                                # residual (f32)
    xn = _layernorm(x, ln1g_ref[...], ln1b_ref[...]).astype(jnp.bfloat16)
    # fused full-width projections -> lane-dense (TQ,128) / (TQ,256) stores
    q_ref[...] = jnp.dot(xn, wq_ref[...],
                         preferred_element_type=jnp.float32).astype(jnp.bfloat16)
    kv_ref[...] = jnp.dot(xn, wkv_ref[...],
                          preferred_element_type=jnp.float32).astype(jnp.bfloat16)


def run_embed_qkv(tokens, emb16, ln1g, ln1b, wq16, wkv16):
    T_ = tokens.shape[0]
    nT = T_ // TQ
    cost = pl.CostEstimate(
        flops=int(2 * T_ * (VP * D + D * D + D * 2 * D)),
        transcendentals=0,
        bytes_accessed=int(tokens.size * 4 + emb16.size * 2 + wq16.size * 2
                           + wkv16.size * 2 + T_ * D * 4 + 3 * T_ * D * 2))
    return pl.pallas_call(
        embed_qkv_kernel,
        grid=(nT,),
        in_specs=[
            pl.BlockSpec((TQ, tokens.shape[1]), lambda i: (i, 0)),
            pl.BlockSpec((VP, D), lambda i: (0, 0)),
            pl.BlockSpec((1, D), lambda i: (0, 0)),
            pl.BlockSpec((1, D), lambda i: (0, 0)),
            pl.BlockSpec((D, D), lambda i: (0, 0)),
            pl.BlockSpec((D, 2 * D), lambda i: (0, 0)),
        ],
        out_specs=(
            pl.BlockSpec((TQ, D), lambda i: (i, 0)),
            pl.BlockSpec((TQ, D), lambda i: (i, 0)),
            pl.BlockSpec((TQ, 2 * D), lambda i: (i, 0)),
        ),
        out_shape=(
            jax.ShapeDtypeStruct((T_, D), jnp.float32),
            jax.ShapeDtypeStruct((T_, D), jnp.bfloat16),
            jax.ShapeDtypeStruct((T_, 2 * D), jnp.bfloat16),
        ),
        compiler_params=pltpu.CompilerParams(
            dimension_semantics=("parallel",), vmem_limit_bytes=VMEM_LIMIT),
        cost_estimate=cost,
    )(tokens, emb16, ln1g, ln1b, wq16, wkv16)


# ------------- kernel B: flash attention + out-proj + MLP + head CE (fused) -----
def attn_mlp_ce_kernel(kvs_ref, kvn_ref,
                       x_ref, q_ref, kv_ref, segs_ref, sege_ref,
                       head_ref, tgt_ref, msk_ref,
                       wo_ref, ln2g_ref, ln2b_ref,
                       w1_ref, b1_ref, w2_ref, b2_ref,
                       lnfg_ref, lnfb_ref, wh_ref, bh_ref,
                       out_ref, m_sc, l_sc, acc_sc):
    qi = pl.program_id(0)
    ki = pl.program_id(1)
    tq = q_ref.shape[0]
    tkv = kv_ref.shape[0]

    @pl.when(ki == 0)
    def _init():
        m_sc[...] = jnp.full(m_sc.shape, NEG_BIG, jnp.float32)
        l_sc[...] = jnp.zeros(l_sc.shape, jnp.float32)
        acc_sc[...] = jnp.zeros(acc_sc.shape, jnp.float32)

    active = ki < kvn_ref[qi]            # kv tiles beyond this q tile's segments: no work
                                          # (their DMA is also elided by the clamped index_map)

    @pl.when(active)
    def _attend():
        kv_lo = (kvs_ref[qi] + ki) * tkv
        q_all = q_ref[...]                                        # (TQ, D)   bf16
        kv_all = kv_ref[...]                                      # (TKV, 2D) bf16
        pos = kv_lo + jax.lax.broadcasted_iota(jnp.int32, (tq, tkv), 1)
        allow = jnp.logical_and(pos >= segs_ref[...], pos < sege_ref[...])
        bias = jnp.where(allow, 0.0, NEG_BIG).astype(jnp.float32)
        for h in range(H):                                        # static, H = 4
            sl = slice(h * DH, (h + 1) * DH)
            qh = q_all[:, sl]
            kh = kv_all[:, sl]
            vh = kv_all[:, D + h * DH:D + (h + 1) * DH]
            s = jax.lax.dot_general(
                qh, kh, (((1,), (1,)), ((), ())),
                preferred_element_type=jnp.float32) * SCALE + bias
            m_prev = m_sc[h]                                      # (TQ, 1)
            m_new = jnp.maximum(m_prev, jnp.max(s, axis=-1, keepdims=True))
            alpha = jnp.exp(m_prev - m_new)
            pr = jnp.where(allow, jnp.exp(s - m_new), 0.0)        # robust to fully-masked rows
            l_sc[h] = alpha * l_sc[h] + jnp.sum(pr, axis=-1, keepdims=True)
            acc_sc[:, sl] = alpha * acc_sc[:, sl] + jnp.dot(
                pr.astype(jnp.bfloat16), vh, preferred_element_type=jnp.float32)
            m_sc[h] = m_new

    @pl.when(ki == pl.num_programs(1) - 1)
    def _finalize():
        # per-head 1/l broadcast into its 32-lane group (no lane movement needed)
        col = jax.lax.broadcasted_iota(jnp.int32, (tq, D), 1)
        inv_full = jnp.zeros((tq, D), jnp.float32)
        for h in range(H):
            inv_h = pl.reciprocal(l_sc[h], approx=True)           # (TQ, 1)
            grp = jnp.logical_and(col >= h * DH, col < (h + 1) * DH)
            inv_full = inv_full + jnp.where(grp, inv_h, 0.0)
        o_cat = (acc_sc[...] * inv_full).astype(jnp.bfloat16)     # (TQ, D) lane-dense
        # single 128-deep out-projection
        att = jnp.dot(o_cat, wo_ref[...], preferred_element_type=jnp.float32)
        xr = x_ref[...] + att                                     # residual
        # pre-LN MLP
        xn2 = _layernorm(xr, ln2g_ref[...], ln2b_ref[...]).astype(jnp.bfloat16)
        hdn = _gelu(jnp.dot(xn2, w1_ref[...],
                            preferred_element_type=jnp.float32) + b1_ref[...])
        xr = xr + jnp.dot(hdn.astype(jnp.bfloat16), w2_ref[...],
                          preferred_element_type=jnp.float32) + b2_ref[...]
        hf = _layernorm(xr, lnfg_ref[...], lnfb_ref[...]).astype(jnp.bfloat16)
        # all prediction heads in one (TQ,128)@(128,Q*C) matmul, per-token selection
        logits = jnp.dot(hf, wh_ref[...],
                         preferred_element_type=jnp.float32) + bh_ref[...]   # (TQ, Q*C)
        head = head_ref[...]                                      # (TQ, 1) int32
        tgt = tgt_ref[...]                                        # (TQ, 1) int32
        ccol = jax.lax.broadcasted_iota(jnp.int32, logits.shape, 1)
        lo = head * C
        sel = jnp.logical_and(ccol >= lo, ccol < lo + C)
        lmask = jnp.where(sel, logits, NEG_BIG)
        mx = jnp.max(lmask, axis=-1, keepdims=True)
        ex = jnp.exp(lmask - mx)
        lse = mx + jnp.log(jnp.sum(ex, axis=-1, keepdims=True))
        corr = jnp.sum(jnp.where(ccol == lo + tgt, logits, 0.0),
                       axis=-1, keepdims=True)
        mskf = msk_ref[...]                                       # (TQ, 1) f32
        ce = (lse - corr) * mskf
        # lane-dense per-tile partial rows: col0 = per-token ce, col1 = mask count
        ocol = jax.lax.broadcasted_iota(jnp.int32, out_ref.shape, 1)
        out_ref[...] = jnp.where(ocol == 0, ce, jnp.where(ocol == 1, mskf, 0.0))


def run_attn_mlp_ce(kv_start_blk, kv_num_blk, nkv_grid, x, q, kv,
                    seg_start, seg_end, head_idx, targets, maskf,
                    wo16, ln2g, ln2b, w1, b1, w2, b2, lnfg, lnfb, wh_all, bh_all):
    T_ = x.shape[0]
    nTq = T_ // TQ
    qmap = lambda qi, ki, kvs, kvn: (qi, 0)
    cmap = lambda qi, ki, kvs, kvn: (0, 0)
    kvmap = lambda qi, ki, kvs, kvn: (kvs[qi] + jnp.minimum(ki, kvn[qi] - 1), 0)
    grid_spec = pltpu.PrefetchScalarGridSpec(
        num_scalar_prefetch=2,
        grid=(nTq, nkv_grid),
        in_specs=[
            pl.BlockSpec((TQ, D), qmap),              # x (residual, f32)
            pl.BlockSpec((TQ, D), qmap),              # q (bf16, lane-dense)
            pl.BlockSpec((TKV, 2 * D), kvmap),        # kv (bf16, lane-dense, skip-remapped)
            pl.BlockSpec((TQ, 1), qmap),              # seg_start
            pl.BlockSpec((TQ, 1), qmap),              # seg_end
            pl.BlockSpec((TQ, 1), qmap),              # head idx per token
            pl.BlockSpec((TQ, 1), qmap),              # targets
            pl.BlockSpec((TQ, 1), qmap),              # mask (f32)
            pl.BlockSpec((D, D), cmap),               # wo
            pl.BlockSpec((1, D), cmap),               # ln2 g
            pl.BlockSpec((1, D), cmap),               # ln2 b
            pl.BlockSpec((D, FF), cmap),              # w1
            pl.BlockSpec((1, FF), cmap),              # b1
            pl.BlockSpec((FF, D), cmap),              # w2
            pl.BlockSpec((1, D), cmap),               # b2
            pl.BlockSpec((1, D), cmap),               # lnf g
            pl.BlockSpec((1, D), cmap),               # lnf b
            pl.BlockSpec((D, Q * C), cmap),           # wh (all heads fused)
            pl.BlockSpec((1, Q * C), cmap),           # bh (all heads fused)
        ],
        out_specs=pl.BlockSpec((TQ, 128), qmap),
        scratch_shapes=[pltpu.VMEM((H, TQ, 1), jnp.float32),   # running max
                        pltpu.VMEM((H, TQ, 1), jnp.float32),   # running denom
                        pltpu.VMEM((TQ, D), jnp.float32)],     # attention acc (lane-dense)
    )
    cost = pl.CostEstimate(
        flops=int(4 * H * T_ * nkv_grid * TKV * DH
                  + 2 * T_ * (D * D + 2 * D * FF + D * Q * C)),
        transcendentals=int(H * T_ * nkv_grid * TKV + T_ * (FF + Q * C)),
        bytes_accessed=int(x.size * 4 + q.size * 2 + kv.size * 2 * nkv_grid
                           + (wo16.size + w1.size + w2.size + wh_all.size) * 2
                           + T_ * 128 * 4))
    return pl.pallas_call(
        attn_mlp_ce_kernel,
        grid_spec=grid_spec,
        out_shape=jax.ShapeDtypeStruct((T_, 128), jnp.float32),
        compiler_params=pltpu.CompilerParams(
            dimension_semantics=("parallel", "arbitrary"),
            vmem_limit_bytes=VMEM_LIMIT),
        cost_estimate=cost,
    )(kv_start_blk, kv_num_blk, x, q, kv, seg_start, seg_end, head_idx,
      targets, maskf, wo16, ln2g, ln2b, w1, b1, w2, b2, lnfg, lnfb,
      wh_all, bh_all)


# ------------------------------ pure-JAX reference ------------------------------
def reference_loss(tokens, seg_start, seg_end, head_idx_tok, mask, targets, p):
    x = jnp.sum(p['emb'][tokens], axis=1)                          # embed + sum(dim=1)
    xn = _layernorm(x, p['ln1g'], p['ln1b'])
    q = xn @ p['wq']; k = xn @ p['wk']; v = xn @ p['wv']
    T_ = x.shape[0]
    pos = jnp.arange(T_)[None, :]
    allow = (pos >= seg_start) & (pos < seg_end)                   # block-diagonal
    bias = jnp.where(allow, 0.0, -1e9)
    attn = jnp.zeros_like(x)
    for h in range(H):
        sl = slice(h * DH, (h + 1) * DH)
        sc = q[:, sl] @ k[:, sl].T * SCALE + bias
        pr = jax.nn.softmax(sc, axis=-1)
        attn = attn + (pr @ v[:, sl]) @ p['wo'][sl, :]
    x = x + attn
    xn2 = _layernorm(x, p['ln2g'], p['ln2b'])
    x = x + _gelu(xn2 @ p['w1'] + p['b1']) @ p['w2'] + p['b2']
    hf = _layernorm(x, p['lnfg'], p['lnfb'])
    logits_all = jnp.einsum('td,qdc->tqc', hf, p['wh']) + p['bh'][:, 0, :][None]
    logit_sel = jnp.take_along_axis(
        logits_all, head_idx_tok[:, None, None], axis=1)[:, 0]     # (T, C)
    mx = jnp.max(logit_sel, axis=-1)
    lse = mx + jnp.log(jnp.sum(jnp.exp(logit_sel - mx[:, None]), axis=-1))
    corr = jnp.take_along_axis(logit_sel, targets[:, None], axis=1)[:, 0]
    mf = mask.astype(jnp.float32)
    return jnp.sum((lse - corr) * mf) / jnp.sum(mf)


# ------------------------------------ main --------------------------------------
if __name__ == "__main__":
    key = jax.random.PRNGKey(0)
    ks = iter(jax.random.split(key, 32))

    # packed batch: 3 sequences (not tile-aligned) -> T = 384 time steps
    lens = [160, 96, 128]
    T = sum(lens)
    K = 1 + Q
    assert T % TQ == 0 and T % TKV == 0
    nTq = T // TQ
    mask_level_idxs = [1, 2, 0]                    # prediction head per sequence

    # ---- synthetic SoundStormTokenizedBatch ----
    cond = jax.random.randint(next(ks), (T, 1), 0, NUM_COND)
    codec = jnp.stack(
        [jax.random.randint(next(ks), (T,), 0, C) + NUM_COND + l * C for l in range(Q)],
        axis=1)
    tokens = jnp.concatenate([cond, codec], axis=1).astype(jnp.int32)     # (T, K)

    starts, ends, t0 = [], [], 0
    for L in lens:
        starts.append(t0); t0 += L; ends.append(t0)
    head_idx_tok = jnp.concatenate(
        [jnp.full((L,), mask_level_idxs[i], jnp.int32) for i, L in enumerate(lens)])
    seg_start = jnp.concatenate(
        [jnp.full((L,), starts[i], jnp.int32) for i, L in enumerate(lens)])[:, None]
    seg_end = jnp.concatenate(
        [jnp.full((L,), ends[i], jnp.int32) for i, L in enumerate(lens)])[:, None]

    masks = []
    for i, L in enumerate(lens):
        masks.append(jax.random.bernoulli(next(ks), 0.5, (L,)).at[0].set(True))
    mask = jnp.concatenate(masks)                                          # (T,)
    targets = jax.random.randint(next(ks), (T,), 0, C).astype(jnp.int32)

    # tokenizer semantics: replace tokens at each sequence's masked level with MASK
    col_is_masked_level = (jnp.arange(K)[None, :] == (1 + head_idx_tok)[:, None])
    tokens = jnp.where(mask[:, None] & col_is_masked_level, MASK_ID, tokens)

    # per-q-tile kv block ranges for the block-diagonal DMA skip (scalar prefetch)
    ss_np = np.asarray(seg_start)[:, 0]
    se_np = np.asarray(seg_end)[:, 0]
    tmin = ss_np.reshape(nTq, TQ).min(axis=1)
    tmax = se_np.reshape(nTq, TQ).max(axis=1)
    kvs_np = tmin // TKV
    kvn_np = (-(-tmax // TKV)) - kvs_np
    nkv_grid = int(kvn_np.max())
    kv_start_blk = jnp.asarray(kvs_np, jnp.int32)
    kv_num_blk = jnp.asarray(kvn_np, jnp.int32)

    # ---- deterministic parameters (f32 masters) ----
    def nrm(shape, scale):
        return scale * jax.random.normal(next(ks), shape, jnp.float32)

    emb = 0.02 * jax.random.normal(next(ks), (VP, D), jnp.float32)
    emb = emb * (jnp.arange(VP)[:, None] < V_TRUE)
    emb = emb.at[MASK_ID].set(0.0)                       # padding_idx = MASK_id

    p = dict(
        emb=emb,
        ln1g=jnp.ones((1, D)), ln1b=jnp.zeros((1, D)),
        wq=nrm((D, D), D ** -0.5), wk=nrm((D, D), D ** -0.5),
        wv=nrm((D, D), D ** -0.5), wo=nrm((D, D), D ** -0.5),
        ln2g=jnp.ones((1, D)), ln2b=jnp.zeros((1, D)),
        w1=nrm((D, FF), D ** -0.5), b1=jnp.zeros((1, FF)),
        w2=nrm((FF, D), FF ** -0.5), b2=jnp.zeros((1, D)),
        lnfg=jnp.ones((1, D)), lnfb=jnp.zeros((1, D)),
        wh=nrm((Q, D, C), D ** -0.5),
        bh=0.01 * jax.random.normal(next(ks), (Q, 1, C), jnp.float32),
    )

    # kernel-side weights: bf16 MXU operands, fused Q / KV / heads layouts
    emb16 = p['emb'].astype(jnp.bfloat16)
    wq16 = p['wq'].astype(jnp.bfloat16)
    wkv16 = jnp.concatenate([p['wk'], p['wv']], axis=1).astype(jnp.bfloat16)   # (D, 2D)
    wo16 = p['wo'].astype(jnp.bfloat16)
    w1_16 = p['w1'].astype(jnp.bfloat16)
    w2_16 = p['w2'].astype(jnp.bfloat16)
    wh_all16 = jnp.transpose(p['wh'], (1, 0, 2)).reshape(D, Q * C).astype(jnp.bfloat16)
    bh_all = p['bh'][:, 0, :].reshape(1, Q * C)

    head2 = head_idx_tok[:, None].astype(jnp.int32)
    tgt2 = targets[:, None]
    msk2 = mask.astype(jnp.float32)[:, None]

    # ---- run Pallas pipeline ----
    x, q, kv = run_embed_qkv(tokens, emb16, p['ln1g'], p['ln1b'], wq16, wkv16)
    parts = run_attn_mlp_ce(kv_start_blk, kv_num_blk, nkv_grid,
                            x, q, kv, seg_start, seg_end, head2, tgt2, msk2,
                            wo16, p['ln2g'], p['ln2b'], w1_16, p['b1'],
                            w2_16, p['b2'], p['lnfg'], p['lnfb'], wh_all16, bh_all)
    parts = jax.block_until_ready(parts)
    loss = float(jnp.sum(parts[:, 0]) / jnp.sum(parts[:, 1]))

    # ---- pure-JAX f32 reference ----
    loss_ref = float(reference_loss(tokens, seg_start, seg_end, head_idx_tok,
                                    mask, targets, p))

    rel_err = abs(loss - loss_ref) / max(abs(loss_ref), 1e-6)
    assert np.isfinite(loss) and rel_err < 5e-2, (loss, loss_ref, rel_err)
    print("KERNEL_OK")
</pallas_src>

<mosaic_0001>
module attributes {stable_mosaic.version = 11 : i64} {
  func.func @embed_qkv_kernel(%arg0: i32, %arg1: memref<128x4xi32, #tpu.memory_space<vmem>>, %arg2: memref<512x128xbf16, #tpu.memory_space<vmem>>, %arg3: memref<1x128xf32, #tpu.memory_space<vmem>>, %arg4: memref<1x128xf32, #tpu.memory_space<vmem>>, %arg5: memref<128x128xbf16, #tpu.memory_space<vmem>>, %arg6: memref<128x256xbf16, #tpu.memory_space<vmem>>, %arg7: memref<128x128xf32, #tpu.memory_space<vmem>>, %arg8: memref<128x128xbf16, #tpu.memory_space<vmem>>, %arg9: memref<128x256xbf16, #tpu.memory_space<vmem>>) attributes {dimension_semantics = [#tpu.dimension_semantics<parallel>], iteration_bounds = array<i64: 3>, scalar_prefetch = 0 : i64, scratch_operands = 0 : i64, tpu.core_type = #tpu.core_type<tc>, window_params = [{transform_indices = @transform_0, window_bounds = array<i64: 128, 4>}, {pipeline_mode = #tpu.pipeline_mode<synchronous>, transform_indices = @transform_1, window_bounds = array<i64: 512, 128>}, {pipeline_mode = #tpu.pipeline_mode<synchronous>, transform_indices = @transform_2, window_bounds = array<i64: 1, 128>}, {pipeline_mode = #tpu.pipeline_mode<synchronous>, transform_indices = @transform_3, window_bounds = array<i64: 1, 128>}, {pipeline_mode = #tpu.pipeline_mode<synchronous>, transform_indices = @transform_4, window_bounds = array<i64: 128, 128>}, {pipeline_mode = #tpu.pipeline_mode<synchronous>, transform_indices = @transform_5, window_bounds = array<i64: 128, 256>}, {transform_indices = @transform_6, window_bounds = array<i64: 128, 128>}, {transform_indices = @transform_7, window_bounds = array<i64: 128, 128>}, {transform_indices = @transform_8, window_bounds = array<i64: 128, 256>}]} {
    %c0 = arith.constant 0 : index
    %c0_0 = arith.constant 0 : index
    %0 = vector.load %arg1[%c0, %c0_0] : memref<128x4xi32, #tpu.memory_space<vmem>>, vector<128x4xi32>
    %1 = tpu.iota {dimensions = array<i32: 1>} : vector<128x512xi32>
    %c0_i32 = arith.constant 0 : i32
    %2 = vector.broadcast %c0_i32 : i32 to vector<128x512xi32>
    %3 = vector.extract_strided_slice %0 {offsets = [0, 0], sizes = [128, 1], strides = [1, 1]} : vector<128x4xi32> to vector<128x1xi32>
    %4 = vector.broadcast %3 : vector<128x1xi32> to vector<128x512xi32>
    %5 = arith.cmpi eq, %1, %4 : vector<128x512xi32>
    %6 = arith.extui %5 : vector<128x512xi1> to vector<128x512xi32>
    %7 = arith.addi %2, %6 : vector<128x512xi32>
    %8 = vector.extract_strided_slice %0 {offsets = [0, 1], sizes = [128, 1], strides = [1, 1]} : vector<128x4xi32> to vector<128x1xi32>
    %9 = vector.broadcast %8 : vector<128x1xi32> to vector<128x512xi32>
    %10 = arith.cmpi eq, %1, %9 : vector<128x512xi32>
    %11 = arith.extui %10 : vector<128x512xi1> to vector<128x512xi32>
    %12 = arith.addi %7, %11 : vector<128x512xi32>
    %13 = vector.extract_strided_slice %0 {offsets = [0, 2], sizes = [128, 1], strides = [1, 1]} : vector<128x4xi32> to vector<128x1xi32>
    %14 = vector.broadcast %13 : vector<128x1xi32> to vector<128x512xi32>
    %15 = arith.cmpi eq, %1, %14 : vector<128x512xi32>
    %16 = arith.extui %15 : vector<128x512xi1> to vector<128x512xi32>
    %17 = arith.addi %12, %16 : vector<128x512xi32>
    %18 = vector.extract_strided_slice %0 {offsets = [0, 3], sizes = [128, 1], strides = [1, 1]} : vector<128x4xi32> to vector<128x1xi32>
    %19 = vector.broadcast %18 : vector<128x1xi32> to vector<128x512xi32>
    %20 = arith.cmpi eq, %1, %19 : vector<128x512xi32>
    %21 = arith.extui %20 : vector<128x512xi1> to vector<128x512xi32>
    %22 = arith.addi %17, %21 : vector<128x512xi32>
    %23 = arith.sitofp %22 : vector<128x512xi32> to vector<128x512xbf16>
    %c0_1 = arith.constant 0 : index
    %c0_2 = arith.constant 0 : index
    %24 = vector.load %arg2[%c0_1, %c0_2] : memref<512x128xbf16, #tpu.memory_space<vmem>>, vector<512x128xbf16>
    %cst = arith.constant dense<0.000000e+00> : vector<128x128xf32>
    %25 = tpu.matmul %23, %24, %cst {dimension_numbers = #tpu.dot_dimension_numbers<[1], [0], [0], [1], [0, 0, 1, 1], [], []>} : vector<128x512xbf16>, vector<512x128xbf16>, vector<128x128xf32> -> vector<128x128xf32>
    %c0_3 = arith.constant 0 : index
    %c0_4 = arith.constant 0 : index
    %26 = vector.load %arg7[%c0_3, %c0_4] : memref<128x128xf32, #tpu.memory_space<vmem>>, vector<128x128xf32>
    tpu.vector_store %arg7[%c0_3, %c0_4], %25 {strides = array<i32>} : memref<128x128xf32, #tpu.memory_space<vmem>>, vector<128x128xf32>,
    %c0_5 = arith.constant 0 : index
    %c0_6 = arith.constant 0 : index
    %27 = vector.load %arg3[%c0_5, %c0_6] : memref<1x128xf32, #tpu.memory_space<vmem>>, vector<1x128xf32>
    %c0_7 = arith.constant 0 : index
    %c0_8 = arith.constant 0 : index
    %28 = vector.load %arg4[%c0_7, %c0_8] : memref<1x128xf32, #tpu.memory_space<vmem>>, vector<1x128xf32>
    %cst_9 = arith.constant dense<0.000000e+00> : vector<128xf32>
    %29 = vector.multi_reduction <add>, %25, %cst_9 [1] : vector<128x128xf32> to vector<128xf32>
    %30 = vector.shape_cast %29 : vector<128xf32> to vector<128x1xf32>
    %cst_10 = arith.constant 1.280000e+02 : f32
    %31 = vector.broadcast %cst_10 : f32 to vector<128x1xf32>
    %32 = arith.divf %30, %31 : vector<128x1xf32>
    %33 = vector.broadcast %32 : vector<128x1xf32> to vector<128x128xf32>
    %34 = arith.subf %25, %33 : vector<128x128xf32>
    %35 = arith.mulf %34, %34 : vector<128x128xf32>
    %cst_11 = arith.constant dense<0.000000e+00> : vector<128xf32>
    %36 = vector.multi_reduction <add>, %35, %cst_11 [1] : vector<128x128xf32> to vector<128xf32>
    %37 = vector.shape_cast %36 : vector<128xf32> to vector<128x1xf32>
    %cst_12 = arith.constant 1.280000e+02 : f32
    %38 = vector.broadcast %cst_12 : f32 to vector<128x1xf32>
    %39 = arith.divf %37, %38 : vector<128x1xf32>
    %40 = vector.broadcast %32 : vector<128x1xf32> to vector<128x128xf32>
    %41 = arith.subf %25, %40 : vector<128x128xf32>
    %cst_13 = arith.constant 9.99999974E-6 : f32
    %42 = vector.broadcast %cst_13 : f32 to vector<128x1xf32>
    %43 = arith.addf %39, %42 : vector<128x1xf32>
    %44 = math.rsqrt %43 : vector<128x1xf32>
    %45 = vector.broadcast %44 : vector<128x1xf32> to vector<128x128xf32>
    %46 = arith.mulf %41, %45 : vector<128x128xf32>
    %47 = vector.broadcast %27 : vector<1x128xf32> to vector<128x128xf32>
    %48 = arith.mulf %46, %47 : vector<128x128xf32>
    %49 = vector.broadcast %28 : vector<1x128xf32> to vector<128x128xf32>
    %50 = arith.addf %48, %49 : vector<128x128xf32>
    %51 = arith.truncf %50 : vector<128x128xf32> to vector<128x128xbf16>
    %c0_14 = arith.constant 0 : index
    %c0_15 = arith.constant 0 : index
    %52 = vector.load %arg5[%c0_14, %c0_15] : memref<128x128xbf16, #tpu.memory_space<vmem>>, vector<128x128xbf16>
    %cst_16 = arith.constant dense<0.000000e+00> : vector<128x128xf32>
    %53 = tpu.matmul %51, %52, %cst_16 {dimension_numbers = #tpu.dot_dimension_numbers<[1], [0], [0], [1], [0, 0, 1, 1], [], []>} : vector<128x128xbf16>, vector<128x128xbf16>, vector<128x128xf32> -> vector<128x128xf32>
    %54 = arith.truncf %53 : vector<128x128xf32> to vector<128x128xbf16>
    %c0_17 = arith.constant 0 : index
    %c0_18 = arith.constant 0 : index
    %55 = vector.load %arg8[%c0_17, %c0_18] : memref<128x128xbf16, #tpu.memory_space<vmem>>, vector<128x128xbf16>
    tpu.vector_store %arg8[%c0_17, %c0_18], %54 {strides = array<i32>} : memref<128x128xbf16, #tpu.memory_space<vmem>>, vector<128x128xbf16>,
    %c0_19 = arith.constant 0 : index
    %c0_20 = arith.constant 0 : index
    %56 = vector.load %arg6[%c0_19, %c0_20] : memref<128x256xbf16, #tpu.memory_space<vmem>>, vector<128x256xbf16>
    %cst_21 = arith.constant dense<0.000000e+00> : vector<128x256xf32>
    %57 = tpu.matmul %51, %56, %cst_21 {dimension_numbers = #tpu.dot_dimension_numbers<[1], [0], [0], [1], [0, 0, 1, 1], [], []>} : vector<128x128xbf16>, vector<128x256xbf16>, vector<128x256xf32> -> vector<128x256xf32>
    %58 = arith.truncf %57 : vector<128x256xf32> to vector<128x256xbf16>
    %c0_22 = arith.constant 0 : index
    %c0_23 = arith.constant 0 : index
    %59 = vector.load %arg9[%c0_22, %c0_23] : memref<128x256xbf16, #tpu.memory_space<vmem>>, vector<128x256xbf16>
    tpu.vector_store %arg9[%c0_22, %c0_23], %58 {strides = array<i32>} : memref<128x256xbf16, #tpu.memory_space<vmem>>, vector<128x256xbf16>,
    return
  }
  func.func @transform_0(%arg0: i32) -> (i32, i32) {
    %c0_i32 = arith.constant 0 : i32
    %c0_i32_0 = arith.constant 0 : i32
    return %arg0, %c0_i32 : i32, i32
  }
  func.func @transform_1(%arg0: i32) -> (i32, i32) {
    %c0_i32 = arith.constant 0 : i32
    %c0_i32_0 = arith.constant 0 : i32
    %c0_i32_1 = arith.constant 0 : i32
    return %c0_i32, %c0_i32_0 : i32, i32
  }
  func.func @transform_2(%arg0: i32) -> (i32, i32) {
    %c0_i32 = arith.constant 0 : i32
    %c0_i32_0 = arith.constant 0 : i32
    %c0_i32_1 = arith.constant 0 : i32
    return %c0_i32, %c0_i32_0 : i32, i32
  }
  func.func @transform_3(%arg0: i32) -> (i32, i32) {
    %c0_i32 = arith.constant 0 : i32
    %c0_i32_0 = arith.constant 0 : i32
    %c0_i32_1 = arith.constant 0 : i32
    return %c0_i32, %c0_i32_0 : i32, i32
  }
  func.func @transform_4(%arg0: i32) -> (i32, i32) {
    %c0_i32 = arith.constant 0 : i32
    %c0_i32_0 = arith.constant 0 : i32
    %c0_i32_1 = arith.constant 0 : i32
    return %c0_i32, %c0_i32_0 : i32, i32
  }
  func.func @transform_5(%arg0: i32) -> (i32, i32) {
    %c0_i32 = arith.constant 0 : i32
    %c0_i32_0 = arith.constant 0 : i32
    %c0_i32_1 = arith.constant 0 : i32
    return %c0_i32, %c0_i32_0 : i32, i32
  }
  func.func @transform_6(%arg0: i32) -> (i32, i32) {
    %c0_i32 = arith.constant 0 : i32
    %c0_i32_0 = arith.constant 0 : i32
    return %arg0, %c0_i32 : i32, i32
  }
  func.func @transform_7(%arg0: i32) -> (i32, i32) {
    %c0_i32 = arith.constant 0 : i32
    %c0_i32_0 = arith.constant 0 : i32
    return %arg0, %c0_i32 : i32, i32
  }
  func.func @transform_8(%arg0: i32) -> (i32, i32) {
    %c0_i32 = arith.constant 0 : i32
    %c0_i32_0 = arith.constant 0 : i32
    return %arg0, %c0_i32 : i32, i32
  }
}

</mosaic_0001>

<bundles_post_ra>
// kernel: tpu_custom_call.1
= control target key start
LH: loop header
LB: loop body
LE: loop exit
PB: predicated region body
PF: predicated region fallthrough
CT: control target
= control target key end

     0   :  { %s5537_s0 = inlined_call_operand.vmem [shape: s32[384,4], index: 0, kind: input, shape index: {}]   ;;  %s5538_s1 = inlined_call_operand.vmem [shape: bf16[512,128], index: 1, kind: input, shape index: {}]   ;;  %s5539_s2 = inlined_call_operand.vmem [shape: f32[1,128], index: 2, kind: input, shape index: {}]   ;;  %s5540_s3 = inlined_call_operand.vmem [shape: f32[1,128], index: 3, kind: input, shape index: {}]   ;;  %s5541_s4 = inlined_call_operand.hbm [shape: bf16[128,128], index: 4, kind: input, shape index: {}]   ;;  %s5542_s5 = inlined_call_operand.vmem [shape: bf16[128,256], index: 5, kind: input, shape index: {}]   ;;  %s5543_s6 = inlined_call_operand.hbm [shape: f32[384,128], index: 6, kind: output, shape index: {0}]   ;;  %s5544_s7 = inlined_call_operand.hbm [shape: bf16[384,128], index: 7, kind: output, shape index: {1}]   ;;  %s5545_s8 = inlined_call_operand.hbm [shape: bf16[384,256], index: 8, kind: output, shape index: {2}]  }
   0x1   :  { %5548 = sst [smem:[#allocation12_spill]] %s5537_s0 }
   0x2   :  { %5549 = sst [smem:[#allocation13_spill]] %s5538_s1 }
   0x3   :  { %5550 = sst [smem:[#allocation14_spill]] %s5539_s2 }
   0x4   :  { %5551 = sst [smem:[#allocation15_spill]] %s5540_s3 }
   0x5   :  { %14 = vsyncpa [#allocation3], 0 }
   0x6   :  { %15 = vsyncpa [#allocation4], 0 }
   0x7   :  { %17 = vsyncpa [#allocation4 + $0x1], 0 }
   0x8   :  { %18 = vsyncpa [#allocation7], 0 }
   0x9   :  { %20 = vsyncpa [#allocation7 + $0x1], 0  ;;  %s3532_s27 = smov 0   ;;  %s3534_s28 = smov 0  }
   0xa   :  { %s3536_s29 = smov 0   ;;  %s3538_s30 = smov 0  }
   0xb LB: > { %s3553_s9 = sadd.s32 4294967295, %s3473_s30   ;;  %s5546_s10 = sadd.s32 4294967294, %s3473_s30   ;;  %s3473_s30 = sphi %s3538_s30, %s5565_s30   ;;  %s3469_s29 = sphi %s3536_s29, %s5564_s29   ;;  %s3465_s28 = sphi %s3534_s28, %s5563_s28   ;;  %s3461_s27 = sphi %s3532_s27, %s5562_s27  }
   0xc   : > { %s3557_s11 = sadd.s32 1, %s3473_s30   ;;  %s164_s12 = sadd.s32 1, %s3469_s29 }
   0xd   : > { %s161_s13 = ssub.s32 %s3473_s30, %s3557_s11  ;;  %p174_p0 = scmp.ne.s32.totalorder %s3469_s29, %s3465_s28 }
   0xe   : > { %p162_p1 = scmp.eq.s32.totalorder %s161_s13, 0  ;;  %p175_p2 = scmp.eq.s32.totalorder %s3553_s9, 2 }
   0xf   : > { %p180_p3 = scmp.ne.s32.totalorder %s3465_s28, %s3461_s27  ;;  %p181_p4 = scmp.eq.s32.totalorder %s5546_s10, 2 }
  0x10   : > { %s3570_s14 = scalar_select %p162_p1, %s3469_s29, %s164_s12  }
  0x11   : > { %p3572_p5 = por %p175_p2, %p174_p0  ;;  %p3576_p6 = por %p181_p4, %p180_p3 }
  0x12   : > { %p2770_p7 = scmp.ge.s32.totalorder %s3473_s30, 1  ;;  %p240_p8 = scmp.lt.s32.totalorder %s3473_s30, 4 }
  0x13   : > { %p3171_p9 = scmp.eq.s32.totalorder %s3553_s9, 0  ;;  %s260_s19 = sshll.u32 %s5541_s4, 4  ;;  %s261_s19 = int_to_ptr.hbm [resolvable:$true] %s260_s19 }
  0x14   : > { %p241_p10 = pnand %p2770_p7, %p240_p8  ;;  %s3475_s20 = smov [#allocation2]  }
  0x15   : > { %s262_s21 = sshll.u32 %s3475_s20, 4  ;;  %s3476_s22 = smov 64   ;;  %s263_s21 = int_to_ptr.vmem [resolvable:$true] %s262_s21 }
  0x16   : > { %p3157_p11 = pneg %p241_p10  ;;  %s3477_s23 = smov 4  }
  0x17   : > { %290 = sbr.rel (%p241_p10) target bundleno = 1216 (0x4c0), region = 44 }
  0x18   : > { %p3158_p12 = pnand %p3171_p9, %p3157_p11 }
  0x1a   : > { %3160 = dma.hbm_to_vmem [thread:$0]  (!%p3158_p12), %s261_s19, 1024, %s263_s21, [#allocation3], %s3476_s22, %s3476_s22, %s3477_s23  }
  0x1c   : > { %3448 = dma.done.wait (%p3171_p9), [#allocation3], 1024  }
  0x1d   : > { %3450 = vsyncadd (%p3171_p9), [#allocation3], 4294966272  ;;  %s2778_s24 = sshll.u32 %s3553_s9, 4  ;;  %v3478_v0 = vmov 1   ;;  %v3479_v1 = vmov 0   ;;  %v3480_v2 = vmov 2   ;;  %v360_v38 = vlaneseq }
  0x1e   : > { %3219 = vset.pattern.permute.xlu1 %v3478_v0  ;;  %3218 = vset.pattern.permute.xlu0 %v3479_v1  ;;  %p336_p13 = scmp.lt.s32.totalorder %s2778_s24, 47  ;;  %s5554_s0 = sld [smem:[#allocation12_spill]]  ;;  %v3481_v5 = vmov 3  }
  0x1f   : > { %3220 = vset.pattern.permute.xlu2 %v3480_v2  ;;  %s5555_s1 = sld [smem:[#allocation13_spill]]  ;;  %v3754_v43 = vand.u32 127, %v360_v38  ;;  %s5033_s17 = sand.u32 1, %s3465_s28  }
  0x20   : > { %s5567_s24 = smov (!%p336_p13, %s2778_s24), 47  ;;  %s2775_s18 = sshll.u32 %s5033_s17, 7 }
  0x21   : > { %s2779_s25 = sshll.u32 %s5567_s24, 3  ;;  %v3763_v45 = vadd.s32 384, %v3754_v43  ;;  %v3767_v46 = vadd.s32 128, %v3754_v43  ;;  %v3770_v47 = vadd.s32 256, %v3754_v43  ;;  %s5040_s19 = scalar_lea.vmem [#allocation5], %s2775_s18 }
  0x22   : > { %s5558_s2 = sld [smem:[#allocation14_spill]]  ;;  %s2776_s24 = sshll.u32 %s5033_s17, 6 }
  0x23   : > { %s5559_s3 = sld [smem:[#allocation15_spill]]  ;;  %s5412_s26 = scalar_lea.vmem [#allocation6], %s2776_s24 }
  0x24   : > { %s3599_s13 = scalar_lea.vmem %s5554_s0, %s2779_s25  ;;  %s5409_s25 = scalar_lea.vmem [#allocation8], %s2775_s18 }
  0x25   : > { %v348_v3 = vld [vmem:[%s3599_s13 + $0x20] sm:$0xff]  ;;  %v349_v4 = vld [vmem:[%s3599_s13 + $0x28] sm:$0xff]  ;;  %v350_v6 = vld [vmem:[%s3599_s13 + $0x30] sm:$0xff]  ;;  %s3072_s18 = sshll.u32 %s3553_s9, 7  ;;  %s2594_s21 = sshll.u32 %s5040_s19, 4  ;;  %s2595_s21 = int_to_ptr.vmem [resolvable:$true] %s2594_s21 }
  0x26   : > { %554 = vperm.xlu1 %3219, %v348_v3   ;;  %378 = vperm.xlu0 %3218, %v348_v3   ;;  %v352_v7 = vld [vmem:[%s3599_s13 + $0x40] sm:$0xff]  ;;  %v351_v8 = vld [vmem:[%s3599_s13 + $0x38] sm:$0xff]  ;;  %v3612_v9 = vld [vmem:[%s3599_s13 + $0x8] sm:$0xff]  ;;  %s2572_s23 = scalar_lea.sflag [#allocation4], %s5033_s17 }
  0x27   : > { %794 = vperm.xlu2 %3220, %v348_v3   ;;  %v3621_v10 = vld [vmem:[%s3599_s13 + $0x50] sm:$0xff]  ;;  %v353_v11 = vld [vmem:[%s3599_s13 + $0x48] sm:$0xff]  ;;  %v344_v13 = vld [vmem:[%s3599_s13] sm:$0xff] }
  0x28   : > { %v3631_v12 = vld [vmem:[%s3599_s13 + $0x10] sm:$0xff]  ;;  %v3023_v14 = vld [vmem:[%s5555_s1 + $0x38] sm:$0xff]  ;;  %v3021_v20 = vld [vmem:[%s5555_s1 + $0x28] sm:$0xff] }
  0x29   : > { %v3645_v15 = vld [vmem:[%s5555_s1 + $0x78] sm:$0xff]  ;;  %3123 = vmatpush.bf16.msra.mxu3 %v3023_v14  ;;  %v3022_v17 = vld [vmem:[%s5555_s1 + $0x30] sm:$0xff]  ;;  %1613 = vmatpush.bf16.msra.mxu0 %v3023_v14  ;;  %v3672_v21 = vld [vmem:[%s5555_s1 + $0x68] sm:$0xff] }
  0x2a   : > { %v3039_v16 = vld [vmem:[%s5555_s1 + $0xb8] sm:$0xff]  ;;  %3131 = vmatpush.bf16.msra.mxu1 %v3645_v15  ;;  %v3657_v18 = vld [vmem:[%s5555_s1 + $0x70] sm:$0xff]  ;;  %v3037_v22 = vld [vmem:[%s5555_s1 + $0xa8] sm:$0xff] }
  0x2b   : > { %3139 = vmatpush.bf16.msra.mxu2 %v3039_v16  ;;  %v3038_v19 = vld [vmem:[%s5555_s1 + $0xb0] sm:$0xff]  ;;  %v3020_v23 = vld [vmem:[%s5555_s1 + $0x20] sm:$0xff]  ;;  %v3019_v27 = vld [vmem:[%s5555_s1 + $0x18] sm:$0xff] }
  0x2c   : > { %v3685_v24 = vld [vmem:[%s5555_s1 + $0x60] sm:$0xff]  ;;  %v3700_v28 = vld [vmem:[%s5555_s1 + $0x58] sm:$0xff]  ;;  %v3018_v30 = vld [vmem:[%s5555_s1 + $0x10] sm:$0xff] }
  0x2d   : > { %3124 = vmatpush.bf16.msra.mxu3 %v3022_v17  ;;  %1614 = vmatpush.bf16.msra.mxu0 %v3022_v17  ;;  %v3036_v25 = vld [vmem:[%s5555_s1 + $0xa0] sm:$0xff]  ;;  %v3035_v29 = vld [vmem:[%s5555_s1 + $0x98] sm:$0xff]  ;;  %v3713_v31 = vld [vmem:[%s5555_s1 + $0x50] sm:$0xff] }
  0x2e   : > { %557 = vperm.xlu1 %3219, %v349_v4   ;;  %381 = vperm.xlu0 %3218, %v349_v4   ;;  %v3034_v32 = vld [vmem:[%s5555_s1 + $0x90] sm:$0xff]  ;;  %v3017_v34 = vld [vmem:[%s5555_s1 + $0x8] sm:$0xff]  ;;  %v3735_v37 = vld [vmem:[%s3599_s13 + $0x18] sm:$0xff] }
  0x2f   : > { %797 = vperm.xlu2 %3220, %v349_v4   ;;  %3132 = vmatpush.bf16.msra.mxu1 %v3657_v18  ;;  %v3729_v35 = vld [vmem:[%s5555_s1 + $0x48] sm:$0xff]  ;;  %v3016_v39 = vld [vmem:[%s5555_s1] sm:$0xff]  ;;  %v3749_v41 = vld [vmem:[%s3599_s13 + $0x58] sm:$0xff] }
  0x30   : > { %3140 = vmatpush.bf16.msra.mxu2 %v3038_v19  ;;  %v3033_v36 = vld [vmem:[%s5555_s1 + $0x88] sm:$0xff]  ;;  %v3745_v40 = vld [vmem:[%s5555_s1 + $0x40] sm:$0xff] }
  0x31   : > { %3125 = vmatpush.bf16.msra.mxu3 %v3021_v20  ;;  %1615 = vmatpush.bf16.msra.mxu0 %v3021_v20  ;;  %v3032_v42 = vld [vmem:[%s5555_s1 + $0x80] sm:$0xff] }
  0x33   : > { %3133 = vmatpush.bf16.msra.mxu1 %v3672_v21 }
  0x34   : > { %3141 = vmatpush.bf16.msra.mxu2 %v3037_v22 }
  0x35   : > { %3126 = vmatpush.bf16.msra.mxu3 %v3020_v23  ;;  %1616 = vmatpush.bf16.msra.mxu0 %v3020_v23 }
  0x36   : > { %3222 = vset.pattern.permute.xlu1 %v3481_v5  ;;  %3221 = vset.pattern.permute.xlu0 %v3481_v5 }
  0x37   : > { %1037 = vperm.xlu1 %3222, %v349_v4   ;;  %1034 = vperm.xlu0 %3221, %v348_v3  }
  0x38   : > { %3223 = vset.pattern.permute.xlu2 %v3479_v1  ;;  %3134 = vmatpush.bf16.msra.mxu1 %v3685_v24 }
  0x39   : > { %384 = vperm.xlu2 %3223, %v350_v6   ;;  %3142 = vmatpush.bf16.msra.mxu2 %v3036_v25 }
  0x3a   : > { %3127 = vmatpush.bf16.msra.mxu3 %v3019_v27  ;;  %1617 = vmatpush.bf16.msra.mxu0 %v3019_v27 }
  0x3c   : > { %3135 = vmatpush.bf16.msra.mxu1 %v3700_v28 }
  0x3d   : > { %3143 = vmatpush.bf16.msra.mxu2 %v3035_v29  ;;  %v3874_v29 = vld [vmem:[%s3599_s13 + $0x68] sm:$0xff] }
  0x3e   : > { %3128 = vmatpush.bf16.msra.mxu3 %v3018_v30  ;;  %1618 = vmatpush.bf16.msra.mxu0 %v3018_v30 }
  0x3f   : > { %3224 = vset.pattern.permute.xlu1 %v3479_v1  ;;  %1046 = vperm.xlu0 %3221, %v352_v7  }
  0x40   : > { %387 = vperm.xlu1 %3224, %v351_v8   ;;  %3136 = vmatpush.bf16.msra.mxu1 %v3713_v31 }
  0x41   : > { %3225 = vset.pattern.permute.xlu2 %v3478_v0  ;;  %3144 = vmatpush.bf16.msra.mxu2 %v3034_v32 }
  0x42   : > { %560 = vperm.xlu2 %3225, %v350_v6   ;;  %3129 = vmatpush.bf16.msra.mxu3 %v3017_v34 }
  0x43   : > { %1619 = vmatpush.bf16.msra.mxu0 %v3017_v34 }
  0x44   : > { %3137 = vmatpush.bf16.msra.mxu1 %v3729_v35 }
  0x45   : > { %3145 = vmatpush.bf16.msra.mxu2 %v3033_v36 }
  0x46   : > { %3130 = vmatpush.bf16.msra.mxu3 %v3016_v39 }
  0x47   : > { %1025 = vperm.xlu0 %3221, %v3612_v9   ;;  %1620 = vmatpush.bf16.msra.mxu0 %v3016_v39 }
  0x48   : > { %3226 = vset.pattern.permute.xlu1 %v3480_v2  ;;  %3138 = vmatpush.bf16.msra.mxu1 %v3745_v40 }
  0x49   : > { %800 = vperm.xlu1 %3226, %v350_v6   ;;  %3146 = vmatpush.bf16.msra.mxu2 %v3032_v42 }
  0x4a   : > { %3227 = vset.pattern.permute.xlu2 %v3480_v2 }
  0x4b   : > { %803 = vperm.xlu2 %3227, %v351_v8   ;;  %1662 = vmatpush.bf16.msrb.mxu0 %v3645_v15 }
  0x4f   : > { %3242 = vset.pattern.permute.xlu0 %v3478_v0  ;;  %1663 = vmatpush.bf16.msrb.mxu0 %v3657_v18 }
  0x50   : > { %563 = vperm.xlu0 %3242, %v351_v8  }
  0x51   : > { %3228 = vset.pattern.permute.xlu1 %v3481_v5 }
  0x52   : > { %1040 = vperm.xlu1 %3228, %v350_v6  }
  0x53   : > { %3229 = vset.pattern.permute.xlu2 %v3481_v5  ;;  %1664 = vmatpush.bf16.msrb.mxu0 %v3672_v21 }
  0x54   : > { %1043 = vperm.xlu2 %3229, %v351_v8  }
  0x57   : > { %1665 = vmatpush.bf16.msrb.mxu0 %v3685_v24 }
  0x58   : > { %572 = vperm.xlu0 %3242, %v3621_v10  }
  0x5a   : > { %3230 = vset.pattern.permute.xlu1 %v3479_v1 }
  0x5b   : > { %393 = vperm.xlu1 %3230, %v353_v11   ;;  %1666 = vmatpush.bf16.msrb.mxu0 %v3700_v28 }
  0x5c   : > { %3231 = vset.pattern.permute.xlu2 %v3478_v0 }
  0x5d   : > { %566 = vperm.xlu2 %3231, %v352_v7  }
  0x5f   : > { %1667 = vmatpush.bf16.msrb.mxu0 %v3713_v31 }
  0x60   : > { %3245 = vset.pattern.permute.xlu0 %v3480_v2 }
  0x61   : > { %809 = vperm.xlu0 %3245, %v353_v11  }
  0x63   : > { %3232 = vset.pattern.permute.xlu1 %v3478_v0  ;;  %1668 = vmatpush.bf16.msrb.mxu0 %v3729_v35 }
  0x64   : > { %569 = vperm.xlu1 %3232, %v353_v11  }
  0x65   : > { %3233 = vset.pattern.permute.xlu2 %v3480_v2 }
  0x66   : > { %806 = vperm.xlu2 %3233, %v352_v7  }
  0x67   : > { %1669 = vmatpush.bf16.msrb.mxu0 %v3745_v40  ;;  %v3928_v40 = vld [vmem:[%s3599_s13 + $0x60] sm:$0xff] }
  0x69   : > { %788 = vperm.xlu0 %3245, %v3631_v12  }
  0x6c   : > { %3234 = vset.pattern.permute.xlu1 %v3479_v1 }
  0x6d   : > { %366 = vperm.xlu1 %3234, %v344_v13  }
  0x6e   : > { %3235 = vset.pattern.permute.xlu2 %v3479_v1 }
  0x6f   : > { %369 = vperm.xlu2 %3235, %v3612_v9  }
  0x71   : > { %3254 = vset.pattern.permute.xlu0 %v3479_v1 }
  0x72   : > { %390 = vperm.xlu0 %3254, %v352_v7  }
  0x75   : > { %3236 = vset.pattern.permute.xlu1 %v3478_v0 }
  0x76   : > { %542 = vperm.xlu1 %3236, %v344_v13  }
  0x77   : > { %3237 = vset.pattern.permute.xlu2 %v3478_v0 }
  0x78   : > { %545 = vperm.xlu2 %3237, %v3612_v9  }
  0x7a   : > { %375 = vperm.xlu0 %3254, %v3735_v37  }
  0x7e   : > { %3238 = vset.pattern.permute.xlu1 %v3481_v5 }
  0x7f   : > { %1049 = vperm.xlu1 %3238, %v353_v11  }
  0x80   : > { %3239 = vset.pattern.permute.xlu2 %v3480_v2 }
  0x81   : > { %782 = vperm.xlu2 %3239, %v344_v13   ;;  %v3691_v26 = vpop.permute.xlu2 %794 }
  0x82   : > { %vm845_vm0 = vcmp.eq.s32.totalorder %v3754_v43, %v3691_v26  ;;  %vm846_vm3 = vcmp.eq.s32.totalorder %v3767_v46, %v3691_v26  ;;  %vm848_vm4 = vcmp.eq.s32.totalorder %v3763_v45, %v3691_v26  ;;  %vm847_vm6 = vcmp.eq.s32.totalorder %v3770_v47, %v3691_v26  ;;  %405 = vperm.xlu0 %3254, %v3874_v29  }
  0x83   : > { %v3786_v51 = vsel %vm845_vm0, 1, %v3479_v1  ;;  %v910_v20 = vsel %vm846_vm3, 1, %v3479_v1  ;;  %v912_v21 = vsel %vm848_vm4, 1, %v3479_v1  ;;  %v911_v24 = vsel %vm847_vm6, 1, %v3479_v1 }
  0x87   : > { %3240 = vset.pattern.permute.xlu1 %v3480_v2 }
  0x88   : > { %785 = vperm.xlu1 %3240, %v3612_v9  }
  0x89   : > { %3241 = vset.pattern.permute.xlu2 %v3481_v5  ;;  %v3720_v33 = vpop.permute.xlu2 %797 }
  0x8a   : > { %1022 = vperm.xlu2 %3241, %v344_v13   ;;  %vm849_vm9 = vcmp.eq.s32.totalorder %v3754_v43, %v3720_v33  ;;  %vm850_vm14 = vcmp.eq.s32.totalorder %v3767_v46, %v3720_v33  ;;  %vm851_vm15 = vcmp.eq.s32.totalorder %v3770_v47, %v3720_v33  ;;  %3262 = vset.pattern.permute.xlu0 %v3481_v5 }
  0x8b   : > { %v913_v25 = vsel %vm849_vm9, 1, %v3479_v1  ;;  %v914_v27 = vsel %vm850_vm14, 1, %v3479_v1  ;;  %v915_v28 = vsel %vm851_vm15, 1, %v3479_v1  ;;  %1058 = vperm.xlu0 %3262, %v3928_v40  }
  0x90   : > { %3243 = vset.pattern.permute.xlu1 %v3479_v1 }
  0x91   : > { %396 = vperm.xlu1 %3243, %v3621_v10  }
  0x92   : > { %3244 = vset.pattern.permute.xlu2 %v3479_v1 }
  0x93   : > { %399 = vperm.xlu2 %3244, %v3749_v41   ;;  %v3759_v44 = vpop.permute.xlu2 %384  ;;  %3267 = vset.pattern.permute.xlu0 %v3478_v0 }
  0x94   : > { %vm440_vm2 = vcmp.eq.s32.totalorder %v3763_v45, %v3759_v44 }
  0x95   : > { %v504_v53 = vsel %vm440_vm2, 1, %v3479_v1 }
  0x98   : > { %v555_v48 = vpop.permute.xlu1 %554  ;;  %v379_v49 = vpop.permute.xlu0 %378 }
  0x99   : > { %vm608_vm1 = vcmp.eq.s32.totalorder %v3763_v45, %v555_v48  ;;  %3246 = vset.pattern.permute.xlu1 %v3478_v0  ;;  %vm432_vm5 = vcmp.eq.s32.totalorder %v3763_v45, %v379_v49  ;;  %vm605_vm7 = vcmp.eq.s32.totalorder %v3754_v43, %v555_v48  ;;  %vm606_vm8 = vcmp.eq.s32.totalorder %v3767_v46, %v555_v48 }
  0x9a   : > { %v672_v50 = vsel %vm608_vm1, 1, %v3479_v1  ;;  %575 = vperm.xlu1 %3246, %v3749_v41   ;;  %v496_v52 = vsel %vm432_vm5, 1, %v3479_v1  ;;  %vm607_vm10 = vcmp.eq.s32.totalorder %v3770_v47, %v555_v48  ;;  %vm429_vm11 = vcmp.eq.s32.totalorder %v3754_v43, %v379_v49 }
  0x9b   : > { %3247 = vset.pattern.permute.xlu2 %v3480_v2  ;;  %vm430_vm12 = vcmp.eq.s32.totalorder %v3767_v46, %v379_v49  ;;  %v736_v55 = vadd.s32 %v672_v50, %v496_v52  ;;  %vm431_vm13 = vcmp.eq.s32.totalorder %v3770_v47, %v379_v49  ;;  %v669_v56 = vsel %vm605_vm7, 1, %v3479_v1 }
  0x9c   : > { %812 = vperm.xlu2 %3247, %v3621_v10   ;;  %v3799_v54 = vpop.permute.xlu2 %560  ;;  %v670_v57 = vsel %vm606_vm8, 1, %v3479_v1  ;;  %vm852_vm1 = vcmp.eq.s32.totalorder %v3763_v45, %v3720_v33  ;;  %v671_v59 = vsel %vm607_vm10, 1, %v3479_v1  ;;  %v493_v60 = vsel %vm429_vm11, 1, %v3479_v1 }
  0x9d   : > { %vm616_vm0 = vcmp.eq.s32.totalorder %v3763_v45, %v3799_v54  ;;  %v494_v61 = vsel %vm430_vm12, 1, %v3479_v1  ;;  %v495_v4 = vsel %vm431_vm13, 1, %v3479_v1  ;;  %v733_v9 = vadd.s32 %v669_v56, %v493_v60 }
  0x9e   : > { %v680_v58 = vsel %vm616_vm0, 1, %v3479_v1  ;;  %v734_v15 = vadd.s32 %v670_v57, %v494_v61  ;;  %v735_v30 = vadd.s32 %v671_v59, %v495_v4  ;;  %v916_v26 = vsel %vm852_vm1, 1, %v3479_v1 }
  0x9f   : > { %v3824_v3 = vadd.s32 %v680_v58, %v504_v53  ;;  %v973_v38 = vadd.s32 %v3786_v51, %v733_v9  ;;  %v976_v42 = vadd.s32 %v912_v21, %v736_v55 }
  0xa0   : > { %v558_v62 = vpop.permute.xlu1 %557  ;;  %v382_v63 = vpop.permute.xlu0 %381  ;;  %v974_v39 = vadd.s32 %v910_v20, %v734_v15  ;;  %v975_v58 = vadd.s32 %v911_v24, %v735_v30 }
  0xa1   : > { %vm609_vm2 = vcmp.eq.s32.totalorder %v3754_v43, %v558_v62  ;;  %vm610_vm5 = vcmp.eq.s32.totalorder %v3767_v46, %v558_v62  ;;  %vm612_vm7 = vcmp.eq.s32.totalorder %v3763_v45, %v558_v62  ;;  %vm611_vm8 = vcmp.eq.s32.totalorder %v3770_v47, %v558_v62 }
  0xa2   : > { %v673_v6 = vsel %vm609_vm2, 1, %v3479_v1  ;;  %v674_v7 = vsel %vm610_vm5, 1, %v3479_v1  ;;  %v676_v8 = vsel %vm612_vm7, 1, %v3479_v1  ;;  %3248 = vset.pattern.permute.xlu1 %v3480_v2  ;;  %vm433_vm10 = vcmp.eq.s32.totalorder %v3754_v43, %v382_v63 }
  0xa3   : > { %vm434_vm11 = vcmp.eq.s32.totalorder %v3767_v46, %v382_v63  ;;  %vm435_vm12 = vcmp.eq.s32.totalorder %v3770_v47, %v382_v63  ;;  %vm436_vm13 = vcmp.eq.s32.totalorder %v3763_v45, %v382_v63  ;;  %815 = vperm.xlu1 %3248, %v3749_v41   ;;  %v497_v11 = vsel %vm433_vm10, 1, %v3479_v1 }
  0xa4   : > { %v498_v13 = vsel %vm434_vm11, 1, %v3479_v1  ;;  %v500_v14 = vsel %vm436_vm13, 1, %v3479_v1  ;;  %3249 = vset.pattern.permute.xlu2 %v3479_v1  ;;  %v675_v16 = vsel %vm611_vm8, 1, %v3479_v1  ;;  %v499_v17 = vsel %vm435_vm12, 1, %v3479_v1 }
  0xa5   : > { %v740_v18 = vadd.s32 %v676_v8, %v500_v14  ;;  %372 = vperm.xlu2 %3249, %v3631_v12   ;;  %v3850_v19 = vpop.permute.xlu2 %803  ;;  %v737_v22 = vadd.s32 %v673_v6, %v497_v11  ;;  %v738_v23 = vadd.s32 %v674_v7, %v498_v13  ;;  %v739_v32 = vadd.s32 %v675_v16, %v499_v17 }
  0xa6   : > { %vm437_vm2 = vcmp.eq.s32.totalorder %v3754_v43, %v3759_v44  ;;  %vm438_vm5 = vcmp.eq.s32.totalorder %v3767_v46, %v3759_v44  ;;  %vm613_vm7 = vcmp.eq.s32.totalorder %v3754_v43, %v3799_v54  ;;  %vm614_vm8 = vcmp.eq.s32.totalorder %v3767_v46, %v3799_v54 }
  0xa7   : > { %v980_v48 = vadd.s32 %v916_v26, %v740_v18  ;;  %v977_v49 = vadd.s32 %v913_v25, %v737_v22  ;;  %v978_v50 = vadd.s32 %v914_v27, %v738_v23  ;;  %v979_v59 = vadd.s32 %v915_v28, %v739_v32 }
  0xa8   : > { %vm439_vm10 = vcmp.eq.s32.totalorder %v3770_v47, %v3759_v44  ;;  %vm615_vm11 = vcmp.eq.s32.totalorder %v3770_v47, %v3799_v54  ;;  %v501_v23 = vsel %vm437_vm2, 1, %v3479_v1  ;;  %v502_v24 = vsel %vm438_vm5, 1, %v3479_v1 }
  0xa9   : > { %v1038_v34 = vpop.permute.xlu1 %1037  ;;  %v1035_v36 = vpop.permute.xlu0 %1034  ;;  %v677_v25 = vsel %vm613_vm7, 1, %v3479_v1  ;;  %v678_v54 = vsel %vm614_vm8, 1, %v3479_v1  ;;  %v503_v27 = vsel %vm439_vm10, 1, %v3479_v1  ;;  %v679_v30 = vsel %vm615_vm11, 1, %v3479_v1 }
  0xaa   : > { %vm1089_vm3 = vcmp.eq.s32.totalorder %v3754_v43, %v1038_v34  ;;  %vm1090_vm4 = vcmp.eq.s32.totalorder %v3767_v46, %v1038_v34  ;;  %vm1091_vm6 = vcmp.eq.s32.totalorder %v3770_v47, %v1038_v34  ;;  %vm1085_vm9 = vcmp.eq.s32.totalorder %v3754_v43, %v1035_v36 }
  0xab   : > { %vm1086_vm14 = vcmp.eq.s32.totalorder %v3767_v46, %v1035_v36  ;;  %vm1087_vm15 = vcmp.eq.s32.totalorder %v3770_v47, %v1035_v36  ;;  %3250 = vset.pattern.permute.xlu1 %v3478_v0  ;;  %v1149_v33 = vsel %vm1085_vm9, 1, %v3479_v1  ;;  %v1153_v51 = vsel %vm1089_vm3, 1, %v3479_v1 }
  0xac   : > { %548 = vperm.xlu1 %3250, %v3631_v12   ;;  %v1150_v52 = vsel %vm1086_vm14, 1, %v3479_v1  ;;  %v1154_v31 = vsel %vm1090_vm4, 1, %v3479_v1  ;;  %v1213_v53 = vadd.s32 %v1149_v33, %v973_v38  ;;  %v1217_v55 = vadd.s32 %v1153_v51, %v977_v49 }
  0xad   : > { %v1214_v56 = vadd.s32 %v1150_v52, %v974_v39  ;;  %v1218_v57 = vadd.s32 %v1154_v31, %v978_v50  ;;  %3251 = vset.pattern.permute.xlu2 %v3478_v0  ;;  %v1151_v60 = vsel %vm1087_vm15, 1, %v3479_v1  ;;  %v1155_v61 = vsel %vm1091_vm6, 1, %v3479_v1 }
  0xae   : > { %551 = vperm.xlu2 %3251, %v3735_v37   ;;  %v3905_v62 = vpop.permute.xlu2 %1043  ;;  %v1277_v63 = vcvt.s32.f32 %v1213_v53  ;;  %v1281_v4 = vcvt.s32.f32 %v1217_v55  ;;  %vm1092_vm0 = vcmp.eq.s32.totalorder %v3763_v45, %v1038_v34  ;;  %vm1088_vm1 = vcmp.eq.s32.totalorder %v3763_v45, %v1035_v36 }
  0xaf   : > { %v1278_v6 = vcvt.s32.f32 %v1214_v56  ;;  %v1282_v7 = vcvt.s32.f32 %v1218_v57  ;;  %v1215_v8 = vadd.s32 %v1151_v60, %v975_v58  ;;  %v1219_v9 = vadd.s32 %v1155_v61, %v979_v59 }
  0xb0   : > { %v1333_v11 = vpack.c.bf16 %v1281_v4, %v1277_v63  ;;  %v1152_v17 = vsel %vm1088_vm1, 1, %v3479_v1  ;;  %v1156_v18 = vsel %vm1092_vm0, 1, %v3479_v1  ;;  %vm857_vm12 = vcmp.eq.s32.totalorder %v3754_v43, %v3850_v19 }
  0xb1   : > { %v1334_v13 = vpack.c.bf16 %v1282_v7, %v1278_v6  ;;  %v3911_v14 = vpop.permute.xlu0 %1046  ;;  %v1279_v35 = vcvt.s32.f32 %v1215_v8  ;;  %v1283_v16 = vcvt.s32.f32 %v1219_v9  ;;  %v1216_v21 = vadd.s32 %v1152_v17, %v976_v42 }
  0xb2   : > { %v3913_v15 = vpop.permute.xlu1 %387  ;;  %1631 = vmatmul.bf16.vlgmr.msra.gmra.mxu3 %v1333_v11  ;;  %v1220_v22 = vadd.s32 %v1156_v18, %v980_v48  ;;  %vm858_vm13 = vcmp.eq.s32.totalorder %v3767_v46, %v3850_v19  ;;  %vm859_vm3 = vcmp.eq.s32.totalorder %v3770_v47, %v3850_v19  ;;  %v741_v28 = vadd.s32 %v677_v25, %v501_v23 }
  0xb3   : > { %1680 = vmatmul.bf16.vlgmr.msra.gmra.mxu1 %v1334_v13  ;;  %v1335_v20 = vpack.c.bf16 %v1283_v16, %v1279_v35  ;;  %v3957_v26 = vadd.s32 %v678_v54, %v502_v24  ;;  %vm860_vm4 = vcmp.eq.s32.totalorder %v3763_v45, %v3850_v19  ;;  %v921_v32 = vsel %vm857_vm12, 1, %v3479_v1 }
  0xb4   : > { %3252 = vset.pattern.permute.xlu1 %v3481_v5  ;;  %v922_v34 = vsel %vm858_vm13, 1, %v3479_v1  ;;  %v923_v38 = vsel %vm859_vm3, 1, %v3479_v1  ;;  %vm1097_vm9 = vcmp.eq.s32.totalorder %v3754_v43, %v3905_v62  ;;  %v1280_v39 = vcvt.s32.f32 %v1216_v21 }
  0xb5   : > { %1052 = vperm.xlu1 %3252, %v3621_v10   ;;  %1729 = vmatmul.bf16.vlgmr.msra.gmra.mxu2 %v1335_v20  ;;  %vm441_vm14 = vcmp.eq.s32.totalorder %v3754_v43, %v3913_v15  ;;  %vm442_vm15 = vcmp.eq.s32.totalorder %v3767_v46, %v3913_v15  ;;  %vm1098_vm0 = vcmp.eq.s32.totalorder %v3767_v46, %v3905_v62  ;;  %v1284_v48 = vcvt.s32.f32 %v1220_v22 }
  0xb6   : > { %3253 = vset.pattern.permute.xlu2 %v3481_v5  ;;  %vm443_vm1 = vcmp.eq.s32.totalorder %v3770_v47, %v3913_v15  ;;  %vm444_vm2 = vcmp.eq.s32.totalorder %v3763_v45, %v3913_v15  ;;  %vm1099_vm5 = vcmp.eq.s32.totalorder %v3770_v47, %v3905_v62  ;;  %v505_v50 = vsel %vm441_vm14, 1, %v3479_v1 }
  0xb7   : > { %1055 = vperm.xlu2 %3253, %v3749_v41   ;;  %v3945_v10 = vpop.permute.xlu2 %566  ;;  %v3959_v41 = vadd.s32 %v679_v30, %v503_v27  ;;  %v506_v33 = vsel %vm442_vm15, 1, %v3479_v1  ;;  %v924_v51 = vsel %vm860_vm4, 1, %v3479_v1  ;;  %v508_v31 = vsel %vm444_vm2, 1, %v3479_v1 }
  0xb8   : > { %v1161_v53 = vsel %vm1097_vm9, 1, %v3479_v1  ;;  %v1162_v55 = vsel %vm1098_vm0, 1, %v3479_v1  ;;  %v1163_v59 = vsel %vm1099_vm5, 1, %v3479_v1  ;;  %vm1100_vm14 = vcmp.eq.s32.totalorder %v3763_v45, %v3905_v62 }
  0xb9   : > { %v3955_v44 = vpop.permute.xlu0 %1025  ;;  %vm621_vm15 = vcmp.eq.s32.totalorder %v3754_v43, %v3945_v10  ;;  %vm622_vm0 = vcmp.eq.s32.totalorder %v3767_v46, %v3945_v10  ;;  %vm624_vm2 = vcmp.eq.s32.totalorder %v3763_v45, %v3945_v10 }
  0xbb   : > { %v801_v36 = vpop.permute.xlu1 %800 }
  0xbc   : > { %vm856_vm6 = vcmp.eq.s32.totalorder %v3763_v45, %v801_v36  ;;  %vm853_vm7 = vcmp.eq.s32.totalorder %v3754_v43, %v801_v36  ;;  %vm854_vm8 = vcmp.eq.s32.totalorder %v3767_v46, %v801_v36  ;;  %vm855_vm10 = vcmp.eq.s32.totalorder %v3770_v47, %v801_v36 }
  0xbd   : > { %v920_v42 = vsel %vm856_vm6, 1, %v3479_v1  ;;  %3255 = vset.pattern.permute.xlu1 %v3480_v2  ;;  %v917_v19 = vsel %vm853_vm7, 1, %v3479_v1  ;;  %v918_v56 = vsel %vm854_vm8, 1, %v3479_v1  ;;  %v919_v57 = vsel %vm855_vm10, 1, %v3479_v1 }
  0xbe   : > { %791 = vperm.xlu1 %3255, %v3735_v37   ;;  %v3990_v49 = vadd.s32 %v920_v42, %v3824_v3  ;;  %v507_v3 = vsel %vm443_vm1, 1, %v3479_v1  ;;  %v981_v13 = vadd.s32 %v917_v19, %v741_v28  ;;  %v982_v18 = vadd.s32 %v918_v56, %v3957_v26 }
  0xbf   : > { %1028 = vperm.xlu2 %3253, %v3631_v12   ;;  %v4006_v12 = vpack.c.bf16 %v1284_v48, %v1280_v39  ;;  %v983_v20 = vadd.s32 %v919_v57, %v3959_v41  ;;  %vm623_vm1 = vcmp.eq.s32.totalorder %v3770_v47, %v3945_v10  ;;  %v4095_v56 = vsel %vm624_vm2, 1, %v3479_v1 }
  0xc0   : > { %v4004_v52 = vpop.permute.xlu2 %806  ;;  %v4092_v10 = vsel %vm623_vm1, 1, %v3479_v1 }
  0xc2   : > { %v564_v58 = vpop.permute.xlu0 %563 }
  0xc3   : > { %vm617_vm11 = vcmp.eq.s32.totalorder %v3754_v43, %v564_v58  ;;  %vm618_vm12 = vcmp.eq.s32.totalorder %v3767_v46, %v564_v58  ;;  %vm619_vm13 = vcmp.eq.s32.totalorder %v3770_v47, %v564_v58  ;;  %vm620_vm3 = vcmp.eq.s32.totalorder %v3763_v45, %v564_v58 }
  0xc4   : > { %v681_v60 = vsel %vm617_vm11, 1, %v3479_v1  ;;  %v682_v61 = vsel %vm618_vm12, 1, %v3479_v1  ;;  %v683_v63 = vsel %vm619_vm13, 1, %v3479_v1  ;;  %v684_v4 = vsel %vm620_vm3, 1, %v3479_v1  ;;  %v4033_v6 = vpop.permute.xlu1 %1040 }
  0xc5   : > { %v745_v7 = vadd.s32 %v681_v60, %v505_v50  ;;  %v746_v8 = vadd.s32 %v682_v61, %v506_v33  ;;  %v747_v9 = vadd.s32 %v683_v63, %v507_v3  ;;  %v748_v11 = vadd.s32 %v684_v4, %v508_v31 }
  0xc6   : > { %vm1093_vm4 = vcmp.eq.s32.totalorder %v3754_v43, %v4033_v6  ;;  %vm1094_vm6 = vcmp.eq.s32.totalorder %v3767_v46, %v4033_v6  ;;  %vm1095_vm9 = vcmp.eq.s32.totalorder %v3770_v47, %v4033_v6  ;;  %3256 = vset.pattern.permute.xlu1 %v3481_v5  ;;  %v1164_v50 = vsel %vm1100_vm14, 1, %v3479_v1 }
  0xc7   : > { %1031 = vperm.xlu1 %3256, %v3735_v37   ;;  %v985_v15 = vadd.s32 %v921_v32, %v745_v7  ;;  %v1157_v35 = vsel %vm1093_vm4, 1, %v3479_v1  ;;  %v986_v16 = vadd.s32 %v922_v34, %v746_v8  ;;  %v1158_v17 = vsel %vm1094_vm6, 1, %v3479_v1  ;;  %3257 = vset.pattern.permute.xlu2 %v3479_v1  ;;  %v4055_v34 = vld [vmem:[%s3599_s13 + $0x78] sm:$0xff] }
  0xc8   : > { %v987_v21 = vadd.s32 %v923_v38, %v747_v9  ;;  %v1159_v22 = vsel %vm1095_vm9, 1, %v3479_v1  ;;  %402 = vperm.xlu2 %3257, %v3928_v40   ;;  %v988_v25 = vadd.s32 %v924_v51, %v748_v11  ;;  %v1221_v27 = vadd.s32 %v1157_v35, %v981_v13  ;;  %587 = vperm.xlu0 %3267, %v4055_v34  }
  0xc9   : > { %v1225_v23 = vadd.s32 %v1161_v53, %v985_v15  ;;  %v1226_v37 = vadd.s32 %v1162_v55, %v986_v16  ;;  %v4050_v24 = vpop.permute.xlu2 %369  ;;  %v1222_v30 = vadd.s32 %v1158_v17, %v982_v18  ;;  %v1223_v28 = vadd.s32 %v1159_v22, %v983_v20 }
  0xca   : > { %v4052_v54 = vpop.permute.xlu0 %572  ;;  %v1227_v32 = vadd.s32 %v1163_v59, %v987_v21  ;;  %v1285_v39 = vcvt.s32.f32 %v1221_v27  ;;  %v4076_v31 = vadd.s32 %v1164_v50, %v988_v25  ;;  %v4079_v53 = vsel %vm621_vm15, 1, %v3479_v1 }
  0xcb   : > { %v1289_v41 = vcvt.s32.f32 %v1225_v23  ;;  %v1290_v36 = vcvt.s32.f32 %v1226_v37  ;;  %v1286_v42 = vcvt.s32.f32 %v1222_v30  ;;  %v1287_v48 = vcvt.s32.f32 %v1223_v28 }
  0xcc   : > { %v1291_v38 = vcvt.s32.f32 %v1227_v32  ;;  %v4082_v55 = vsel %vm622_vm0, 1, %v3479_v1  ;;  %vm418_vm5 = vcmp.eq.s32.totalorder %v3767_v46, %v4050_v24  ;;  %vm419_vm7 = vcmp.eq.s32.totalorder %v3770_v47, %v4050_v24 }
  0xcd   : > { %v4060_v26 = vpop.permute.xlu1 %393  ;;  %v1337_v62 = vpack.c.bf16 %v1289_v41, %v1285_v39  ;;  %v1338_v33 = vpack.c.bf16 %v1290_v36, %v1286_v42  ;;  %vm1101_vm11 = vcmp.eq.s32.totalorder %v3754_v43, %v3911_v14  ;;  %vm861_vm12 = vcmp.eq.s32.totalorder %v3754_v43, %v4004_v52 }
  0xce   : > { %v1339_v51 = vpack.c.bf16 %v1291_v38, %v1287_v48  ;;  %vm862_vm13 = vcmp.eq.s32.totalorder %v3767_v46, %v4004_v52  ;;  %vm452_vm3 = vcmp.eq.s32.totalorder %v3763_v45, %v4060_v26  ;;  %vm420_vm4 = vcmp.eq.s32.totalorder %v3763_v45, %v4050_v24  ;;  %v4235_v48 = vld [vmem:[%s3599_s13 + $0x70] sm:$0xff]  ;;  %s2593_s13 = scalar_lea.hbm %s5543_s6, %s3072_s18 }
  0xcf   : > { %3258 = vset.pattern.permute.xlu1 %v3478_v0  ;;  %1636 = vmatmul.bf16.gmra.mxu3 %v1337_v62  ;;  %vm863_vm6 = vcmp.eq.s32.totalorder %v3770_v47, %v4004_v52  ;;  %vm864_vm9 = vcmp.eq.s32.totalorder %v3763_v45, %v4004_v52  ;;  %v482_v57 = vsel %vm418_vm5, 1, %v3479_v1  ;;  %v483_v58 = vsel %vm419_vm7, 1, %v3479_v1  ;;  %s2596_s22 = sshll.u32 %s2593_s13, 4  ;;  %s2597_s22 = int_to_ptr.hbm [resolvable:$true] %s2596_s22 }
  0xd0   : > { %578 = vperm.xlu1 %3258, %v3928_v40   ;;  %3259 = vset.pattern.permute.xlu2 %v3478_v0  ;;  %v4124_v63 = vsel %vm861_vm12, 1, %v3479_v1  ;;  %v516_v4 = vsel %vm452_vm3, 1, %v3479_v1  ;;  %v484_v7 = vsel %vm420_vm4, 1, %v3479_v1  ;;  %v4134_v9 = vsel %vm862_vm13, 1, %v3479_v1  ;;  %s3361_s24 = sshra.s32 %s2597_s22, 4  ;;  %s3362_s24 = int_to_ptr.hbm [resolvable:$true] %s3361_s24 }
  0xd1   : > { %1685 = vmatmul.bf16.gmra.mxu1 %v1338_v33  ;;  %1734 = vmatmul.bf16.gmra.mxu2 %v1339_v51  ;;  %vm449_vm0 = vcmp.eq.s32.totalorder %v3754_v43, %v4060_v26  ;;  %vm450_vm2 = vcmp.eq.s32.totalorder %v3767_v46, %v4060_v26  ;;  %vm1096_vm5 = vcmp.eq.s32.totalorder %v3763_v45, %v4033_v6  ;;  %v4153_v16 = vsel %vm863_vm6, 1, %v3479_v1  ;;  %s3363_s10 = scalar_lea.hbm %s3362_s24, 128  ;;  %p3368_p3 = scmp.lt.s32.totalorder %s3362_s24, %s5543_s6 }
  0xd2   : > { %v4074_v3 = vpop.permute.xlu2 %545  ;;  %581 = vperm.xlu2 %3259, %v3874_v29   ;;  %3272 = vset.pattern.permute.xlu0 %v3481_v5  ;;  %vm417_vm7 = vcmp.eq.s32.totalorder %v3754_v43, %v4050_v24  ;;  %vm451_vm12 = vcmp.eq.s32.totalorder %v3770_v47, %v4060_v26  ;;  %v513_v21 = vsel %vm449_vm0, 1, %v3479_v1  ;;  %v514_v22 = vsel %vm450_vm2, 1, %v3479_v1  ;;  %p3364_p0 = scmp.ne.s32.totalorder %s3362_s24, %s3363_s10 }
  0xd3   : > { %v4084_v19 = vpop.permute.xlu0 %809  ;;  %vm594_vm8 = vcmp.eq.s32.totalorder %v3767_v46, %v4074_v3  ;;  %vm595_vm10 = vcmp.eq.s32.totalorder %v3770_v47, %v4074_v3  ;;  %vm596_vm15 = vcmp.eq.s32.totalorder %v3763_v45, %v4074_v3  ;;  %v1160_v23 = vsel %vm1096_vm5, 1, %v3479_v1 }
  0xd4   : > { %v658_v60 = vsel %vm594_vm8, 1, %v3479_v1  ;;  %v659_v61 = vsel %vm595_vm10, 1, %v3479_v1  ;;  %v660_v13 = vsel %vm596_vm15, 1, %v3479_v1  ;;  %vm865_vm13 = vcmp.eq.s32.totalorder %v3754_v43, %v4084_v19  ;;  %p3365_p1 = pnand %p3364_p0, %p3572_p5 }
  0xd5   : > { %v4143_v15 = vadd.s32 %v658_v60, %v482_v57  ;;  %v4145_v35 = vadd.s32 %v659_v61, %v483_v58  ;;  %v4163_v18 = vadd.s32 %v660_v13, %v484_v7  ;;  %vm866_vm3 = vcmp.eq.s32.totalorder %v3767_v46, %v4084_v19 }
  0xd6   : > { %v570_v59 = vpop.permute.xlu1 %569  ;;  %vm867_vm4 = vcmp.eq.s32.totalorder %v3770_v47, %v4084_v19  ;;  %vm868_vm6 = vcmp.eq.s32.totalorder %v3763_v45, %v4084_v19  ;;  %v515_v28 = vsel %vm451_vm12, 1, %v3479_v1  ;;  %v929_v32 = vsel %vm865_vm13, 1, %v3479_v1  ;;  %p3366_p2 = pneg %p3365_p1 }
  0xd7   : > { %vm628_vm14 = vcmp.eq.s32.totalorder %v3763_v45, %v570_v59  ;;  %vm625_vm1 = vcmp.eq.s32.totalorder %v3754_v43, %v570_v59  ;;  %vm626_vm8 = vcmp.eq.s32.totalorder %v3767_v46, %v570_v59  ;;  %vm627_vm10 = vcmp.eq.s32.totalorder %v3770_v47, %v570_v59 }
  0xd8   : > { %v692_v8 = vsel %vm628_vm14, 1, %v3479_v1  ;;  %3260 = vset.pattern.permute.xlu1 %v3480_v2  ;;  %v689_v52 = vsel %vm625_vm1, 1, %v3479_v1  ;;  %v690_v37 = vsel %vm626_vm8, 1, %v3479_v1  ;;  %v691_v25 = vsel %vm627_vm10, 1, %v3479_v1 }
  0xd9   : > { %v756_v11 = vadd.s32 %v692_v8, %v516_v4  ;;  %818 = vperm.xlu1 %3260, %v3928_v40   ;;  %v4159_v40 = vsel %vm864_vm9, 1, %v3479_v1  ;;  %v753_v27 = vadd.s32 %v689_v52, %v513_v21  ;;  %vm593_vm9 = vcmp.eq.s32.totalorder %v3754_v43, %v4074_v3 }
  0xda   : > { %3261 = vset.pattern.permute.xlu2 %v3480_v2  ;;  %v4210_v6 = vsel %vm417_vm7, 1, %v3479_v1  ;;  %v4216_v26 = vsel %vm1101_vm11, 1, %v3479_v1  ;;  %v930_v41 = vsel %vm866_vm3, 1, %v3479_v1  ;;  %v4220_v36 = vsel %vm867_vm4, 1, %v3479_v1 }
  0xdb   : > { %v4161_v17 = vpop.permute.xlu0 %788  ;;  %v4166_v20 = vpop.permute.xlu2 %782  ;;  %821 = vperm.xlu2 %3261, %v3874_v29   ;;  %v932_v38 = vsel %vm868_vm6, 1, %v3479_v1  ;;  %vm1102_vm15 = vcmp.eq.s32.totalorder %v3767_v46, %v3911_v14  ;;  %v754_v24 = vadd.s32 %v690_v37, %v514_v22  ;;  %v4228_v39 = vadd.s32 %v691_v25, %v515_v28 }
  0xdc   : > { %vm831_vm14 = vcmp.eq.s32.totalorder %v3770_v47, %v4166_v20  ;;  %v4231_v42 = vsel %vm593_vm9, 1, %v3479_v1  ;;  %v4238_v50 = vadd.s32 %v1160_v23, %v3990_v49  ;;  %vm829_vm11 = vcmp.eq.s32.totalorder %v3754_v43, %v4166_v20 }
  0xdd   : > { %vm830_vm0 = vcmp.eq.s32.totalorder %v3767_v46, %v4166_v20  ;;  %vm832_vm1 = vcmp.eq.s32.totalorder %v3763_v45, %v4166_v20  ;;  %v4246_v62 = vadd.s32 %v929_v32, %v753_v27  ;;  %v895_v49 = vsel %vm831_vm14, 1, %v3479_v1 }
  0xde   : > { %v4254_v33 = vadd.s32 %v932_v38, %v756_v11  ;;  %vm1103_vm7 = vcmp.eq.s32.totalorder %v3770_v47, %v3911_v14  ;;  %v994_v27 = vadd.s32 %v930_v41, %v754_v24  ;;  %v896_v41 = vsel %vm832_vm1, 1, %v3479_v1 }
  0xdf   : > { %v4202_v30 = vpop.permute.xlu1 %366  ;;  %v995_v24 = vadd.s32 %v4220_v36, %v4228_v39  ;;  %v1167_v36 = vsel %vm1103_vm7, 1, %v3479_v1  ;;  %v1288_v39 = vcvt.s32.f32 %v4238_v50 }
  0xe0   : > { %vm414_vm2 = vcmp.eq.s32.totalorder %v3767_v46, %v4202_v30  ;;  %vm415_vm5 = vcmp.eq.s32.totalorder %v3770_v47, %v4202_v30  ;;  %vm413_vm3 = vcmp.eq.s32.totalorder %v3754_v43, %v4202_v30  ;;  %vm416_vm4 = vcmp.eq.s32.totalorder %v3763_v45, %v4202_v30 }
  0xe1   : > { %3263 = vset.pattern.permute.xlu1 %v3481_v5  ;;  %v478_v58 = vsel %vm414_vm2, 1, %v3479_v1  ;;  %v479_v59 = vsel %vm415_vm5, 1, %v3479_v1 }
  0xe2   : > { %1061 = vperm.xlu1 %3263, %v3874_v29  }
  0xe3   : > { %3264 = vset.pattern.permute.xlu2 %v3479_v1 }
  0xe4   : > { %v391_v29 = vpop.permute.xlu0 %390  ;;  %408 = vperm.xlu2 %3264, %v4235_v48   ;;  %v4263_v51 = vpop.permute.xlu2 %1022 }
  0xe5   : > { %vm445_vm8 = vcmp.eq.s32.totalorder %v3754_v43, %v391_v29  ;;  %vm446_vm10 = vcmp.eq.s32.totalorder %v3767_v46, %v391_v29  ;;  %vm447_vm12 = vcmp.eq.s32.totalorder %v3770_v47, %v391_v29  ;;  %vm448_vm13 = vcmp.eq.s32.totalorder %v3763_v45, %v391_v29 }
  0xe6   : > { %v509_v3 = vsel %vm445_vm8, 1, %v3479_v1  ;;  %v510_v19 = vsel %vm446_vm10, 1, %v3479_v1  ;;  %v512_v57 = vsel %vm448_vm13, 1, %v3479_v1  ;;  %v511_v61 = vsel %vm447_vm12, 1, %v3479_v1 }
  0xe7   : > { %v4281_v60 = vadd.s32 %v4095_v56, %v512_v57  ;;  %v749_v4 = vadd.s32 %v4079_v53, %v509_v3  ;;  %v750_v7 = vadd.s32 %v4082_v55, %v510_v19  ;;  %vm1071_vm6 = vcmp.eq.s32.totalorder %v3770_v47, %v4263_v51 }
  0xe8   : > { %v543_v8 = vpop.permute.xlu1 %542  ;;  %v480_v56 = vsel %vm416_vm4, 1, %v3479_v1  ;;  %v751_v13 = vadd.s32 %v4092_v10, %v511_v61  ;;  %v1135_v37 = vsel %vm1071_vm6, 1, %v3479_v1  ;;  %vm1074_vm8 = vcmp.eq.s32.totalorder %v3767_v46, %v3955_v44 }
  0xe9   : > { %vm589_vm9 = vcmp.eq.s32.totalorder %v3754_v43, %v543_v8  ;;  %vm590_vm14 = vcmp.eq.s32.totalorder %v3767_v46, %v543_v8  ;;  %vm591_vm2 = vcmp.eq.s32.totalorder %v3770_v47, %v543_v8  ;;  %vm592_vm5 = vcmp.eq.s32.totalorder %v3763_v45, %v543_v8 }
  0xea   : > { %v654_v11 = vsel %vm590_vm14, 1, %v3479_v1  ;;  %v655_v53 = vsel %vm591_vm2, 1, %v3479_v1  ;;  %v656_v55 = vsel %vm592_vm5, 1, %v3479_v1  ;;  %3265 = vset.pattern.permute.xlu1 %v3479_v1  ;;  %v653_v23 = vsel %vm589_vm9, 1, %v3479_v1 }
  0xeb   : > { %v718_v52 = vadd.s32 %v654_v11, %v478_v58  ;;  %v719_v21 = vadd.s32 %v655_v53, %v479_v59  ;;  %v720_v22 = vadd.s32 %v656_v55, %v480_v56  ;;  %411 = vperm.xlu1 %3265, %v4055_v34   ;;  %v989_v25 = vadd.s32 %v4124_v63, %v749_v4 }
  0xec   : > { %v893_v10 = vsel %vm829_vm11, 1, %v3479_v1  ;;  %3266 = vset.pattern.permute.xlu2 %v3478_v0  ;;  %v990_v38 = vadd.s32 %v4134_v9, %v750_v7  ;;  %v1166_v63 = vsel %vm1102_vm15, 1, %v3479_v1  ;;  %vm1075_vm10 = vcmp.eq.s32.totalorder %v3770_v47, %v3955_v44 }
  0xed   : > { %v959_v28 = vadd.s32 %v895_v49, %v719_v21  ;;  %v4312_v32 = vpop.permute.xlu2 %399  ;;  %vm1076_vm12 = vcmp.eq.s32.totalorder %v3763_v45, %v3955_v44  ;;  %v477_v0 = vsel %vm413_vm3, 1, %v3479_v1  ;;  %v894_v9 = vsel %vm830_vm0, 1, %v3479_v1  ;;  %584 = vperm.xlu2 %3266, %v4235_v48  }
  0xee   : > { %vm1104_vm15 = vcmp.eq.s32.totalorder %v3763_v45, %v3911_v14  ;;  %vm1073_vm11 = vcmp.eq.s32.totalorder %v3754_v43, %v3955_v44  ;;  %v717_v30 = vadd.s32 %v653_v23, %v477_v0  ;;  %vm1070_vm0 = vcmp.eq.s32.totalorder %v3767_v46, %v4263_v51 }
  0xef   : > { %v4344_v29 = vadd.s32 %v1135_v37, %v959_v28  ;;  %v991_v20 = vadd.s32 %v4153_v16, %v751_v13  ;;  %v1229_v49 = vadd.s32 %v4216_v26, %v989_v25  ;;  %v1292_v3 = vcvt.s32.f32 %v4076_v31 }
  0xf0   : > { %vm1069_vm1 = vcmp.eq.s32.totalorder %v3754_v43, %v4263_v51  ;;  %vm1072_vm13 = vcmp.eq.s32.totalorder %v3763_v45, %v4263_v51  ;;  %v1230_v16 = vadd.s32 %v1166_v63, %v990_v38  ;;  %v958_v57 = vadd.s32 %v894_v9, %v718_v52 }
  0xf1   : > { %v4358_v19 = vpop.permute.xlu1 %1049  ;;  %v1134_v26 = vsel %vm1070_vm0, 1, %v3479_v1  ;;  %v1231_v58 = vadd.s32 %v1167_v36, %v991_v20  ;;  %v957_v59 = vadd.s32 %v893_v10, %v717_v30  ;;  %v1293_v4 = vcvt.s32.f32 %v1229_v49 }
  0xf2   : > { %vm1105_vm3 = vcmp.eq.s32.totalorder %v3754_v43, %v4358_v19  ;;  %vm1106_vm7 = vcmp.eq.s32.totalorder %v3767_v46, %v4358_v19  ;;  %vm1107_vm4 = vcmp.eq.s32.totalorder %v3770_v47, %v4358_v19  ;;  %v1294_v56 = vcvt.s32.f32 %v1230_v16 }
  0xf3   : > { %3268 = vset.pattern.permute.xlu1 %v3480_v2  ;;  %v1169_v31 = vsel %vm1105_vm3, 1, %v3479_v1  ;;  %v1170_v50 = vsel %vm1106_vm7, 1, %v3479_v1  ;;  %v1171_v8 = vsel %vm1107_vm4, 1, %v3479_v1  ;;  %v4373_v53 = vadd.s32 %v1134_v26, %v958_v57 }
  0xf4   : > { %824 = vperm.xlu1 %3268, %v4235_v48   ;;  %v1233_v61 = vadd.s32 %v1169_v31, %v4246_v62  ;;  %v1234_v7 = vadd.s32 %v1170_v50, %v994_v27  ;;  %v1235_v11 = vadd.s32 %v1171_v8, %v995_v24  ;;  %v960_v55 = vadd.s32 %v896_v41, %v720_v22  ;;  %v3047_v8 = vld [vmem:[%s5555_s1 + $0xf8] sm:$0xff] }
  0xf5   : > { %3269 = vset.pattern.permute.xlu2 %v3480_v2  ;;  %v4378_v23 = vpack.c.bf16 %v1292_v3, %v1288_v39  ;;  %v992_v62 = vadd.s32 %v4159_v40, %v4281_v60  ;;  %v1136_v37 = vsel %vm1072_vm13, 1, %v3479_v1  ;;  %v1295_v25 = vcvt.s32.f32 %v1231_v58  ;;  %1760 = vmatpush.bf16.msrb.mxu3 %v3047_v8 }
  0xf6   : > { %v1297_v13 = vcvt.s32.f32 %v1233_v61  ;;  %v1298_v52 = vcvt.s32.f32 %v1234_v7  ;;  %v4376_v21 = vpop.permute.xlu2 %812  ;;  %v1299_v27 = vcvt.s32.f32 %v1235_v11  ;;  %827 = vperm.xlu2 %3269, %v4055_v34   ;;  %v1133_v2 = vsel %vm1069_vm1, 1, %v3479_v1 }
  0xf7   : > { %v1138_v22 = vsel %vm1074_vm8, 1, %v3479_v1  ;;  %v1139_v10 = vsel %vm1075_vm10, 1, %v3479_v1  ;;  %v1140_v28 = vsel %vm1076_vm12, 1, %v3479_v1  ;;  %v721_v51 = vadd.s32 %v4231_v42, %v4210_v6 }
  0xf8   : > { %v1341_v40 = vpack.c.bf16 %v1297_v13, %v1293_v4  ;;  %v1342_v60 = vpack.c.bf16 %v1298_v52, %v1294_v56  ;;  %v1343_v38 = vpack.c.bf16 %v1299_v27, %v1295_v25  ;;  %v1137_v0 = vsel %vm1073_vm11, 1, %v3479_v1  ;;  %v3310_v25 = vld [vmem:[%s5555_s1 + $0xb0] sm:$0xff] }
  0xf9   : > { %v1197_v9 = vadd.s32 %v1133_v2, %v957_v59  ;;  %v4409_v41 = vadd.s32 %v1136_v37, %v960_v55  ;;  %v1168_v24 = vsel %vm1104_vm15, 1, %v3479_v1  ;;  %vm632_vm5 = vcmp.eq.s32.totalorder %v3763_v45, %v4052_v54  ;;  %v3309_v59 = vld [vmem:[%s5555_s1 + $0xb8] sm:$0xff] }
  0xfa   : > { %1641 = vmatmul.bf16.gmra.mxu3 %v1341_v40  ;;  %1690 = vmatmul.bf16.gmra.mxu1 %v1342_v60  ;;  %v786_v63 = vpop.permute.xlu1 %785  ;;  %v4428_v39 = vadd.s32 %v1168_v24, %v992_v62  ;;  %vm1108_vm15 = vcmp.eq.s32.totalorder %v3763_v45, %v4358_v19  ;;  %v1263_v19 = vcvt.s32.f32 %v4344_v29  ;;  %v1262_v37 = vcvt.s32.f32 %v4373_v53  ;;  %v3046_v24 = vld [vmem:[%s5555_s1 + $0xf0] sm:$0xff] }
  0xfb   : > { %1739 = vmatmul.bf16.gmra.mxu2 %v1343_v38  ;;  %vm833_vm6 = vcmp.eq.s32.totalorder %v3754_v43, %v786_v63  ;;  %vm834_vm9 = vcmp.eq.s32.totalorder %v3767_v46, %v786_v63  ;;  %vm835_vm14 = vcmp.eq.s32.totalorder %v3770_v47, %v786_v63  ;;  %vm836_vm2 = vcmp.eq.s32.totalorder %v3763_v45, %v786_v63  ;;  %v3311_v63 = vld [vmem:[%s5555_s1 + $0xa8] sm:$0xff] }
  0xfc   : > { %v897_v44 = vsel %vm833_vm6, 1, %v3479_v1  ;;  %v898_v6 = vsel %vm834_vm9, 1, %v3479_v1  ;;  %v899_v42 = vsel %vm835_vm14, 1, %v3479_v1  ;;  %v900_v30 = vsel %vm836_vm2, 1, %v3479_v1  ;;  %3270 = vset.pattern.permute.xlu1 %v3481_v5  ;;  %1761 = vmatpush.bf16.msrb.mxu3 %v3046_v24 }
  0xfd   : > { %v962_v14 = vadd.s32 %v898_v6, %v4143_v15  ;;  %v963_v20 = vadd.s32 %v899_v42, %v4145_v35  ;;  %v964_v49 = vadd.s32 %v900_v30, %v4163_v18  ;;  %1064 = vperm.xlu1 %3270, %v4235_v48   ;;  %v961_v36 = vadd.s32 %v897_v44, %v721_v51  ;;  %v4436_v18 = vpop.permute.xlu0 %375  ;;  %v3312_v44 = vld [vmem:[%s5555_s1 + $0xa0] sm:$0xff] }
  0xfe   : > { %3271 = vset.pattern.permute.xlu2 %v3481_v5  ;;  %v1261_v15 = vcvt.s32.f32 %v1197_v9  ;;  %v696_v48 = vsel %vm632_vm5, 1, %v3479_v1  ;;  %vm427_vm10 = vcmp.eq.s32.totalorder %v3770_v47, %v4436_v18  ;;  %vm428_vm12 = vcmp.eq.s32.totalorder %v3763_v45, %v4436_v18 }
  0xff   : > { %v1203_v3 = vadd.s32 %v1139_v10, %v963_v20  ;;  %v1201_v16 = vadd.s32 %v1137_v0, %v961_v36  ;;  %v4431_v57 = vpop.permute.xlu2 %372  ;;  %v1202_v26 = vadd.s32 %v1138_v22, %v962_v14  ;;  %v1204_v31 = vadd.s32 %v1140_v28, %v964_v49  ;;  %1067 = vperm.xlu2 %3271, %v4055_v34  }
 0x100   : > { %v491_v61 = vsel %vm427_vm10, 1, %v3479_v1  ;;  %v492_v7 = vsel %vm428_vm12, 1, %v3479_v1  ;;  %v1172_v13 = vsel %vm1108_vm15, 1, %v3479_v1  ;;  %v1264_v29 = vcvt.s32.f32 %v4409_v41 }
 0x101   : > { %v1265_v35 = vcvt.s32.f32 %v1201_v16  ;;  %v1266_v56 = vcvt.s32.f32 %v1202_v26  ;;  %v1267_v11 = vcvt.s32.f32 %v1203_v3  ;;  %v1268_v55 = vcvt.s32.f32 %v1204_v31  ;;  %v3313_v3 = vld [vmem:[%s5555_s1 + $0x98] sm:$0xff] }
 0x102   : > { %vm460_vm1 = vcmp.eq.s32.totalorder %v3763_v45, %v4312_v32  ;;  %vm872_vm13 = vcmp.eq.s32.totalorder %v3763_v45, %v4376_v21  ;;  %v1236_v10 = vadd.s32 %v1172_v13, %v4254_v33  ;;  %vm629_vm7 = vcmp.eq.s32.totalorder %v3754_v43, %v4052_v54  ;;  %v3315_v13 = vld [vmem:[%s5555_s1 + $0x88] sm:$0xff] }
 0x103   : > { %v4439_v50 = vpop.permute.xlu1 %396  ;;  %v1325_v58 = vpack.c.bf16 %v1265_v35, %v1261_v15  ;;  %v4483_v53 = vpack.c.bf16 %v1266_v56, %v1262_v37  ;;  %v4485_v40 = vpack.c.bf16 %v1267_v11, %v1263_v19  ;;  %v4487_v60 = vpack.c.bf16 %v1268_v55, %v1264_v29 }
 0x104   : > { %vm456_vm8 = vcmp.eq.s32.totalorder %v3763_v45, %v4439_v50  ;;  %v524_v28 = vsel %vm460_vm1, 1, %v3479_v1  ;;  %v936_v51 = vsel %vm872_vm13, 1, %v3479_v1  ;;  %v1300_v9 = vcvt.s32.f32 %v1236_v10 }
 0x105   : > { %v520_v5 = vsel %vm456_vm8, 1, %v3479_v1  ;;  %1621 = vmatmul.bf16.vlgmr.msra.gmra.mxu0 %v1325_v58  ;;  %vm630_vm4 = vcmp.eq.s32.totalorder %v3767_v46, %v4052_v54  ;;  %v1296_v33 = vcvt.s32.f32 %v4428_v39  ;;  %vm631_vm6 = vcmp.eq.s32.totalorder %v3770_v47, %v4052_v54 }
 0x106   : > { %v760_v34 = vadd.s32 %v696_v48, %v520_v5  ;;  %1711 = vmatpush.bf16.msra.mxu0 %v3309_v59  ;;  %vm839_vm9 = vcmp.eq.s32.totalorder %v3770_v47, %v4161_v17  ;;  %vm840_vm14 = vcmp.eq.s32.totalorder %v3763_v45, %v4161_v17  ;;  %vm457_vm2 = vcmp.eq.s32.totalorder %v3754_v43, %v4312_v32 }
 0x107   : > { %v4523_v54 = vpack.c.bf16 %v1300_v9, %v1296_v33  ;;  %v693_v42 = vsel %vm629_vm7, 1, %v3479_v1  ;;  %v694_v30 = vsel %vm630_vm4, 1, %v3479_v1  ;;  %vm458_vm5 = vcmp.eq.s32.totalorder %v3767_v46, %v4312_v32 }
 0x108   : > { %v4454_v4 = vpop.permute.xlu2 %551  ;;  %v4505_v41 = vadd.s32 %v936_v51, %v760_v34  ;;  %v695_v14 = vsel %vm631_vm6, 1, %v3479_v1  ;;  %v4531_v20 = vsel %vm839_vm9, 1, %v3479_v1  ;;  %v4534_v49 = vsel %vm840_vm14, 1, %v3479_v1 }
 0x109   : > { %vm603_vm11 = vcmp.eq.s32.totalorder %v3770_v47, %v4454_v4  ;;  %vm604_vm0 = vcmp.eq.s32.totalorder %v3763_v45, %v4454_v4  ;;  %vm459_vm8 = vcmp.eq.s32.totalorder %v3770_v47, %v4312_v32  ;;  %v521_v39 = vsel %vm457_vm2, 1, %v3479_v1  ;;  %v3314_v32 = vld [vmem:[%s5555_s1 + $0x90] sm:$0xff] }
 0x10a   : > { %v667_v52 = vsel %vm603_vm11, 1, %v3479_v1  ;;  %v668_v62 = vsel %vm604_vm0, 1, %v3479_v1  ;;  %1712 = vmatpush.bf16.msra.mxu0 %v3310_v25  ;;  %vm869_vm10 = vcmp.eq.s32.totalorder %v3754_v43, %v4376_v21  ;;  %vm453_vm12 = vcmp.eq.s32.totalorder %v3754_v43, %v4439_v50 }
 0x10b   : > { %v4477_v27 = vadd.s32 %v667_v52, %v491_v61  ;;  %v4479_v2 = vadd.s32 %v668_v62, %v492_v7  ;;  %vm454_vm15 = vcmp.eq.s32.totalorder %v3767_v46, %v4439_v50  ;;  %v522_v16 = vsel %vm458_vm5, 1, %v3479_v1 }
 0x10c   : > { %v4481_v22 = vpop.permute.xlu1 %575  ;;  %vm870_vm11 = vcmp.eq.s32.totalorder %v3767_v46, %v4376_v21  ;;  %vm871_vm0 = vcmp.eq.s32.totalorder %v3770_v47, %v4376_v21  ;;  %vm455_vm13 = vcmp.eq.s32.totalorder %v3770_v47, %v4439_v50  ;;  %vm424_vm7 = vcmp.eq.s32.totalorder %v3763_v45, %v4431_v57 }
 0x10d   : > { %vm636_vm3 = vcmp.eq.s32.totalorder %v3763_v45, %v4481_v22  ;;  %vm633_vm1 = vcmp.eq.s32.totalorder %v3754_v43, %v4481_v22  ;;  %vm634_vm4 = vcmp.eq.s32.totalorder %v3767_v46, %v4481_v22  ;;  %v523_v21 = vsel %vm459_vm8, 1, %v3479_v1 }
 0x10e   : > { %v700_v38 = vsel %vm636_vm3, 1, %v3479_v1  ;;  %1713 = vmatpush.bf16.msra.mxu0 %v3311_v63  ;;  %vm423_vm3 = vcmp.eq.s32.totalorder %v3770_v47, %v4431_v57  ;;  %v933_v26 = vsel %vm869_vm10, 1, %v3479_v1  ;;  %v517_v31 = vsel %vm453_vm12, 1, %v3479_v1  ;;  %v3316_v63 = vld [vmem:[%s5555_s1 + $0x80] sm:$0xff] }
 0x10f   : > { %v4498_v0 = vadd.s32 %v700_v38, %v524_v28  ;;  %v518_v15 = vsel %vm454_vm15, 1, %v3479_v1  ;;  %v934_v35 = vsel %vm870_vm11, 1, %v3479_v1  ;;  %v935_v48 = vsel %vm871_vm0, 1, %v3479_v1 }
 0x110   : > { %vm635_vm6 = vcmp.eq.s32.totalorder %v3770_v47, %v4481_v22  ;;  %v697_v50 = vsel %vm633_vm1, 1, %v3479_v1  ;;  %v519_v58 = vsel %vm455_vm13, 1, %v3479_v1  ;;  %v487_v5 = vsel %vm423_vm3, 1, %v3479_v1 }
 0x111   : > { %v4521_v6 = vpop.permute.xlu2 %1055  ;;  %v488_v34 = vsel %vm424_vm7, 1, %v3479_v1  ;;  %v698_v59 = vsel %vm634_vm4, 1, %v3479_v1  ;;  %v757_v7 = vadd.s32 %v693_v42, %v517_v31  ;;  %v758_v8 = vadd.s32 %v694_v30, %v518_v15  ;;  %v3045_v30 = vld [vmem:[%s5555_s1 + $0xe8] sm:$0xff] }
 0x112   : > { %1714 = vmatpush.bf16.msra.mxu0 %v3312_v44  ;;  %v699_v56 = vsel %vm635_vm6, 1, %v3479_v1  ;;  %v761_v11 = vadd.s32 %v697_v50, %v521_v39  ;;  %v762_v55 = vadd.s32 %v698_v59, %v522_v16  ;;  %vm1113_vm8 = vcmp.eq.s32.totalorder %v3754_v43, %v4521_v6  ;;  %1762 = vmatpush.bf16.msrb.mxu3 %v3045_v30 }
 0x113   : > { %vm1114_vm10 = vcmp.eq.s32.totalorder %v3767_v46, %v4521_v6  ;;  %vm1116_vm12 = vcmp.eq.s32.totalorder %v3763_v45, %v4521_v6  ;;  %v759_v51 = vadd.s32 %v695_v14, %v519_v58  ;;  %v763_v38 = vadd.s32 %v699_v56, %v523_v21 }
 0x114   : > { %vm1115_vm13 = vcmp.eq.s32.totalorder %v3770_v47, %v4521_v6  ;;  %v1177_v44 = vsel %vm1113_vm8, 1, %v3479_v1  ;;  %v1180_v14 = vsel %vm1116_vm12, 1, %v3479_v1  ;;  %v997_v6 = vadd.s32 %v933_v26, %v757_v7 }
 0x115   : > { %v816_v36 = vpop.permute.xlu1 %815  ;;  %v1179_v16 = vsel %vm1115_vm13, 1, %v3479_v1  ;;  %v998_v15 = vadd.s32 %v934_v35, %v758_v8  ;;  %v999_v50 = vadd.s32 %v935_v48, %v759_v51  ;;  %vm425_vm8 = vcmp.eq.s32.totalorder %v3754_v43, %v4436_v18 }
 0x116   : > { %1715 = vmatpush.bf16.msra.mxu0 %v3313_v3  ;;  %vm873_vm9 = vcmp.eq.s32.totalorder %v3754_v43, %v816_v36  ;;  %vm876_vm14 = vcmp.eq.s32.totalorder %v3763_v45, %v816_v36  ;;  %vm874_vm2 = vcmp.eq.s32.totalorder %v3767_v46, %v816_v36  ;;  %vm875_vm5 = vcmp.eq.s32.totalorder %v3770_v47, %v816_v36 }
 0x117   : > { %v937_v52 = vsel %vm873_vm9, 1, %v3479_v1  ;;  %v940_v62 = vsel %vm876_vm14, 1, %v3479_v1  ;;  %v938_v37 = vsel %vm874_vm2, 1, %v3479_v1  ;;  %v939_v25 = vsel %vm875_vm5, 1, %v3479_v1 }
 0x118   : > { %v1004_v9 = vadd.s32 %v940_v62, %v4498_v0  ;;  %v1001_v24 = vadd.s32 %v937_v52, %v761_v11  ;;  %v1002_v42 = vadd.s32 %v938_v37, %v762_v55  ;;  %v1178_v0 = vsel %vm1114_vm10, 1, %v3479_v1  ;;  %v4665_v11 = vpop.permute.xlu0 %405 }
 0x119   : > { %v4582_v61 = vpop.permute.xlu2 %1028  ;;  %v1003_v36 = vadd.s32 %v939_v25, %v763_v38  ;;  %vm421_vm9 = vcmp.eq.s32.totalorder %v3754_v43, %v4431_v57  ;;  %vm468_vm14 = vcmp.eq.s32.totalorder %v3763_v45, %v4665_v11  ;;  %vm837_vm2 = vcmp.eq.s32.totalorder %v3754_v43, %v4161_v17  ;;  %v3044_v38 = vld [vmem:[%s5555_s1 + $0xe0] sm:$0xff] }
 0x11a   : > { %1716 = vmatpush.bf16.msra.mxu0 %v3314_v32  ;;  %vm1079_vm0 = vcmp.eq.s32.totalorder %v3770_v47, %v4582_v61  ;;  %vm1080_vm1 = vcmp.eq.s32.totalorder %v3763_v45, %v4582_v61  ;;  %v4648_v32 = vadd.s32 %v1180_v14, %v1004_v9  ;;  %vm601_vm10 = vcmp.eq.s32.totalorder %v3754_v43, %v4454_v4 }
 0x11b   : > { %v1143_v39 = vsel %vm1079_vm0, 1, %v3479_v1  ;;  %v1144_v3 = vsel %vm1080_vm1, 1, %v3479_v1  ;;  %v901_v30 = vsel %vm837_vm2, 1, %v3479_v1  ;;  %1763 = vmatpush.bf16.msrb.mxu3 %v3044_v38  ;;  %vm838_vm1 = vcmp.eq.s32.totalorder %v3767_v46, %v4161_v17  ;;  %v3043_v17 = vld [vmem:[%s5555_s1 + $0xd8] sm:$0xff] }
 0x11e   : > { %v4595_v19 = vpop.permute.xlu1 %548  ;;  %1717 = vmatpush.bf16.msra.mxu0 %v3315_v13 }
 0x11f   : > { %vm599_vm15 = vcmp.eq.s32.totalorder %v3770_v47, %v4595_v19  ;;  %vm600_vm11 = vcmp.eq.s32.totalorder %v3763_v45, %v4595_v19  ;;  %vm597_vm6 = vcmp.eq.s32.totalorder %v3754_v43, %v4595_v19  ;;  %1764 = vmatpush.bf16.msrb.mxu3 %v3043_v17 }
 0x120   : > { %v663_v29 = vsel %vm599_vm15, 1, %v3479_v1  ;;  %v664_v22 = vsel %vm600_vm11, 1, %v3479_v1  ;;  %vm1077_vm11 = vcmp.eq.s32.totalorder %v3754_v43, %v4582_v61 }
 0x121   : > { %v727_v10 = vadd.s32 %v663_v29, %v487_v5  ;;  %v728_v28 = vadd.s32 %v664_v22, %v488_v34  ;;  %v1241_v5 = vadd.s32 %v1177_v44, %v1001_v24  ;;  %v1242_v34 = vadd.s32 %v1178_v0, %v1002_v42 }
 0x122   : > { %1718 = vmatpush.bf16.msra.mxu0 %v3316_v63  ;;  %v4620_v33 = vpop.permute.xlu2 %402  ;;  %v661_v22 = vsel %vm597_vm6, 1, %v3479_v1  ;;  %v485_v63 = vsel %vm421_vm9, 1, %v3479_v1  ;;  %v532_v44 = vsel %vm468_vm14, 1, %v3479_v1  ;;  %vm602_vm6 = vcmp.eq.s32.totalorder %v3767_v46, %v4454_v4 }
 0x123   : > { %v967_v21 = vadd.s32 %v4531_v20, %v727_v10  ;;  %v968_v31 = vadd.s32 %v4534_v49, %v728_v28  ;;  %v1243_v20 = vadd.s32 %v1179_v16, %v1003_v36  ;;  %v1305_v55 = vcvt.s32.f32 %v1241_v5 }
 0x124   : > { %v1306_v13 = vcvt.s32.f32 %v1242_v34  ;;  %v725_v42 = vadd.s32 %v661_v22, %v485_v63  ;;  %v4719_v34 = vsel %vm838_vm1, 1, %v3479_v1 }
 0x125   : > { %v4652_v59 = vadd.s32 %v1143_v39, %v967_v21  ;;  %v4654_v56 = vadd.s32 %v1144_v3, %v968_v31  ;;  %v1307_v25 = vcvt.s32.f32 %v1243_v20  ;;  %v665_v39 = vsel %vm601_vm10, 1, %v3479_v1 }
 0x126   : > { %v489_v3 = vsel %vm425_vm8, 1, %v3479_v1  ;;  %v965_v16 = vadd.s32 %v901_v30, %v725_v42  ;;  %vm465_vm8 = vcmp.eq.s32.totalorder %v3754_v43, %v4665_v11  ;;  %vm466_vm10 = vcmp.eq.s32.totalorder %v3767_v46, %v4665_v11 }
 0x127   : > { %v4650_v58 = vpop.permute.xlu1 %1052  ;;  %v729_v5 = vadd.s32 %v665_v39, %v489_v3  ;;  %v1059_v3 = vpop.permute.xlu0 %1058 }
 0x128   : > { %vm1109_vm3 = vcmp.eq.s32.totalorder %v3754_v43, %v4650_v58  ;;  %vm1110_vm7 = vcmp.eq.s32.totalorder %v3767_v46, %v4650_v58  ;;  %vm1111_vm4 = vcmp.eq.s32.totalorder %v3770_v47, %v4650_v58  ;;  %vm1112_vm13 = vcmp.eq.s32.totalorder %v3763_v45, %v4650_v58 }
 0x129   : > { %v1173_v49 = vsel %vm1109_vm3, 1, %v3479_v1  ;;  %v1174_v26 = vsel %vm1110_vm7, 1, %v3479_v1  ;;  %v1175_v35 = vsel %vm1111_vm4, 1, %v3479_v1  ;;  %vm422_vm3 = vcmp.eq.s32.totalorder %v3767_v46, %v4431_v57 }
 0x12a   : > { %v1237_v48 = vadd.s32 %v1173_v49, %v997_v6  ;;  %v1238_v7 = vadd.s32 %v1174_v26, %v998_v15  ;;  %v1239_v8 = vadd.s32 %v1175_v35, %v999_v50  ;;  %v1141_v50 = vsel %vm1077_vm11, 1, %v3479_v1 }
 0x12b   : > { %vm426_vm7 = vcmp.eq.s32.totalorder %v3767_v46, %v4436_v18  ;;  %v1205_v20 = vadd.s32 %v1141_v50, %v965_v16  ;;  %v1176_v57 = vsel %vm1112_vm13, 1, %v3479_v1  ;;  %v486_v18 = vsel %vm422_vm3, 1, %v3479_v1 }
 0x12c   : > { %v1301_v52 = vcvt.s32.f32 %v1237_v48  ;;  %v1302_v62 = vcvt.s32.f32 %v1238_v7  ;;  %v1303_v37 = vcvt.s32.f32 %v1239_v8  ;;  %v4671_v29 = vpop.permute.xlu2 %581  ;;  %v490_v4 = vsel %vm426_vm7, 1, %v3479_v1 }
 0x12d   : > { %vm644_vm5 = vcmp.eq.s32.totalorder %v3763_v45, %v4671_v29  ;;  %v666_v35 = vsel %vm602_vm6, 1, %v3479_v1  ;;  %vm467_vm11 = vcmp.eq.s32.totalorder %v3770_v47, %v4665_v11  ;;  %vm641_vm1 = vcmp.eq.s32.totalorder %v3754_v43, %v4671_v29 }
 0x12e   : > { %v1345_v10 = vpack.c.bf16 %v1305_v55, %v1301_v52  ;;  %v1346_v28 = vpack.c.bf16 %v1306_v13, %v1302_v62  ;;  %v1347_v51 = vpack.c.bf16 %v1307_v25, %v1303_v37  ;;  %v708_v24 = vsel %vm644_vm5, 1, %v3479_v1 }
 0x12f   : > { %v772_v36 = vadd.s32 %v708_v24, %v532_v44  ;;  %vm598_vm5 = vcmp.eq.s32.totalorder %v3767_v46, %v4595_v19  ;;  %v1240_v55 = vadd.s32 %v1176_v57, %v4505_v41  ;;  %v1269_v13 = vcvt.s32.f32 %v1205_v20  ;;  %v3042_v44 = vld [vmem:[%s5555_s1 + $0xd0] sm:$0xff] }
 0x130   : > { %1646 = vmatmul.bf16.gmra.mxu3 %v1345_v10  ;;  %1695 = vmatmul.bf16.gmra.mxu1 %v1346_v28  ;;  %v4686_v9 = vpop.permute.xlu1 %791  ;;  %v662_v19 = vsel %vm598_vm5, 1, %v3479_v1  ;;  %vm642_vm13 = vcmp.eq.s32.totalorder %v3767_v46, %v4671_v29  ;;  %v4776_v22 = vadd.s32 %v666_v35, %v490_v4  ;;  %vm643_vm3 = vcmp.eq.s32.totalorder %v3770_v47, %v4671_v29 }
 0x131   : > { %1744 = vmatmul.bf16.gmra.mxu2 %v1347_v51  ;;  %vm843_vm12 = vcmp.eq.s32.totalorder %v3770_v47, %v4686_v9  ;;  %vm844_vm15 = vcmp.eq.s32.totalorder %v3763_v45, %v4686_v9  ;;  %vm841_vm0 = vcmp.eq.s32.totalorder %v3754_v43, %v4686_v9  ;;  %v529_v10 = vsel %vm465_vm8, 1, %v3479_v1  ;;  %1765 = vmatpush.bf16.msrb.mxu3 %v3042_v44  ;;  %v3041_v44 = vld [vmem:[%s5555_s1 + $0xc8] sm:$0xff] }
 0x132   : > { %v907_v14 = vsel %vm843_vm12, 1, %v3479_v1  ;;  %v908_v0 = vsel %vm844_vm15, 1, %v3479_v1  ;;  %v905_v6 = vsel %vm841_vm0, 1, %v3479_v1  ;;  %vm461_vm12 = vcmp.eq.s32.totalorder %v3754_v43, %v4620_v33 }
 0x133   : > { %v971_v21 = vadd.s32 %v907_v14, %v4477_v27  ;;  %v972_v31 = vadd.s32 %v908_v0, %v4479_v2  ;;  %v969_v58 = vadd.s32 %v905_v6, %v729_v5  ;;  %vm462_vm15 = vcmp.eq.s32.totalorder %v3767_v46, %v4620_v33 }
 0x134   : > { %vm463_vm0 = vcmp.eq.s32.totalorder %v3770_v47, %v4620_v33  ;;  %v530_v28 = vsel %vm466_vm10, 1, %v3479_v1  ;;  %v4788_v51 = vadd.s32 %v662_v19, %v486_v18  ;;  %vm464_vm7 = vcmp.eq.s32.totalorder %v3763_v45, %v4620_v33 }
 0x135   : > { %v4713_v15 = vpop.permute.xlu2 %821  ;;  %v525_v38 = vsel %vm461_vm12, 1, %v3479_v1  ;;  %v531_v63 = vsel %vm467_vm11, 1, %v3479_v1  ;;  %v526_v11 = vsel %vm462_vm15, 1, %v3479_v1  ;;  %v527_v42 = vsel %vm463_vm0, 1, %v3479_v1  ;;  %1766 = vmatpush.bf16.msrb.mxu3 %v3041_v44 }
 0x136   : > { %vm884_vm4 = vcmp.eq.s32.totalorder %v3763_v45, %v4713_v15  ;;  %v705_v30 = vsel %vm641_vm1, 1, %v3479_v1  ;;  %v706_v14 = vsel %vm642_vm13, 1, %v3479_v1  ;;  %v707_v0 = vsel %vm643_vm3, 1, %v3479_v1 }
 0x137   : > { %v948_v2 = vsel %vm884_vm4, 1, %v3479_v1  ;;  %vm842_vm4 = vcmp.eq.s32.totalorder %v3767_v46, %v4686_v9  ;;  %v1304_v33 = vcvt.s32.f32 %v1240_v55  ;;  %v1271_v29 = vcvt.s32.f32 %v4652_v59 }
 0x138   : > { %v4744_v49 = vadd.s32 %v948_v2, %v772_v36  ;;  %v528_v36 = vsel %vm464_vm7, 1, %v3479_v1  ;;  %v769_v16 = vadd.s32 %v705_v30, %v529_v10  ;;  %v1272_v9 = vcvt.s32.f32 %v4654_v56 }
 0x139   : > { %v4732_v27 = vpop.permute.xlu1 %1031  ;;  %v906_v6 = vsel %vm842_vm4, 1, %v3479_v1  ;;  %v770_v50 = vadd.s32 %v706_v14, %v530_v28  ;;  %v771_v5 = vadd.s32 %v707_v0, %v531_v63  ;;  %vm1117_vm5 = vcmp.eq.s32.totalorder %v3754_v43, %v1059_v3 }
 0x13a   : > { %vm1081_vm9 = vcmp.eq.s32.totalorder %v3754_v43, %v4732_v27  ;;  %vm1083_vm14 = vcmp.eq.s32.totalorder %v3770_v47, %v4732_v27  ;;  %vm1084_vm2 = vcmp.eq.s32.totalorder %v3763_v45, %v4732_v27  ;;  %vm1118_vm8 = vcmp.eq.s32.totalorder %v3767_v46, %v1059_v3 }
 0x13b   : > { %v1145_v26 = vsel %vm1081_vm9, 1, %v3479_v1  ;;  %v1147_v7 = vsel %vm1083_vm14, 1, %v3479_v1  ;;  %v1148_v8 = vsel %vm1084_vm2, 1, %v3479_v1  ;;  %vm1119_vm10 = vcmp.eq.s32.totalorder %v3770_v47, %v1059_v3 }
 0x13c   : > { %v1209_v48 = vadd.s32 %v1145_v26, %v969_v58  ;;  %v4757_v62 = vadd.s32 %v1147_v7, %v971_v21  ;;  %v4759_v37 = vadd.s32 %v1148_v8, %v972_v31  ;;  %v1308_v31 = vcvt.s32.f32 %v4648_v32 }
 0x13d   : > { %vm1120_vm12 = vcmp.eq.s32.totalorder %v3763_v45, %v1059_v3  ;;  %vm881_vm11 = vcmp.eq.s32.totalorder %v3754_v43, %v4713_v15  ;;  %vm882_vm4 = vcmp.eq.s32.totalorder %v3767_v46, %v4713_v15  ;;  %v1181_v63 = vsel %vm1117_vm5, 1, %v3479_v1 }
 0x13e   : > { %v1273_v52 = vcvt.s32.f32 %v1209_v48  ;;  %v4768_v25 = vpop.permute.xlu2 %408  ;;  %v4831_v59 = vpack.c.bf16 %v1308_v31, %v1304_v33  ;;  %v1275_v18 = vcvt.s32.f32 %v4757_v62  ;;  %v1276_v4 = vcvt.s32.f32 %v4759_v37 }
 0x13f   : > { %vm472_vm9 = vcmp.eq.s32.totalorder %v3763_v45, %v4768_v25  ;;  %v945_v19 = vsel %vm881_vm11, 1, %v3479_v1  ;;  %v946_v28 = vsel %vm882_vm4, 1, %v3479_v1  ;;  %v1184_v30 = vsel %vm1120_vm12, 1, %v3479_v1 }
 0x140   : > { %v1329_v41 = vpack.c.bf16 %v1273_v52, %v1269_v13  ;;  %v536_v17 = vsel %vm472_vm9, 1, %v3479_v1  ;;  %v4861_v62 = vpack.c.bf16 %v1275_v18, %v1271_v29  ;;  %v4863_v37 = vpack.c.bf16 %v1276_v4, %v1272_v9 }
 0x141   : > { %vm1082_vm9 = vcmp.eq.s32.totalorder %v3767_v46, %v4732_v27  ;;  %v1183_v14 = vsel %vm1119_vm10, 1, %v3479_v1  ;;  %v970_v0 = vadd.s32 %v906_v6, %v4776_v22  ;;  %vm469_vm10 = vcmp.eq.s32.totalorder %v3754_v43, %v4768_v25 }
 0x142   : > { %1626 = vmatmul.bf16.gmra.mxu0 %v1329_v41  ;;  %v579_v24 = vpop.permute.xlu1 %578  ;;  %vm471_vm11 = vcmp.eq.s32.totalorder %v3770_v47, %v4768_v25 }
 0x143   : > { %vm640_vm6 = vcmp.eq.s32.totalorder %v3763_v45, %v579_v24  ;;  %vm637_vm14 = vcmp.eq.s32.totalorder %v3754_v43, %v579_v24  ;;  %vm638_vm2 = vcmp.eq.s32.totalorder %v3767_v46, %v579_v24  ;;  %vm639_vm0 = vcmp.eq.s32.totalorder %v3770_v47, %v579_v24 }
 0x144   : > { %v704_v39 = vsel %vm640_vm6, 1, %v3479_v1  ;;  %v701_v32 = vsel %vm637_vm14, 1, %v3479_v1  ;;  %v702_v58 = vsel %vm638_vm2, 1, %v3479_v1  ;;  %v703_v26 = vsel %vm639_vm0, 1, %v3479_v1 }
 0x145   : > { %v768_v21 = vadd.s32 %v704_v39, %v528_v36  ;;  %vm883_vm6 = vcmp.eq.s32.totalorder %v3770_v47, %v4713_v15  ;;  %v765_v7 = vadd.s32 %v701_v32, %v525_v38  ;;  %v766_v13 = vadd.s32 %v702_v58, %v526_v11 }
 0x146   : > { %v767_v41 = vadd.s32 %v703_v26, %v527_v42  ;;  %v947_v38 = vsel %vm883_vm6, 1, %v3479_v1  ;;  %vm1078_vm14 = vcmp.eq.s32.totalorder %v3767_v46, %v4582_v61  ;;  %v1182_v15 = vsel %vm1118_vm8, 1, %v3479_v1 }
 0x147   : > { %v4829_v2 = vpop.permute.xlu2 %584  ;;  %v966_v42 = vadd.s32 %v4719_v34, %v4788_v51  ;;  %v1009_v36 = vadd.s32 %v945_v19, %v769_v16  ;;  %v1010_v34 = vadd.s32 %v946_v28, %v770_v50  ;;  %v1011_v51 = vadd.s32 %v947_v38, %v771_v5 }
 0x148   : > { %vm648_vm15 = vcmp.eq.s32.totalorder %v3763_v45, %v4829_v2  ;;  %v1142_v6 = vsel %vm1078_vm14, 1, %v3479_v1  ;;  %vm645_vm14 = vcmp.eq.s32.totalorder %v3754_v43, %v4829_v2 }
 0x149   : > { %v712_v56 = vsel %vm648_vm15, 1, %v3479_v1  ;;  %vm470_vm15 = vcmp.eq.s32.totalorder %v3767_v46, %v4768_v25  ;;  %v535_v25 = vsel %vm471_vm11, 1, %v3479_v1 }
 0x14a   : > { %v4844_v57 = vadd.s32 %v712_v56, %v536_v17  ;;  %v588_v17 = vpop.permute.xlu0 %587 }
 0x14b   : > { %v819_v20 = vpop.permute.xlu1 %818  ;;  %vm649_vm0 = vcmp.eq.s32.totalorder %v3754_v43, %v588_v17 }
 0x14c   : > { %vm877_vm1 = vcmp.eq.s32.totalorder %v3754_v43, %v819_v20  ;;  %vm878_vm13 = vcmp.eq.s32.totalorder %v3767_v46, %v819_v20  ;;  %vm879_vm3 = vcmp.eq.s32.totalorder %v3770_v47, %v819_v20  ;;  %vm880_vm7 = vcmp.eq.s32.totalorder %v3763_v45, %v819_v20  ;;  %v3040_v20 = vld [vmem:[%s5555_s1 + $0xc0] sm:$0xff] }
 0x14d   : > { %v941_v35 = vsel %vm877_vm1, 1, %v3479_v1  ;;  %v944_v48 = vsel %vm880_vm7, 1, %v3479_v1  ;;  %v942_v8 = vsel %vm878_vm13, 1, %v3479_v1  ;;  %v943_v52 = vsel %vm879_vm3, 1, %v3479_v1  ;;  %1767 = vmatpush.bf16.msrb.mxu3 %v3040_v20 }
 0x14e   : > { %v1008_v55 = vadd.s32 %v944_v48, %v768_v21  ;;  %v1005_v10 = vadd.s32 %v941_v35, %v765_v7  ;;  %v1006_v24 = vadd.s32 %v942_v8, %v766_v13  ;;  %v1007_v11 = vadd.s32 %v943_v52, %v767_v41 }
 0x14f   : > { %v1206_v35 = vadd.s32 %v1142_v6, %v966_v42  ;;  %vm650_vm1 = vcmp.eq.s32.totalorder %v3767_v46, %v588_v17  ;;  %vm651_vm13 = vcmp.eq.s32.totalorder %v3770_v47, %v588_v17  ;;  %v4925_v52 = vsel %vm469_vm10, 1, %v3479_v1 }
 0x150   : > { %v1245_v39 = vadd.s32 %v1181_v63, %v1005_v10  ;;  %v1246_v3 = vadd.s32 %v1182_v15, %v1006_v24  ;;  %v1247_v21 = vadd.s32 %v1183_v14, %v1007_v11  ;;  %v1248_v18 = vadd.s32 %v1184_v30, %v1008_v55  ;;  %v828_v61 = vpop.permute.xlu2 %827 }
 0x151   : > { %v1270_v41 = vcvt.s32.f32 %v1206_v35  ;;  %v534_v10 = vsel %vm470_vm15, 1, %v3479_v1  ;;  %vm652_vm3 = vcmp.eq.s32.totalorder %v3763_v45, %v588_v17  ;;  %v713_v28 = vsel %vm649_vm0, 1, %v3479_v1 }
 0x152   : > { %1670 = vmatmul.bf16.vlgmr.msrb.gmra.mxu0 %v4483_v53  ;;  %v1146_v53 = vsel %vm1082_vm9, 1, %v3479_v1  ;;  %v1309_v50 = vcvt.s32.f32 %v1245_v39  ;;  %v1310_v56 = vcvt.s32.f32 %v1246_v3  ;;  %v1311_v4 = vcvt.s32.f32 %v1247_v21 }
 0x153   : > { %v1210_v27 = vadd.s32 %v1146_v53, %v970_v0  ;;  %v714_v38 = vsel %vm650_vm1, 1, %v3479_v1  ;;  %v715_v63 = vsel %vm651_vm13, 1, %v3479_v1  ;;  %v716_v15 = vsel %vm652_vm3, 1, %v3479_v1 }
 0x154   : > { %v1062_v33 = vpop.permute.xlu1 %1061  ;;  %v1312_v42 = vcvt.s32.f32 %v1248_v18  ;;  %vm646_vm10 = vcmp.eq.s32.totalorder %v3767_v46, %v4829_v2  ;;  %v709_v53 = vsel %vm645_vm14, 1, %v3479_v1  ;;  %vm892_vm15 = vcmp.eq.s32.totalorder %v3763_v45, %v828_v61 }
 0x155   : > { %vm1121_vm2 = vcmp.eq.s32.totalorder %v3754_v43, %v1062_v33  ;;  %vm1122_vm5 = vcmp.eq.s32.totalorder %v3767_v46, %v1062_v33  ;;  %vm1123_vm8 = vcmp.eq.s32.totalorder %v3770_v47, %v1062_v33  ;;  %v1274_v48 = vcvt.s32.f32 %v1210_v27 }
 0x156   : > { %v1185_v22 = vsel %vm1121_vm2, 1, %v3479_v1  ;;  %v1186_v29 = vsel %vm1122_vm5, 1, %v3479_v1  ;;  %v1187_v16 = vsel %vm1123_vm8, 1, %v3479_v1  ;;  %vm1124_vm12 = vcmp.eq.s32.totalorder %v3763_v45, %v1062_v33 }
 0x157   : > { %v1249_v9 = vadd.s32 %v1185_v22, %v1009_v36  ;;  %v1250_v31 = vadd.s32 %v1186_v29, %v1010_v34  ;;  %v1251_v5 = vadd.s32 %v1187_v16, %v1011_v51  ;;  %v1188_v19 = vsel %vm1124_vm12, 1, %v3479_v1 }
 0x158   : > { %v1330_v24 = vpack.c.bf16 %v1274_v48, %v1270_v41  ;;  %v1252_v44 = vadd.s32 %v1188_v19, %v4744_v49  ;;  %vm889_vm2 = vcmp.eq.s32.totalorder %v3754_v43, %v828_v61  ;;  %vm890_vm5 = vcmp.eq.s32.totalorder %v3767_v46, %v828_v61 }
 0x159   : > { %v1313_v32 = vcvt.s32.f32 %v1249_v9  ;;  %v1314_v58 = vcvt.s32.f32 %v1250_v31  ;;  %v1315_v26 = vcvt.s32.f32 %v1251_v5  ;;  %vm891_vm8 = vcmp.eq.s32.totalorder %v3770_v47, %v828_v61  ;;  %v1068_v33 = vpop.permute.xlu2 %1067 }
 0x15a   : > { %v1316_v30 = vcvt.s32.f32 %v1252_v44  ;;  %vm647_vm12 = vcmp.eq.s32.totalorder %v3770_v47, %v4829_v2  ;;  %v953_v39 = vsel %vm889_vm2, 1, %v3479_v1  ;;  %v954_v34 = vsel %vm890_vm5, 1, %v3479_v1 }
 0x15b   : > { %v1349_v7 = vpack.c.bf16 %v1313_v32, %v1309_v50  ;;  %v1350_v8 = vpack.c.bf16 %v1314_v58, %v1310_v56  ;;  %v1351_v55 = vpack.c.bf16 %v1315_v26, %v1311_v4  ;;  %v955_v51 = vsel %vm891_vm8, 1, %v3479_v1 }
 0x15c   : > { %v4955_v36 = vpack.c.bf16 %v1316_v30, %v1312_v42  ;;  %v956_v9 = vsel %vm892_vm15, 1, %v3479_v1  ;;  %vm1129_vm0 = vcmp.eq.s32.totalorder %v3754_v43, %v1068_v33  ;;  %vm1130_vm1 = vcmp.eq.s32.totalorder %v3767_v46, %v1068_v33 }
 0x15d   : > { %1651 = vmatmul.bf16.gmra.mxu3 %v1349_v7  ;;  %1700 = vmatmul.bf16.gmra.mxu1 %v1350_v8  ;;  %v412_v13 = vpop.permute.xlu1 %411  ;;  %vm1131_vm13 = vcmp.eq.s32.totalorder %v3770_v47, %v1068_v33  ;;  %v710_v6 = vsel %vm646_vm10, 1, %v3479_v1  ;;  %v711_v50 = vsel %vm647_vm12, 1, %v3479_v1  ;;  %v1193_v17 = vsel %vm1129_vm0, 1, %v3479_v1 }
 0x15e   : > { %1749 = vmatmul.bf16.gmra.mxu2 %v1351_v55  ;;  %vm473_vm7 = vcmp.eq.s32.totalorder %v3754_v43, %v412_v13  ;;  %vm474_vm4 = vcmp.eq.s32.totalorder %v3767_v46, %v412_v13  ;;  %vm475_vm6 = vcmp.eq.s32.totalorder %v3770_v47, %v412_v13  ;;  %vm476_vm9 = vcmp.eq.s32.totalorder %v3763_v45, %v412_v13 }
 0x15f   : > { %v537_v11 = vsel %vm473_vm7, 1, %v3479_v1  ;;  %v538_v49 = vsel %vm474_vm4, 1, %v3479_v1  ;;  %v539_v14 = vsel %vm475_vm6, 1, %v3479_v1  ;;  %v540_v0 = vsel %vm476_vm9, 1, %v3479_v1 }
 0x160   : > { %v777_v3 = vadd.s32 %v713_v28, %v537_v11  ;;  %v778_v29 = vadd.s32 %v714_v38, %v538_v49  ;;  %v779_v21 = vadd.s32 %v715_v63, %v539_v14  ;;  %v780_v27 = vadd.s32 %v716_v15, %v540_v0 }
 0x161   : > { %v1194_v18 = vsel %vm1130_vm1, 1, %v3479_v1  ;;  %v1195_v4 = vsel %vm1131_vm13, 1, %v3479_v1  ;;  %v773_v2 = vadd.s32 %v709_v53, %v4925_v52  ;;  %v774_v26 = vadd.s32 %v710_v6, %v534_v10 }
 0x162   : > { %1675 = vmatmul.bf16.gmra.mxu0 %v1330_v24  ;;  %v1017_v5 = vadd.s32 %v953_v39, %v777_v3  ;;  %v1018_v32 = vadd.s32 %v954_v34, %v778_v29  ;;  %v1019_v56 = vadd.s32 %v955_v51, %v779_v21  ;;  %v1020_v58 = vadd.s32 %v956_v9, %v780_v27 }
 0x163   : > { %v775_v48 = vadd.s32 %v711_v50, %v535_v25  ;;  %vm1132_vm2 = vcmp.eq.s32.totalorder %v3763_v45, %v1068_v33 }
 0x164   : > { %v1257_v61 = vadd.s32 %v1193_v17, %v1017_v5  ;;  %v1258_v13 = vadd.s32 %v1194_v18, %v1018_v32  ;;  %v1259_v19 = vadd.s32 %v1195_v4, %v1019_v56  ;;  %v1196_v11 = vsel %vm1132_vm2, 1, %v3479_v1 }
 0x165   : > { %v1260_v14 = vadd.s32 %v1196_v11, %v1020_v58 }
 0x166   : > { %v825_v22 = vpop.permute.xlu1 %824  ;;  %v1321_v24 = vcvt.s32.f32 %v1257_v61 }
 0x167   : > { %vm888_vm11 = vcmp.eq.s32.totalorder %v3763_v45, %v825_v22  ;;  %vm885_vm3 = vcmp.eq.s32.totalorder %v3754_v43, %v825_v22  ;;  %vm886_vm7 = vcmp.eq.s32.totalorder %v3767_v46, %v825_v22  ;;  %vm887_vm4 = vcmp.eq.s32.totalorder %v3770_v47, %v825_v22 }
 0x168   : > { %v952_v31 = vsel %vm888_vm11, 1, %v3479_v1  ;;  %v950_v20 = vsel %vm886_vm7, 1, %v3479_v1  ;;  %v951_v35 = vsel %vm887_vm4, 1, %v3479_v1  ;;  %v1324_v33 = vcvt.s32.f32 %v1260_v14 }
 0x169   : > { %v1016_v16 = vadd.s32 %v952_v31, %v4844_v57  ;;  %v949_v57 = vsel %vm885_vm3, 1, %v3479_v1  ;;  %v1014_v55 = vadd.s32 %v950_v20, %v774_v26  ;;  %v1015_v41 = vadd.s32 %v951_v35, %v775_v48  ;;  %v1681_v26 = vpop.f32.mrf.mxu1 }
 0x16a   : > { %v1013_v8 = vadd.s32 %v949_v57, %v773_v2 }
 0x16f   : > { %v1065_v7 = vpop.permute.xlu1 %1064 }
 0x170   : > { %vm1125_vm6 = vcmp.eq.s32.totalorder %v3754_v43, %v1065_v7  ;;  %vm1126_vm9 = vcmp.eq.s32.totalorder %v3767_v46, %v1065_v7  ;;  %vm1127_vm14 = vcmp.eq.s32.totalorder %v3770_v47, %v1065_v7  ;;  %v1322_v43 = vcvt.s32.f32 %v1258_v13 }
 0x171   : > { %v1189_v28 = vsel %vm1125_vm6, 1, %v3479_v1  ;;  %v1190_v52 = vsel %vm1126_vm9, 1, %v3479_v1  ;;  %v1191_v10 = vsel %vm1127_vm14, 1, %v3479_v1  ;;  %v1323_v47 = vcvt.s32.f32 %v1259_v19  ;;  %v1683_v19 = vpop.f32.mrf.mxu1 }
 0x172   : > { %1719 = vmatmul.bf16.vlgmr.msra.gmra.mxu0 %v4485_v40  ;;  %v1253_v25 = vadd.s32 %v1189_v28, %v1013_v8  ;;  %v1254_v38 = vadd.s32 %v1190_v52, %v1014_v55  ;;  %v1255_v63 = vadd.s32 %v1191_v10, %v1015_v41  ;;  %vm1128_vm5 = vcmp.eq.s32.totalorder %v3763_v45, %v1065_v7  ;;  %v1632_v45 = vpop.f32.mrf.mxu3  ;;  %v1730_v7 = vpop.f32.mrf.mxu2 }
 0x173   : > { %v1192_v40 = vsel %vm1128_vm5, 1, %v3479_v1  ;;  %v1682_v52 = vadd.f32 %v1681_v26, %v1632_v45 }
 0x174   : > { %v1317_v44 = vcvt.s32.f32 %v1253_v25  ;;  %v1318_v46 = vcvt.s32.f32 %v1254_v38  ;;  %v1319_v15 = vcvt.s32.f32 %v1255_v63  ;;  %v1256_v0 = vadd.s32 %v1192_v40, %v1016_v16 }
 0x175   : > { %v1731_v25 = vadd.f32 %v1730_v7, %v1682_v52 }
 0x176   : > { %v1353_v42 = vpack.c.bf16 %v1321_v24, %v1317_v44  ;;  %v1354_v30 = vpack.c.bf16 %v1322_v43, %v1318_v46  ;;  %v1355_v49 = vpack.c.bf16 %v1323_v47, %v1319_v15  ;;  %v1320_v53 = vcvt.s32.f32 %v1256_v0 }
 0x178   : > { %1656 = vmatmul.bf16.gmra.mxu3 %v1353_v42  ;;  %1705 = vmatmul.bf16.gmra.mxu1 %v1354_v30  ;;  %v1356_v39 = vpack.c.bf16 %v1324_v33, %v1320_v53 }
 0x179   : > { %1754 = vmatmul.bf16.gmra.mxu2 %v1355_v49  ;;  %v1686_v38 = vpop.f32.mrf.mxu1 }
 0x17a   : > { %v5006_v34 = vpop.f32.mrf.mxu3  ;;  %v1732_v10 = vpop.f32.mrf.mxu2 }
 0x17b   : > { %v1684_v43 = vadd.f32 %v1683_v19, %v5006_v34 }
 0x17d   : > { %v1733_v46 = vadd.f32 %v1732_v10, %v1684_v43 }
 0x181   : > { %v1688_v11 = vpop.f32.mrf.mxu1 }
 0x182   : > { %1724 = vmatmul.bf16.gmra.mxu0 %v4861_v62  ;;  %v5008_v1 = vpop.f32.mrf.mxu3  ;;  %v1622_v51 = vpop.f32.mrf.mxu0 }
 0x183   : > { %v1735_v44 = vpop.f32.mrf.mxu2  ;;  %v1687_v42 = vadd.f32 %v1686_v38, %v5008_v1 }
 0x185   : > { %v1736_v49 = vadd.f32 %v1735_v44, %v1687_v42 }
 0x188   : > { %1768 = vmatmul.bf16.vlgmr.msrb.gmra.mxu3 %v4487_v60 }
 0x189   : > { %v1691_v0 = vpop.f32.mrf.mxu1 }
 0x18a   : > { %v5011_v3 = vpop.f32.mrf.mxu3  ;;  %v1624_v22 = vpop.f32.mrf.mxu0 }
 0x18b   : > { %v1737_v30 = vpop.f32.mrf.mxu2  ;;  %v1689_v53 = vadd.f32 %v1688_v11, %v5011_v3 }
 0x192   : > { %v5013_v29 = vpop.f32.mrf.mxu3 }
 0x193   : > { %v1740_v33 = vpop.f32.mrf.mxu2  ;;  %v1692_v1 = vadd.f32 %v1691_v0, %v5013_v29 }
 0x198   : > { %1773 = vmatmul.bf16.gmra.mxu3 %v4863_v37 }
 0x19a   : > { %v5016_v60 = vpop.f32.mrf.mxu3 }
 0x1a8   : > { %1778 = vmatmul.bf16.gmra.mxu3 %v4006_v12 }
 0x1b3   : > { %v5018_v12 = vpop.f32.mrf.mxu3 }
 0x1b8   : > { %1783 = vmatmul.bf16.gmra.mxu3 %v4378_v23 }
 0x1bb   : > { %v5021_v27 = vpop.f32.mrf.mxu3 }
 0x1bf   : > { %v1627_v62 = vpop.f32.mrf.mxu0 }
 0x1c7   : > { %v1629_v37 = vpop.f32.mrf.mxu0 }
 0x1c8   : > { %1788 = vmatmul.bf16.gmra.mxu3 %v4523_v54 }
 0x1cf   : > { %v1671_v21 = vpop.f32.mrf.mxu0 }
 0x1d7   : > { %v1673_v23 = vpop.f32.mrf.mxu0 }
 0x1d8   : > { %1793 = vmatmul.bf16.gmra.mxu3 %v4831_v59  ;;  %v1672_v59 = vadd.f32 %v1671_v21, %v1622_v51  ;;  %v1674_v58 = vadd.f32 %v1673_v23, %v1624_v22  ;;  %v1693_v51 = vpop.f32.mrf.mxu1  ;;  %v1741_v22 = vadd.f32 %v1740_v33, %v1692_v1 }
 0x1d9   : > { %v1694_v3 = vadd.f32 %v1693_v51, %v5016_v60 }
 0x1df   : > { %v1676_v31 = vpop.f32.mrf.mxu0 }
 0x1e0   : > { %v5024_v9 = vpop.f32.mrf.mxu3  ;;  %v1677_v2 = vadd.f32 %v1676_v31, %v1627_v62  ;;  %v1742_v62 = vpop.f32.mrf.mxu2 }
 0x1e1   : > { %v1696_v23 = vpop.f32.mrf.mxu1  ;;  %v1743_v31 = vadd.f32 %v1742_v62, %v1694_v3 }
 0x1e2   : > { %v1697_v29 = vadd.f32 %v1696_v23, %v5018_v12 }
 0x1e7   : > { %v1678_v54 = vpop.f32.mrf.mxu0 }
 0x1e8   : > { %1798 = vmatmul.bf16.gmra.mxu3 %v4955_v36  ;;  %v5026_v16 = vpop.f32.mrf.mxu3  ;;  %v1679_v55 = vadd.f32 %v1678_v54, %v1629_v37  ;;  %v1745_v54 = vpop.f32.mrf.mxu2 }
 0x1ef   : > { %v1720_v50 = vpop.f32.mrf.mxu0 }
 0x1f0   : > { %v1721_v17 = vadd.f32 %v1720_v50, %v1672_v59 }
 0x1f7   : > { %v1722_v36 = vpop.f32.mrf.mxu0 }
 0x1f8   : > { %1803 = vmatmul.bf16.gmra.mxu3 %v1356_v39  ;;  %v1723_v57 = vadd.f32 %v1722_v36, %v1674_v58  ;;  %v1738_v39 = vadd.f32 %v1737_v30, %v1689_v53  ;;  %v1746_v36 = vadd.f32 %v1745_v54, %v1697_v29 }
 0x1fb   : > { %v5028_v6 = vpop.f32.mrf.mxu3 }
 0x1ff   : > { %v1725_v4 = vpop.f32.mrf.mxu0 }
 0x200   : > { %v1726_v35 = vadd.f32 %v1725_v4, %v1677_v2 }
 0x203   : > { %v5030_v5 = vpop.f32.mrf.mxu3 }
 0x207   : > { %v1727_v8 = vpop.f32.mrf.mxu0 }
 0x208   : > { %v1728_v13 = vadd.f32 %v1727_v8, %v1679_v55 }
 0x20b   : > { %v1769_v32 = vpop.f32.mrf.mxu3 }
 0x20c   : > { %v5036_v56 = vadd.f32 %v1769_v32, %v1721_v17  ;;  %v1698_v17 = vpop.f32.mrf.mxu1 }
 0x20d   : > { %v1699_v60 = vadd.f32 %v1698_v17, %v5021_v27 }
 0x20e   : > { %1809 = vst [vmem:[%s5040_s19] sm:$0xff] %v5036_v56  ;;  %1827 = vadd.xlane.f32.xlu0 %v5036_v56 }
 0x213   : > { %v1771_v20 = vpop.f32.mrf.mxu3 }
 0x214   : > { %v5045_v18 = vadd.f32 %v1771_v20, %v1723_v57  ;;  %v1747_v57 = vpop.f32.mrf.mxu2  ;;  %v1701_v20 = vpop.f32.mrf.mxu1 }
 0x215   : > { %v1748_v4 = vadd.f32 %v1747_v57, %v1699_v60  ;;  %v1702_v12 = vadd.f32 %v1701_v20, %v5024_v9 }
 0x216   : > { %1810 = vst [vmem:[%s5040_s19 + $0x8] sm:$0xff] %v5045_v18  ;;  %1829 = vadd.xlane.f32.xlu1 %v5045_v18 }
 0x21b   : > { %v1774_v48 = vpop.f32.mrf.mxu3 }
 0x21c   : > { %v5050_v61 = vadd.f32 %v1774_v48, %v1726_v35  ;;  %v1750_v35 = vpop.f32.mrf.mxu2  ;;  %v3482_v48 = vmov 128.0   ;;  %v1703_v8 = vpop.f32.mrf.mxu1 }
 0x21d   : > { %3275 = vrcp.f32 %v3482_v48  ;;  %v1751_v7 = vadd.f32 %v1750_v35, %v1702_v12  ;;  %v1704_v19 = vadd.f32 %v1703_v8, %v5026_v16  ;;  %v2998_v12 = vld [vmem:[%s5542_s5 + $0x70] sm:$0xf]  ;;  %v3000_v8 = vld [vmem:[%s5542_s5 + $0x78] sm:$0xf0] }
 0x21e   : > { %1811 = vst [vmem:[%s5040_s19 + $0x10] sm:$0xff] %v5050_v61  ;;  %1831 = vadd.xlane.f32.xlu2 %v5050_v61 }
 0x223   : > { %v1776_v41 = vpop.f32.mrf.mxu3  ;;  %v3276_v27 = vpop.eup %3275 }
 0x224   : > { %v5055_v28 = vadd.f32 %v1776_v41, %v1728_v13  ;;  %v1752_v41 = vpop.f32.mrf.mxu2  ;;  %v1860_v52 = vmul.f32 128.0, %v3276_v27  ;;  %v1706_v9 = vpop.f32.mrf.mxu1  ;;  %vm1864_vm8 = vweird.f32 %v3276_v27 }
 0x225   : > { %v1753_v10 = vadd.f32 %v1752_v41, %v1704_v19  ;;  %v1707_v43 = vadd.f32 %v1706_v9, %v5028_v6  ;;  %v2990_v19 = vld [vmem:[%s5542_s5 + $0x60] sm:$0xf]  ;;  %v3069_v41 = vld [vmem:[%s5542_s5 + $0x64] sm:$0xf0]  ;;  %v3068_v9 = vld [vmem:[%s5542_s5 + $0x64] sm:$0xf] }
 0x226   : > { %1812 = vst [vmem:[%s5040_s19 + $0x18] sm:$0xff] %v5055_v28  ;;  %1833 = vadd.xlane.f32.xlu2 %v5055_v28  ;;  %v1861_v38 = vsub.f32 1.0, %v1860_v52 }
 0x22b   : > { %v1779_v63 = vpop.f32.mrf.mxu3 }
 0x22c   : > { %v5060_v24 = vadd.f32 %v1779_v63, %v1731_v25  ;;  %v1755_v44 = vpop.f32.mrf.mxu2  ;;  %v1708_v30 = vpop.f32.mrf.mxu1 }
 0x22e   : > { %1813 = vst [vmem:[%s5040_s19 + $0x20] sm:$0xff] %v5060_v24  ;;  %1835 = vadd.xlane.f32.xlu0 %v5060_v24 }
 0x233   : > { %v1781_v15 = vpop.f32.mrf.mxu3 }
 0x234   : > { %v5066_v47 = vadd.f32 %v1781_v15, %v1733_v46  ;;  %v1862_v46 = vmul.f32 %v3276_v27, %v1861_v38  ;;  %v1756_v15 = vadd.f32 %v1755_v44, %v1707_v43  ;;  %v1757_v0 = vpop.f32.mrf.mxu2  ;;  %v3053_v38 = vld [vmem:[#allocation2 + $0x28] sm:$0xff] }
 0x236   : > { %1814 = vst [vmem:[%s5040_s19 + $0x28] sm:$0xff] %v5066_v47  ;;  %1837 = vadd.xlane.f32.xlu1 %v5066_v47  ;;  %v1863_v11 = vadd.f32 %v3276_v27, %v1862_v46  ;;  %v2982_v46 = vld [vmem:[%s5542_s5 + $0x50] sm:$0xf] }
 0x23b   : > { %v1784_v40 = vpop.f32.mrf.mxu3 }
 0x23c   : > { %v5072_v14 = vadd.f32 %v1784_v40, %v1736_v49  ;;  %v1709_v49 = vadd.f32 %v1708_v30, %v5030_v5  ;;  %v5118_v40 = vsel %vm1864_vm8, %v3276_v27, %v1863_v11  ;;  %v3054_v27 = vld [vmem:[#allocation2 + $0x30] sm:$0xff]  ;;  %v2984_v30 = vld [vmem:[%s5542_s5 + $0x58] sm:$0xf0] }
 0x23e   : > { %1815 = vst [vmem:[%s5040_s19 + $0x30] sm:$0xff] %v5072_v14  ;;  %1839 = vadd.xlane.f32.xlu1 %v5072_v14  ;;  %v1758_v53 = vadd.f32 %v1757_v0, %v1709_v49 }
 0x243   : > { %v1786_v45 = vpop.f32.mrf.mxu3 }
 0x244   : > { %v5078_v34 = vadd.f32 %v1786_v45, %v1738_v39 }
 0x246   : > { %1816 = vst [vmem:[%s5040_s19 + $0x38] sm:$0xff] %v5078_v34 }
 0x24b   : > { %v1789_v37 = vpop.f32.mrf.mxu3 }
 0x24c   : > { %v5083_v21 = vadd.f32 %v1789_v37, %v1741_v22 }
 0x24e   : > { %1817 = vst [vmem:[%s5040_s19 + $0x40] sm:$0xff] %v5083_v21 }
 0x253   : > { %v1791_v50 = vpop.f32.mrf.mxu3 }
 0x254   : > { %v5088_v59 = vadd.f32 %v1791_v50, %v1743_v31 }
 0x256   : > { %1818 = vst [vmem:[%s5040_s19 + $0x48] sm:$0xff] %v5088_v59 }
 0x25b   : > { %v1794_v32 = vpop.f32.mrf.mxu3 }
 0x25c   : > { %v5093_v58 = vadd.f32 %v1794_v32, %v1746_v36 }
 0x25e   : > { %1819 = vst [vmem:[%s5040_s19 + $0x50] sm:$0xff] %v5093_v58 }
 0x263   : > { %v1796_v2 = vpop.f32.mrf.mxu3 }
 0x264   : > { %v5098_v26 = vadd.f32 %v1796_v2, %v1748_v4 }
 0x266   : > { %1820 = vst [vmem:[%s5040_s19 + $0x58] sm:$0xff] %v5098_v26 }
 0x26b   : > { %v1799_v55 = vpop.f32.mrf.mxu3 }
 0x26c   : > { %v5103_v13 = vadd.f32 %v1799_v55, %v1751_v7  ;;  %v3070_v7 = vld [vmem:[%s5542_s5 + $0x74] sm:$0xf] }
 0x26d   : > { %v3003_v55 = vor.u32 %v3070_v7, %v3000_v8 }
 0x26e   : > { %1821 = vst [vmem:[%s5040_s19 + $0x60] sm:$0xff] %v5103_v13 }
 0x26f   : > { %2490 = vmatpush.bf16.msrb.mxu2 %v3003_v55 }
 0x273   : > { %v1801_v25 = vpop.f32.mrf.mxu3 }
 0x274   : > { %v5108_v63 = vadd.f32 %v1801_v25, %v1753_v10  ;;  %v2991_v10 = vor.u32 %v3069_v41, %v2990_v19  ;;  %v2992_v25 = vld [vmem:[%s5542_s5 + $0x68] sm:$0xf0] }
 0x275   : > { %v2995_v44 = vor.u32 %v3068_v9, %v2992_v25  ;;  %v2960_v19 = vld [vmem:[%s5542_s5 + $0x28] sm:$0xf0]  ;;  %v2950_v25 = vld [vmem:[%s5542_s5 + $0x10] sm:$0xf] }
 0x276   : > { %1822 = vst [vmem:[%s5040_s19 + $0x68] sm:$0xff] %v5108_v63  ;;  %v3049_v41 = vld [vmem:[#allocation2 + $0x8] sm:$0xff] }
 0x277   : > { %2491 = vmatpush.bf16.msrb.mxu2 %v2995_v44 }
 0x27b   : > { %v1804_v16 = vpop.f32.mrf.mxu3 }
 0x27c   : > { %v5113_v42 = vadd.f32 %v1804_v16, %v1756_v15  ;;  %v3067_v15 = vld [vmem:[%s5542_s5 + $0x54] sm:$0xf0]  ;;  %v3066_v16 = vld [vmem:[%s5542_s5 + $0x54] sm:$0xf] }
 0x27d   : > { %v2983_v11 = vor.u32 %v3067_v15, %v2982_v46  ;;  %v2987_v0 = vor.u32 %v3066_v16, %v2984_v30  ;;  %v2952_v15 = vld [vmem:[%s5542_s5 + $0x18] sm:$0xf0] }
 0x27e   : > { %1823 = vst [vmem:[%s5040_s19 + $0x70] sm:$0xff] %v5113_v42 }
 0x27f   : > { %2492 = vmatpush.bf16.msrb.mxu2 %v2987_v0 }
 0x281   : > { %v1828_v6 = vpop.xlane.xlu0 %1827 }
 0x282   : > { %v1866_v33 = vmul.f32 %v5118_v40, %v1828_v6  ;;  %v3052_v6 = vld [vmem:[#allocation2 + $0x20] sm:$0xff] }
 0x283   : > { %v1806_v39 = vpop.f32.mrf.mxu3 }
 0x284   : > { %v5122_v45 = vsub.f32 %v5036_v56, %v1866_v33  ;;  %v5124_v1 = vadd.f32 %v1806_v39, %v1758_v53  ;;  %v2974_v53 = vld [vmem:[%s5542_s5 + $0x40] sm:$0xf]  ;;  %v3065_v33 = vld [vmem:[%s5542_s5 + $0x44] sm:$0xf0] }
 0x286   : > { %1824 = vst [vmem:[%s5040_s19 + $0x78] sm:$0xff] %v5124_v1  ;;  %v1898_v5 = vmul.f32 %v5122_v45, %v5122_v45 }
 0x288   : > { %1914 = vadd.xlane.f32.xlu2 %v1898_v5 }
 0x289   : > { %v1830_v51 = vpop.xlane.xlu1 %1829 }
 0x28a   : > { %v1867_v22 = vmul.f32 %v5118_v40, %v1830_v51  ;;  %v2975_v51 = vor.u32 %v3065_v33, %v2974_v53 }
 0x28c   : > { %v5132_v62 = vsub.f32 %v5045_v18, %v1867_v22  ;;  %v3064_v22 = vld [vmem:[%s5542_s5 + $0x44] sm:$0xf] }
 0x28e   : > { %v1899_v37 = vmul.f32 %v5132_v62, %v5132_v62 }
 0x290   : > { %1916 = vadd.xlane.f32.xlu0 %v1899_v37  ;;  %1841 = vadd.xlane.f32.xlu2 %v5078_v34  ;;  %v2976_v37 = vld [vmem:[%s5542_s5 + $0x48] sm:$0xf0] }
 0x291   : > { %v1832_v56 = vpop.xlane.xlu2 %1831 }
 0x292   : > { %v1868_v3 = vmul.f32 %v5118_v40, %v1832_v56  ;;  %v3051_v56 = vld [vmem:[#allocation2 + $0x18] sm:$0xff] }
 0x294   : > { %v5139_v23 = vsub.f32 %v5050_v61, %v1868_v3 }
 0x296   : > { %v1900_v31 = vmul.f32 %v5139_v23, %v5139_v23 }
 0x298   : > { %1918 = vadd.xlane.f32.xlu0 %v1900_v31  ;;  %1843 = vadd.xlane.f32.xlu2 %v5083_v21 }
 0x299   : > { %v1834_v18 = vpop.xlane.xlu2 %1833 }
 0x29a   : > { %v1869_v54 = vmul.f32 %v5118_v40, %v1834_v18  ;;  %v2979_v18 = vor.u32 %v3064_v22, %v2976_v37 }
 0x29c   : > { %v5146_v50 = vsub.f32 %v5055_v28, %v1869_v54  ;;  %v2966_v54 = vld [vmem:[%s5542_s5 + $0x30] sm:$0xf]  ;;  %2493 = vmatpush.bf16.msrb.mxu2 %v2979_v18  ;;  %v3056_v18 = vld [vmem:[%s5542_s5 + $0x4] sm:$0xf] }
 0x29e   : > { %v1901_v29 = vmul.f32 %v5146_v50, %v5146_v50 }
 0x2a0   : > { %1920 = vadd.xlane.f32.xlu1 %v1901_v29  ;;  %1845 = vadd.xlane.f32.xlu0 %v5088_v59  ;;  %v3063_v29 = vld [vmem:[%s5542_s5 + $0x34] sm:$0xf0] }
 0x2a1   : > { %v1836_v61 = vpop.xlane.xlu0 %1835 }
 0x2a2   : > { %v1870_v17 = vmul.f32 %v5118_v40, %v1836_v61  ;;  %v3062_v61 = vld [vmem:[%s5542_s5 + $0x34] sm:$0xf] }
 0x2a4   : > { %v5153_v36 = vsub.f32 %v5060_v24, %v1870_v17  ;;  %v2967_v17 = vor.u32 %v3063_v29, %v2966_v54  ;;  %v2944_v54 = vld [vmem:[%s5542_s5 + $0x8] sm:$0xf0] }
 0x2a6   : > { %v1902_v32 = vmul.f32 %v5153_v36, %v5153_v36 }
 0x2a8   : > { %1847 = vadd.xlane.f32.xlu0 %v5093_v58  ;;  %1922 = vadd.xlane.f32.xlu1 %v1902_v32  ;;  %v2968_v32 = vld [vmem:[%s5542_s5 + $0x38] sm:$0xf0] }
 0x2a9   : > { %v1838_v28 = vpop.xlane.xlu1 %1837 }
 0x2aa   : > { %v1871_v57 = vmul.f32 %v5118_v40, %v1838_v28 }
 0x2ac   : > { %v5160_v60 = vsub.f32 %v5066_v47, %v1871_v57  ;;  %v3055_v47 = vld [vmem:[#allocation2 + $0x38] sm:$0xff] }
 0x2ad   : > { %2264 = vmatpush.bf16.msrb.mxu0 %v3055_v47 }
 0x2ae   : > { %v1903_v20 = vmul.f32 %v5160_v60, %v5160_v60 }
 0x2b0   : > { %1924 = vadd.xlane.f32.xlu2 %v1903_v20  ;;  %1849 = vadd.xlane.f32.xlu1 %v5098_v26 }
 0x2b1   : > { %v1840_v24 = vpop.xlane.xlu1 %1839  ;;  %2265 = vmatpush.bf16.msrb.mxu0 %v3054_v27  ;;  %v3060_v27 = vld [vmem:[%s5542_s5 + $0x24] sm:$0xf] }
 0x2b2   : > { %v1872_v4 = vmul.f32 %v5118_v40, %v1840_v24  ;;  %v2971_v24 = vor.u32 %v3062_v61, %v2968_v32  ;;  %v2963_v9 = vor.u32 %v3060_v27, %v2960_v19 }
 0x2b4   : > { %v5167_v2 = vsub.f32 %v5072_v14, %v1872_v4  ;;  %v3071_v14 = vld [vmem:[%s5542_s5 + $0x74] sm:$0xf0]  ;;  %2494 = vmatpush.bf16.msrb.mxu2 %v2971_v24 }
 0x2b5   : > { %v2999_v48 = vor.u32 %v3071_v14, %v2998_v12  ;;  %2266 = vmatpush.bf16.msrb.mxu0 %v3053_v38  ;;  %v2958_v12 = vld [vmem:[%s5542_s5 + $0x20] sm:$0xf]  ;;  %v3061_v14 = vld [vmem:[%s5542_s5 + $0x24] sm:$0xf0]  ;;  %v3059_v38 = vld [vmem:[%s5542_s5 + $0x14] sm:$0xf0] }
 0x2b6   : > { %v1904_v35 = vmul.f32 %v5167_v2, %v5167_v2  ;;  %v2959_v55 = vor.u32 %v3061_v14, %v2958_v12  ;;  %v2951_v46 = vor.u32 %v3059_v38, %v2950_v25 }
 0x2b7   : > { %2441 = vmatpush.bf16.msrb.mxu1 %v2999_v48 }
 0x2b8   : > { %1926 = vadd.xlane.f32.xlu2 %v1904_v35  ;;  %1851 = vadd.xlane.f32.xlu1 %v5103_v13 }
 0x2b9   : > { %2267 = vmatpush.bf16.msrb.mxu0 %v3052_v6  ;;  %2495 = vmatpush.bf16.msrb.mxu2 %v2963_v9 }
 0x2bb   : > { %2442 = vmatpush.bf16.msrb.mxu1 %v2991_v10 }
 0x2bd   : > { %2268 = vmatpush.bf16.msrb.mxu0 %v3051_v56 }
 0x2bf   : > { %2443 = vmatpush.bf16.msrb.mxu1 %v2983_v11 }
 0x2c0   : > { %1853 = vadd.xlane.f32.xlu2 %v5108_v63 }
 0x2c3   : > { %2444 = vmatpush.bf16.msrb.mxu1 %v2975_v51  ;;  %v2942_v51 = vld [vmem:[%s5542_s5] sm:$0xf] }
 0x2c7   : > { %2445 = vmatpush.bf16.msrb.mxu1 %v2967_v17  ;;  %v2947_v17 = vor.u32 %v3056_v18, %v2944_v54 }
 0x2c8   : > { %1855 = vadd.xlane.f32.xlu2 %v5113_v42 }
 0x2cb   : > { %2446 = vmatpush.bf16.msrb.mxu1 %v2959_v55 }
 0x2cf   : > { %2447 = vmatpush.bf16.msrb.mxu1 %v2951_v46 }
 0x2fb   : > { %v1915_v52 = vpop.xlane.xlu2 %1914 }
 0x2fc   : > { %v1946_v43 = vmul.f32 %v1915_v52, %v5118_v40 }
 0x2fe   : > { %v5211_v49 = vadd.f32 1e-05, %v1946_v43  ;;  %v3058_v43 = vld [vmem:[%s5542_s5 + $0x14] sm:$0xf] }
 0x2ff   : > { %v2955_v0 = vor.u32 %v3058_v43, %v2952_v15 }
 0x300   : > { %3277 = vrsqrt.f32 %v5211_v49  ;;  %vm1984_vm12 = vweird.f32 %v5211_v49 }
 0x301   : > { %2496 = vmatpush.bf16.msrb.mxu2 %v2955_v0 }
 0x303   : > { %v1842_v39 = vpop.xlane.xlu2 %1841  ;;  %v1917_v5 = vpop.xlane.xlu0 %1916 }
 0x304   : > { %v1873_v3 = vmul.f32 %v5118_v40, %v1842_v39  ;;  %v1947_v31 = vmul.f32 %v1917_v5, %v5118_v40  ;;  %v3048_v5 = vld [vmem:[#allocation2] sm:$0xff] }
 0x305   : > { %2497 = vmatpush.bf16.msrb.mxu2 %v2947_v17 }
 0x306   : > { %v5240_v28 = vpop.eup %3277  ;;  %v5243_v57 = vsub.f32 %v5078_v34, %v1873_v3  ;;  %v5245_v20 = vadd.f32 1e-05, %v1947_v31  ;;  %v3050_v34 = vld [vmem:[#allocation2 + $0x10] sm:$0xff] }
 0x307   : > { %v1979_v4 = vmul.f32 %v5240_v28, %v5211_v49  ;;  %2269 = vmatpush.bf16.msrb.mxu0 %v3050_v34  ;;  %vm1985_vm10 = vweird.f32 %v5240_v28  ;;  %v3057_v49 = vld [vmem:[%s5542_s5 + $0x4] sm:$0xf0] }
 0x308   : > { %3279 = vrsqrt.f32 %v5245_v20  ;;  %v1905_v35 = vmul.f32 %v5243_v57, %v5243_v57  ;;  %vm5291_vm15 = vmor %vm1984_vm12, %vm1985_vm10  ;;  %v2943_v31 = vor.u32 %v3057_v49, %v2942_v51  ;;  %vm1994_vm0 = vweird.f32 %v5245_v20 }
 0x309   : > { %v1980_v47 = vmul.f32 %v5240_v28, %v1979_v4 }
 0x30a   : > { %1928 = vadd.xlane.f32.xlu0 %v1905_v35  ;;  %2448 = vmatpush.bf16.msrb.mxu1 %v2943_v31 }
 0x30b   : > { %v1981_v48 = vmul.f32 0.5, %v1980_v47  ;;  %v1844_v7 = vpop.xlane.xlu2 %1843  ;;  %v1919_v8 = vpop.xlane.xlu0 %1918  ;;  %2270 = vmatpush.bf16.msrb.mxu0 %v3049_v41  ;;  %v5319_v47 = vld [vmem:[%s5558_s2] ss:$0 sm:$0xff]  ;;  %s3367_s2 = scalar_lea.hbm %s5543_s6, 384 }
 0x30c   : > { %v1874_v52 = vmul.f32 %v5118_v40, %v1844_v7  ;;  %v1948_v10 = vmul.f32 %v1919_v8, %v5118_v40  ;;  %p3369_p4 = scmp.lt.s32.totalorder %s3367_s2, %s3363_s10 }
 0x30d   : > { %v1982_v44 = vsub.f32 1.5, %v1981_v48 }
 0x30e   : > { %v3280_v16 = vpop.eup %3279  ;;  %v5281_v11 = vsub.f32 %v5083_v21, %v1874_v52  ;;  %v5283_v30 = vadd.f32 1e-05, %v1948_v10  ;;  %p3370_p7 = por %p3369_p4, %p3368_p3 }
 0x30f   : > { %v1983_v6 = vmul.f32 %v5240_v28, %v1982_v44  ;;  %v1989_v53 = vmul.f32 %v3280_v16, %v5245_v20  ;;  %2271 = vmatpush.bf16.msrb.mxu0 %v3048_v5  ;;  %vm1995_vm11 = vweird.f32 %v3280_v16  ;;  %v5331_v20 = vld [vmem:[%s5559_s3] ss:$0 sm:$0xff] }
 0x310   : > { %3281 = vrsqrt.f32 %v5283_v30  ;;  %v1906_v33 = vmul.f32 %v5281_v11, %v5281_v11  ;;  %vm1996_vm1 = vmor %vm1994_vm0, %vm1995_vm11  ;;  %vm2004_vm3 = vweird.f32 %v5283_v30  ;;  %p3371_p8 = pnand %p3370_p7, %p3366_p2 }
 0x311   : > { %v1990_v21 = vmul.f32 %v3280_v16, %v1989_v53  ;;  %v1987_v22 = vsel %vm5291_vm15, %v5240_v28, %v1983_v6 }
 0x312   : > { %1930 = vadd.xlane.f32.xlu0 %v1906_v33  ;;  %v2138_v24 = vmul.f32 %v1987_v22, %v5122_v45 }
 0x313   : > { %v1991_v37 = vmul.f32 0.5, %v1990_v21  ;;  %v1921_v56 = vpop.xlane.xlu1 %1920  ;;  %v1846_v3 = vpop.xlane.xlu0 %1845 }
 0x314   : > { %v1949_v29 = vmul.f32 %v1921_v56, %v5118_v40  ;;  %v1875_v61 = vmul.f32 %v5118_v40, %v1846_v3  ;;  %v2157_v7 = vmul.f32 %v5319_v47, %v2138_v24 }
 0x315   : > { %v1992_v32 = vsub.f32 1.5, %v1991_v37 }
 0x316   : > { %v3282_v28 = vpop.eup %3281  ;;  %v1965_v4 = vadd.f32 1e-05, %v1949_v29  ;;  %v5314_v35 = vsub.f32 %v5088_v59, %v1875_v61  ;;  %v2176_v38 = vadd.f32 %v5331_v20, %v2157_v7 }
 0x317   : > { %v1993_v34 = vmul.f32 %v3280_v16, %v1992_v32  ;;  %v1999_v12 = vmul.f32 %v3282_v28, %v5283_v30  ;;  %vm2005_vm13 = vweird.f32 %v3282_v28 }
 0x318   : > { %3283 = vrsqrt.f32 %v1965_v4  ;;  %v1907_v45 = vmul.f32 %v5314_v35, %v5314_v35  ;;  %vm2006_vm7 = vmor %vm2004_vm3, %vm2005_vm13  ;;  %vm2014_vm6 = vweird.f32 %v1965_v4 }
 0x319   : > { %v1997_v14 = vsel %vm1996_vm1, %v3280_v16, %v1993_v34  ;;  %v2000_v48 = vmul.f32 %v3282_v28, %v1999_v12 }
 0x31a   : > { %v2139_v59 = vmul.f32 %v1997_v14, %v5132_v62  ;;  %1932 = vadd.xlane.f32.xlu1 %v1907_v45  ;;  %1857 = vadd.xlane.f32.xlu0 %v5124_v1 }
 0x31b   : > { %v2001_v8 = vmul.f32 0.5, %v2000_v48  ;;  %v1923_v55 = vpop.xlane.xlu1 %1922  ;;  %v1848_v27 = vpop.xlane.xlu0 %1847 }
 0x31c   : > { %v1950_v19 = vmul.f32 %v1923_v55, %v5118_v40  ;;  %v1876_v41 = vmul.f32 %v5118_v40, %v1848_v27  ;;  %v2158_v52 = vmul.f32 %v5319_v47, %v2139_v59 }
 0x31d   : > { %v2002_v62 = vsub.f32 1.5, %v2001_v8 }
 0x31e   : > { %v3284_v10 = vpop.eup %3283  ;;  %v1966_v9 = vadd.f32 1e-05, %v1950_v19  ;;  %v5337_v25 = vsub.f32 %v5093_v58, %v1876_v41  ;;  %v2177_v43 = vadd.f32 %v5331_v20, %v2158_v52 }
 0x31f   : > { %v2003_v44 = vmul.f32 %v3282_v28, %v2002_v62  ;;  %v2009_v46 = vmul.f32 %v3284_v10, %v1965_v4  ;;  %vm2015_vm4 = vweird.f32 %v3284_v10 }
 0x320   : > { %3285 = vrsqrt.f32 %v1966_v9  ;;  %v2192_v15 = vpack.c.bf16 %v2177_v43, %v2176_v38  ;;  %v1908_v16 = vmul.f32 %v5337_v25, %v5337_v25  ;;  %vm2016_vm9 = vmor %vm2014_vm6, %vm2015_vm4  ;;  %vm2024_vm2 = vweird.f32 %v1966_v9 }
 0x321   : > { %v2010_v0 = vmul.f32 %v3284_v10, %v2009_v46  ;;  %v2007_v58 = vsel %vm2006_vm7, %v3282_v28, %v2003_v44 }
 0x322   : > { %2272 = vmatmul.bf16.vlgmr.msrb.gmra.mxu0 %v2192_v15  ;;  %2449 = vmatmul.bf16.vlgmr.msrb.gmra.mxu1 %v2192_v15  ;;  %v2140_v49 = vmul.f32 %v2007_v58, %v5139_v23 }
 0x323   : > { %v2011_v6 = vmul.f32 0.5, %v2010_v0  ;;  %2498 = vmatmul.bf16.vlgmr.msrb.gmra.mxu2 %v2192_v15  ;;  %1934 = vadd.xlane.f32.xlu1 %v1908_v16  ;;  %v1925_v53 = vpop.xlane.xlu2 %1924  ;;  %v1850_v33 = vpop.xlane.xlu1 %1849 }
 0x324   : > { %v1951_v39 = vmul.f32 %v1925_v53, %v5118_v40  ;;  %v1877_v21 = vmul.f32 %v5118_v40, %v1850_v33  ;;  %v2159_v29 = vmul.f32 %v5319_v47, %v2140_v49 }
 0x325   : > { %v2012_v5 = vsub.f32 1.5, %v2011_v6 }
 0x326   : > { %v3286_v51 = vpop.eup %3285  ;;  %v1967_v30 = vadd.f32 1e-05, %v1951_v39  ;;  %v5348_v22 = vsub.f32 %v5098_v26, %v1877_v21  ;;  %v2178_v34 = vadd.f32 %v5331_v20, %v2159_v29 }
 0x327   : > { %v2013_v37 = vmul.f32 %v3284_v10, %v2012_v5  ;;  %v2019_v56 = vmul.f32 %v3286_v51, %v1966_v9  ;;  %vm2025_vm14 = vweird.f32 %v3286_v51 }
 0x328   : > { %3287 = vrsqrt.f32 %v1967_v30  ;;  %v1909_v3 = vmul.f32 %v5348_v22, %v5348_v22  ;;  %vm2026_vm5 = vmor %vm2024_vm2, %vm2025_vm14  ;;  %vm2034_vm10 = vweird.f32 %v1967_v30 }
 0x329   : > { %v2017_v31 = vsel %vm2016_vm9, %v3284_v10, %v2013_v37  ;;  %v2020_v18 = vmul.f32 %v3286_v51, %v2019_v56 }
 0x32a   : > { %v2141_v54 = vmul.f32 %v2017_v31, %v5146_v50  ;;  %1936 = vadd.xlane.f32.xlu2 %v1909_v3 }
 0x32b   : > { %v2021_v23 = vmul.f32 0.5, %v2020_v18  ;;  %v1927_v61 = vpop.xlane.xlu2 %1926  ;;  %v1852_v17 = vpop.xlane.xlu1 %1851 }
 0x32c   : > { %v1878_v26 = vmul.f32 %v5118_v40, %v1852_v17  ;;  %v2160_v32 = vmul.f32 %v5319_v47, %v2141_v54 }
 0x32d   : > { %v2022_v28 = vsub.f32 1.5, %v2021_v23 }
 0x32e   : > { %v3288_v24 = vpop.eup %3287  ;;  %v5357_v4 = vsub.f32 %v5103_v13, %v1878_v26  ;;  %v2179_v12 = vadd.f32 %v5331_v20, %v2160_v32 }
 0x32f   : > { %v2023_v50 = vmul.f32 %v3286_v51, %v2022_v28  ;;  %v2029_v45 = vmul.f32 %v3288_v24, %v1967_v30  ;;  %vm2035_vm8 = vweird.f32 %v3288_v24 }
 0x330   : > { %v2193_v14 = vpack.c.bf16 %v2179_v12, %v2178_v34  ;;  %v1910_v48 = vmul.f32 %v5357_v4, %v5357_v4  ;;  %vm2036_vm12 = vmor %vm2034_vm10, %vm2035_vm8 }
 0x331   : > { %v2030_v59 = vmul.f32 %v3288_v24, %v2029_v45  ;;  %v2027_v7 = vsel %vm2026_vm5, %v3286_v51, %v2023_v50 }
 0x332   : > { %2277 = vmatmul.bf16.gmra.mxu0 %v2193_v14  ;;  %2454 = vmatmul.bf16.gmra.mxu1 %v2193_v14  ;;  %v2142_v19 = vmul.f32 %v2027_v7, %v5153_v36 }
 0x333   : > { %v2031_v8 = vmul.f32 0.5, %v2030_v59  ;;  %2503 = vmatmul.bf16.gmra.mxu2 %v2193_v14  ;;  %1938 = vadd.xlane.f32.xlu0 %v1910_v48  ;;  %v1854_v13 = vpop.xlane.xlu2 %1853 }
 0x334   : > { %v1879_v55 = vmul.f32 %v5118_v40, %v1854_v13  ;;  %v2161_v38 = vmul.f32 %v5319_v47, %v2142_v19 }
 0x335   : > { %v2032_v27 = vsub.f32 1.5, %v2031_v8 }
 0x336   : > { %v5366_v41 = vsub.f32 %v5108_v63, %v1879_v55  ;;  %v2180_v46 = vadd.f32 %v5331_v20, %v2161_v38 }
 0x337   : > { %v2033_v52 = vmul.f32 %v3288_v24, %v2032_v27 }
 0x338   : > { %v1911_v62 = vmul.f32 %v5366_v41, %v5366_v41 }
 0x339   : > { %v2037_v10 = vsel %vm2036_vm12, %v3288_v24, %v2033_v52 }
 0x33a   : > { %v2143_v9 = vmul.f32 %v2037_v10, %v5160_v60  ;;  %1940 = vadd.xlane.f32.xlu1 %v1911_v62  ;;  %v1952_v60 = vmul.f32 %v1927_v61, %v5118_v40 }
 0x33b   : > { %v1856_v43 = vpop.xlane.xlu2 %1855 }
 0x33c   : > { %v1880_v44 = vmul.f32 %v5118_v40, %v1856_v43  ;;  %v2162_v36 = vmul.f32 %v5319_v47, %v2143_v9  ;;  %v1968_v58 = vadd.f32 1e-05, %v1952_v60 }
 0x33e   : > { %v5375_v63 = vsub.f32 %v5113_v42, %v1880_v44  ;;  %v2181_v15 = vadd.f32 %v5331_v20, %v2162_v36  ;;  %3289 = vrsqrt.f32 %v1968_v58  ;;  %vm2044_vm11 = vweird.f32 %v1968_v58 }
 0x340   : > { %v1912_v16 = vmul.f32 %v5375_v63, %v5375_v63  ;;  %v2194_v0 = vpack.c.bf16 %v2181_v15, %v2180_v46 }
 0x342   : > { %1942 = vadd.xlane.f32.xlu2 %v1912_v16  ;;  %2282 = vmatmul.bf16.gmra.mxu0 %v2194_v0 }
 0x343   : > { %2459 = vmatmul.bf16.gmra.mxu1 %v2194_v0  ;;  %2508 = vmatmul.bf16.gmra.mxu2 %v2194_v0 }
 0x344   : > { %v3290_v6 = vpop.eup %3289 }
 0x345   : > { %v2039_v53 = vmul.f32 %v3290_v6, %v1968_v58  ;;  %vm2045_vm15 = vweird.f32 %v3290_v6 }
 0x346   : > { %vm2046_vm0 = vmor %vm2044_vm11, %vm2045_vm15 }
 0x347   : > { %v2040_v42 = vmul.f32 %v3290_v6, %v2039_v53 }
 0x349   : > { %v2041_v5 = vmul.f32 0.5, %v2040_v42 }
 0x34b   : > { %v2042_v51 = vsub.f32 1.5, %v2041_v5 }
 0x34d   : > { %v2043_v3 = vmul.f32 %v3290_v6, %v2042_v51 }
 0x34f   : > { %v2047_v54 = vsel %vm2046_vm0, %v3290_v6, %v2043_v3 }
 0x350   : > { %v2144_v24 = vmul.f32 %v2047_v54, %v5167_v2 }
 0x352   : > { %v2163_v8 = vmul.f32 %v5319_v47, %v2144_v24 }
 0x354   : > { %v2182_v52 = vadd.f32 %v5331_v20, %v2163_v8 }
 0x37d   : > { %v1929_v33 = vpop.xlane.xlu0 %1928 }
 0x37e   : > { %v1953_v39 = vmul.f32 %v1929_v33, %v5118_v40 }
 0x380   : > { %v1969_v21 = vadd.f32 1e-05, %v1953_v39 }
 0x382   : > { %3291 = vrsqrt.f32 %v1969_v21  ;;  %vm2054_vm13 = vweird.f32 %v1969_v21 }
 0x385   : > { %v1931_v49 = vpop.xlane.xlu0 %1930 }
 0x386   : > { %v1954_v30 = vmul.f32 %v1931_v49, %v5118_v40 }
 0x388   : > { %v3292_v37 = vpop.eup %3291  ;;  %v1970_v56 = vadd.f32 1e-05, %v1954_v30 }
 0x389   : > { %v2049_v31 = vmul.f32 %v3292_v37, %v1969_v21  ;;  %vm2055_vm1 = vweird.f32 %v3292_v37 }
 0x38a   : > { %3293 = vrsqrt.f32 %v1970_v56  ;;  %vm2056_vm3 = vmor %vm2054_vm13, %vm2055_vm1  ;;  %vm2064_vm4 = vweird.f32 %v1970_v56 }
 0x38b   : > { %v2050_v18 = vmul.f32 %v3292_v37, %v2049_v31 }
 0x38d   : > { %v2051_v29 = vmul.f32 0.5, %v2050_v18  ;;  %v1933_v23 = vpop.xlane.xlu1 %1932  ;;  %v1858_v61 = vpop.xlane.xlu0 %1857 }
 0x38e   : > { %v1955_v17 = vmul.f32 %v1933_v23, %v5118_v40  ;;  %v1881_v26 = vmul.f32 %v5118_v40, %v1858_v61 }
 0x38f   : > { %v2052_v32 = vsub.f32 1.5, %v2051_v29 }
 0x390   : > { %v3294_v28 = vpop.eup %3293  ;;  %v1971_v34 = vadd.f32 1e-05, %v1955_v17  ;;  %v5388_v12 = vsub.f32 %v5124_v1, %v1881_v26 }
 0x391   : > { %v2053_v50 = vmul.f32 %v3292_v37, %v2052_v32  ;;  %v2059_v45 = vmul.f32 %v3294_v28, %v1970_v56  ;;  %vm2065_vm7 = vweird.f32 %v3294_v28 }
 0x392   : > { %3295 = vrsqrt.f32 %v1971_v34  ;;  %v1913_v14 = vmul.f32 %v5388_v12, %v5388_v12  ;;  %vm2066_vm6 = vmor %vm2064_vm4, %vm2065_vm7  ;;  %vm2074_vm14 = vweird.f32 %v1971_v34 }
 0x393   : > { %v2057_v48 = vsel %vm2056_vm3, %v3292_v37, %v2053_v50  ;;  %v2060_v59 = vmul.f32 %v3294_v28, %v2059_v45 }
 0x394   : > { %v2145_v7 = vmul.f32 %v2057_v48, %v5243_v57  ;;  %1944 = vadd.xlane.f32.xlu0 %v1913_v14 }
 0x395   : > { %v2061_v2 = vmul.f32 0.5, %v2060_v59 }
 0x396   : > { %v1935_v13 = vpop.xlane.xlu1 %1934  ;;  %v2164_v1 = vmul.f32 %v5319_v47, %v2145_v7 }
 0x397   : > { %v2062_v55 = vsub.f32 1.5, %v2061_v2  ;;  %v1956_v27 = vmul.f32 %v1935_v13, %v5118_v40 }
 0x398   : > { %v3296_v19 = vpop.eup %3295  ;;  %v2183_v62 = vadd.f32 %v5331_v20, %v2164_v1 }
 0x399   : > { %v2063_v10 = vmul.f32 %v3294_v28, %v2062_v55  ;;  %v2069_v9 = vmul.f32 %v3296_v19, %v1971_v34  ;;  %v1972_v38 = vadd.f32 1e-05, %v1956_v27  ;;  %vm2075_vm9 = vweird.f32 %v3296_v19 }
 0x39a   : > { %v2195_v57 = vpack.c.bf16 %v2183_v62, %v2182_v52  ;;  %vm2076_vm2 = vmor %vm2074_vm14, %vm2075_vm9 }
 0x39b   : > { %v2070_v43 = vmul.f32 %v3296_v19, %v2069_v9  ;;  %3297 = vrsqrt.f32 %v1972_v38  ;;  %v2067_v44 = vsel %vm2066_vm6, %v3294_v28, %v2063_v10  ;;  %vm2084_vm8 = vweird.f32 %v1972_v38 }
 0x39c   : > { %2287 = vmatmul.bf16.gmra.mxu0 %v2195_v57  ;;  %2464 = vmatmul.bf16.gmra.mxu1 %v2195_v57  ;;  %v2146_v58 = vmul.f32 %v2067_v44, %v5281_v11 }
 0x39d   : > { %v2071_v36 = vmul.f32 0.5, %v2070_v43  ;;  %2513 = vmatmul.bf16.gmra.mxu2 %v2195_v57  ;;  %v1937_v46 = vpop.xlane.xlu2 %1936 }
 0x39e   : > { %v1957_v15 = vmul.f32 %v1937_v46, %v5118_v40  ;;  %v2165_v51 = vmul.f32 %v5319_v47, %v2146_v58 }
 0x39f   : > { %v2072_v16 = vsub.f32 1.5, %v2071_v36  ;;  %v2273_v0 = vpop.f32.mrf.mxu0  ;;  %v2450_v60 = vpop.f32.mrf.mxu1 }
 0x3a0   : > { %v1973_v6 = vadd.f32 1e-05, %v1957_v15 }
 0x3a1   : > { %v3298_v53 = vpop.eup %3297  ;;  %v2073_v42 = vmul.f32 %v3296_v19, %v2072_v16 }
 0x3a2   : > { %v2079_v33 = vmul.f32 %v3298_v53, %v1972_v38  ;;  %3299 = vrsqrt.f32 %v1973_v6  ;;  %vm2085_vm5 = vweird.f32 %v3298_v53  ;;  %vm2094_vm15 = vweird.f32 %v1973_v6 }
 0x3a3   : > { %v2077_v39 = vsel %vm2076_vm2, %v3296_v19, %v2073_v42  ;;  %vm2086_vm10 = vmor %vm2084_vm8, %vm2085_vm5 }
 0x3a4   : > { %v2147_v21 = vmul.f32 %v2077_v39, %v5314_v35  ;;  %v2080_v5 = vmul.f32 %v3298_v53, %v2079_v33  ;;  %v2184_v35 = vadd.f32 %v5331_v20, %v2165_v51 }
 0x3a6   : > { %v2081_v49 = vmul.f32 0.5, %v2080_v5  ;;  %v2499_v30 = vpop.f32.mrf.mxu2  ;;  %v1939_v37 = vpop.xlane.xlu0 %1938  ;;  %v2166_v11 = vmul.f32 %v5319_v47, %v2147_v21 }
 0x3a7   : > { %v2539_v56 = vpack.c.bf16 %v2499_v30, %v2450_v60  ;;  %v1958_v3 = vmul.f32 %v1939_v37, %v5118_v40  ;;  %v2275_v31 = vpop.f32.mrf.mxu0  ;;  %v2452_v18 = vpop.f32.mrf.mxu1 }
 0x3a8   : > { %v3300_v54 = vpop.eup %3299  ;;  %v2082_v29 = vsub.f32 1.5, %v2081_v49  ;;  %v3079_v23 = vpack.c.bf16 %v2275_v31, %v2273_v0  ;;  %v2185_v61 = vadd.f32 %v5331_v20, %v2166_v11 }
 0x3a9   : > { %v2089_v17 = vmul.f32 %v3300_v54, %v1973_v6  ;;  %2555 = vst [vmem:[%s5409_s25] sm:$0xff] %v2539_v56  ;;  %v1974_v26 = vadd.f32 1e-05, %v1958_v3  ;;  %vm2095_vm12 = vweird.f32 %v3300_v54 }
 0x3aa   : > { %v2083_v32 = vmul.f32 %v3298_v53, %v2082_v29  ;;  %3080 = vst [vmem:[%s5412_s26] sm:$0xff] %v3079_v23   ;;  %v2196_v28 = vpack.c.bf16 %v2185_v61, %v2184_v35  ;;  %vm2096_vm11 = vmor %vm2094_vm15, %vm2095_vm12 }
 0x3ab   : > { %v2090_v24 = vmul.f32 %v3300_v54, %v2089_v17  ;;  %3301 = vrsqrt.f32 %v1974_v26  ;;  %vm2104_vm1 = vweird.f32 %v1974_v26 }
 0x3ac   : > { %2292 = vmatmul.bf16.gmra.mxu0 %v2196_v28  ;;  %2469 = vmatmul.bf16.gmra.mxu1 %v2196_v28  ;;  %v2087_v34 = vsel %vm2086_vm10, %v3298_v53, %v2083_v32 }
 0x3ad   : > { %v2091_v50 = vmul.f32 0.5, %v2090_v24  ;;  %2518 = vmatmul.bf16.gmra.mxu2 %v2196_v28  ;;  %v1941_v45 = vpop.xlane.xlu1 %1940  ;;  %v2148_v2 = vmul.f32 %v2087_v34, %v5337_v25 }
 0x3ae   : > { %v2501_v14 = vpop.f32.mrf.mxu2  ;;  %v1959_v48 = vmul.f32 %v1941_v45, %v5118_v40 }
 0x3af   : > { %v2092_v59 = vsub.f32 1.5, %v2091_v50  ;;  %v2540_v7 = vpack.c.bf16 %v2501_v14, %v2452_v18  ;;  %v2278_v8 = vpop.f32.mrf.mxu0  ;;  %v2455_v1 = vpop.f32.mrf.mxu1  ;;  %v2167_v9 = vmul.f32 %v5319_v47, %v2148_v2 }
 0x3b0   : > { %v1975_v13 = vadd.f32 1e-05, %v1959_v48 }
 0x3b1   : > { %v3302_v55 = vpop.eup %3301  ;;  %v2093_v27 = vmul.f32 %v3300_v54, %v2092_v59  ;;  %2556 = vst [vmem:[%s5409_s25 + $0x8] sm:$0xff] %v2540_v7  ;;  %v2186_v16 = vadd.f32 %v5331_v20, %v2167_v9 }
 0x3b2   : > { %v2099_v19 = vmul.f32 %v3302_v55, %v1974_v26  ;;  %3303 = vrsqrt.f32 %v1975_v13  ;;  %vm2105_vm0 = vweird.f32 %v3302_v55  ;;  %vm2114_vm7 = vweird.f32 %v1975_v13 }
 0x3b3   : > { %v2097_v52 = vsel %vm2096_vm11, %v3300_v54, %v2093_v27  ;;  %vm2106_vm13 = vmor %vm2104_vm1, %vm2105_vm0 }
 0x3b4   : > { %v2149_v62 = vmul.f32 %v2097_v52, %v5348_v22  ;;  %v2100_v10 = vmul.f32 %v3302_v55, %v2099_v19 }
 0x3b5   : > { %v1943_v32 = vpop.xlane.xlu2 %1942 }
 0x3b6   : > { %v2101_v38 = vmul.f32 0.5, %v2100_v10  ;;  %v2504_v57 = vpop.f32.mrf.mxu2  ;;  %v2168_v25 = vmul.f32 %v5319_v47, %v2149_v62  ;;  %v1960_v28 = vmul.f32 %v1943_v32, %v5118_v40 }
 0x3b7   : > { %v2541_v43 = vpack.c.bf16 %v2504_v57, %v2455_v1  ;;  %v2280_v44 = vpop.f32.mrf.mxu0  ;;  %v2457_v58 = vpop.f32.mrf.mxu1 }
 0x3b8   : > { %v3304_v36 = vpop.eup %3303  ;;  %v2102_v46 = vsub.f32 1.5, %v2101_v38  ;;  %v3084_v15 = vpack.c.bf16 %v2280_v44, %v2278_v8  ;;  %v2187_v0 = vadd.f32 %v5331_v20, %v2168_v25  ;;  %v1976_v24 = vadd.f32 1e-05, %v1960_v28 }
 0x3b9   : > { %v2109_v60 = vmul.f32 %v3304_v36, %v1975_v13  ;;  %2557 = vst [vmem:[%s5409_s25 + $0x10] sm:$0xff] %v2541_v43  ;;  %vm2115_vm3 = vweird.f32 %v3304_v36 }
 0x3ba   : > { %v2103_v22 = vmul.f32 %v3302_v55, %v2102_v46  ;;  %3116 = vst [vmem:[%s5412_s26 + $0x8] sm:$0xff] %v3084_v15   ;;  %v2197_v6 = vpack.c.bf16 %v2187_v0, %v2186_v16  ;;  %vm2116_vm4 = vmor %vm2114_vm7, %vm2115_vm3  ;;  %3305 = vrsqrt.f32 %v1976_v24  ;;  %vm2124_vm9 = vweird.f32 %v1976_v24 }
 0x3bb   : > { %v2110_v53 = vmul.f32 %v3304_v36, %v2109_v60 }
 0x3bc   : > { %2297 = vmatmul.bf16.gmra.mxu0 %v2197_v6  ;;  %2474 = vmatmul.bf16.gmra.mxu1 %v2197_v6  ;;  %v2107_v42 = vsel %vm2106_vm13, %v3302_v55, %v2103_v22 }
 0x3bd   : > { %v2111_v33 = vmul.f32 0.5, %v2110_v53  ;;  %2523 = vmatmul.bf16.gmra.mxu2 %v2197_v6  ;;  %v2150_v49 = vmul.f32 %v2107_v42, %v5357_v4 }
 0x3be   : > { %v2506_v39 = vpop.f32.mrf.mxu2 }
 0x3bf   : > { %v2112_v21 = vsub.f32 1.5, %v2111_v33  ;;  %v2542_v5 = vpack.c.bf16 %v2506_v39, %v2457_v58  ;;  %v2283_v51 = vpop.f32.mrf.mxu0  ;;  %v2169_v3 = vmul.f32 %v5319_v47, %v2150_v49 }
 0x3c0   : > { %v2460_v56 = vpop.f32.mrf.mxu1  ;;  %v3306_v34 = vpop.eup %3305 }
 0x3c1   : > { %v2113_v30 = vmul.f32 %v3304_v36, %v2112_v21  ;;  %2558 = vst [vmem:[%s5409_s25 + $0x18] sm:$0xff] %v2542_v5  ;;  %v2188_v4 = vadd.f32 %v5331_v20, %v2169_v3  ;;  %v2119_v50 = vmul.f32 %v3306_v34, %v1976_v24  ;;  %vm2125_vm6 = vweird.f32 %v3306_v34 }
 0x3c2   : > { %vm2126_vm14 = vmor %vm2124_vm9, %vm2125_vm6 }
 0x3c3   : > { %v2117_v37 = vsel %vm2116_vm4, %v3304_v36, %v2113_v30  ;;  %v2120_v45 = vmul.f32 %v3306_v34, %v2119_v50 }
 0x3c4   : > { %v2151_v11 = vmul.f32 %v2117_v37, %v5366_v41 }
 0x3c5   : > { %v2121_v7 = vmul.f32 0.5, %v2120_v45 }
 0x3c6   : > { %v2509_v31 = vpop.f32.mrf.mxu2  ;;  %v2170_v18 = vmul.f32 %v5319_v47, %v2151_v11 }
 0x3c7   : > { %v2543_v54 = vpack.c.bf16 %v2509_v31, %v2460_v56  ;;  %v2285_v29 = vpop.f32.mrf.mxu0  ;;  %v2122_v8 = vsub.f32 1.5, %v2121_v7 }
 0x3c8   : > { %v3089_v23 = vpack.c.bf16 %v2285_v29, %v2283_v51  ;;  %v2189_v35 = vadd.f32 %v5331_v20, %v2170_v18  ;;  %v2462_v41 = vpop.f32.mrf.mxu1 }
 0x3c9   : > { %2559 = vst [vmem:[%s5409_s25 + $0x20] sm:$0xff] %v2543_v54  ;;  %v2123_v13 = vmul.f32 %v3306_v34, %v2122_v8 }
 0x3ca   : > { %3117 = vst [vmem:[%s5412_s26 + $0x10] sm:$0xff] %v3089_v23   ;;  %v2198_v61 = vpack.c.bf16 %v2189_v35, %v2188_v4 }
 0x3cb   : > { %v2127_v27 = vsel %vm2126_vm14, %v3306_v34, %v2123_v13 }
 0x3cc   : > { %2302 = vmatmul.bf16.gmra.mxu0 %v2198_v61  ;;  %2479 = vmatmul.bf16.gmra.mxu1 %v2198_v61 }
 0x3cd   : > { %2528 = vmatmul.bf16.gmra.mxu2 %v2198_v61 }
 0x3ce   : > { %v2511_v17 = vpop.f32.mrf.mxu2 }
 0x3cf   : > { %v2544_v26 = vpack.c.bf16 %v2511_v17, %v2462_v41 }
 0x3d1   : > { %2560 = vst [vmem:[%s5409_s25 + $0x28] sm:$0xff] %v2544_v26 }
 0x407   : > { %v1945_v14 = vpop.xlane.xlu0 %1944 }
 0x408   : > { %v1961_v48 = vmul.f32 %v1945_v14, %v5118_v40  ;;  %v2152_v40 = vmul.f32 %v2127_v27, %v5375_v63 }
 0x40a   : > { %v1977_v59 = vadd.f32 1e-05, %v1961_v48  ;;  %v2171_v25 = vmul.f32 %v5319_v47, %v2152_v40 }
 0x40c   : > { %3307 = vrsqrt.f32 %v1977_v59  ;;  %vm2134_vm5 = vweird.f32 %v1977_v59  ;;  %v2190_v0 = vadd.f32 %v5331_v20, %v2171_v25 }
 0x412   : > { %v3308_v2 = vpop.eup %3307 }
 0x413   : > { %v2129_v1 = vmul.f32 %v3308_v2, %v1977_v59  ;;  %vm2135_vm2 = vweird.f32 %v3308_v2 }
 0x414   : > { %vm2136_vm8 = vmor %vm2134_vm5, %vm2135_vm2 }
 0x415   : > { %v2130_v55 = vmul.f32 %v3308_v2, %v2129_v1 }
 0x417   : > { %v2131_v19 = vmul.f32 0.5, %v2130_v55 }
 0x419   : > { %v2132_v52 = vsub.f32 1.5, %v2131_v19  ;;  %v2288_v62 = vpop.f32.mrf.mxu0  ;;  %v2465_v10 = vpop.f32.mrf.mxu1 }
 0x41b   : > { %v2133_v9 = vmul.f32 %v3308_v2, %v2132_v52 }
 0x41d   : > { %v2137_v38 = vsel %vm2136_vm8, %v3308_v2, %v2133_v9 }
 0x41e   : > { %v2153_v57 = vmul.f32 %v2137_v38, %v5388_v12 }
 0x420   : > { %v2514_v43 = vpop.f32.mrf.mxu2  ;;  %v2172_v44 = vmul.f32 %v5319_v47, %v2153_v57 }
 0x421   : > { %v2545_v36 = vpack.c.bf16 %v2514_v43, %v2465_v10  ;;  %v2290_v46 = vpop.f32.mrf.mxu0  ;;  %v2467_v15 = vpop.f32.mrf.mxu1 }
 0x422   : > { %v3094_v16 = vpack.c.bf16 %v2290_v46, %v2288_v62  ;;  %v2191_v63 = vadd.f32 %v5331_v20, %v2172_v44 }
 0x423   : > { %2561 = vst [vmem:[%s5409_s25 + $0x30] sm:$0xff] %v2545_v36 }
 0x424   : > { %3118 = vst [vmem:[%s5412_s26 + $0x18] sm:$0xff] %v3094_v16   ;;  %v2199_v60 = vpack.c.bf16 %v2191_v63, %v2190_v0 }
 0x426   : > { %2307 = vmatmul.bf16.gmra.mxu0 %v2199_v60  ;;  %2484 = vmatmul.bf16.gmra.mxu1 %v2199_v60 }
 0x427   : > { %2533 = vmatmul.bf16.gmra.mxu2 %v2199_v60 }
 0x428   : > { %v2516_v12 = vpop.f32.mrf.mxu2 }
 0x429   : > { %v2546_v47 = vpack.c.bf16 %v2516_v12, %v2467_v15  ;;  %v2293_v22 = vpop.f32.mrf.mxu0  ;;  %v2470_v58 = vpop.f32.mrf.mxu1 }
 0x42b   : > { %2562 = vst [vmem:[%s5409_s25 + $0x38] sm:$0xff] %v2546_v47 }
 0x430   : > { %v2519_v6 = vpop.f32.mrf.mxu2 }
 0x431   : > { %v2547_v53 = vpack.c.bf16 %v2519_v6, %v2470_v58  ;;  %v2295_v20 = vpop.f32.mrf.mxu0  ;;  %v2472_v42 = vpop.f32.mrf.mxu1 }
 0x432   : > { %v3099_v33 = vpack.c.bf16 %v2295_v20, %v2293_v22 }
 0x433   : > { %2563 = vst [vmem:[%s5409_s25 + $0x40] sm:$0xff] %v2547_v53 }
 0x434   : > { %3119 = vst [vmem:[%s5412_s26 + $0x20] sm:$0xff] %v3099_v33  }
 0x438   : > { %v2521_v39 = vpop.f32.mrf.mxu2 }
 0x439   : > { %v2548_v21 = vpack.c.bf16 %v2521_v39, %v2472_v42  ;;  %v2298_v5 = vpop.f32.mrf.mxu0  ;;  %v2475_v51 = vpop.f32.mrf.mxu1 }
 0x43b   : > { %2564 = vst [vmem:[%s5409_s25 + $0x48] sm:$0xff] %v2548_v21 }
 0x43c   : > { %3374 = shalt.err (!%p3371_p8)
}
 0x43d   : > { %s5547_s17 = smov 128   ;;  %s3484_s19 = smov 8  }
 0x43e   : > { %3151 = dma.vmem_to_hbm [thread:$0]  (%p3572_p5), %s2595_s21, 2048, %s2597_s22, %s2572_s23, %s5547_s17, %s5547_s17, %s3484_s19  }
 0x43f   : > { %s3073_s0 = sshll.u32 %s3553_s9, 6  ;;  %s2611_s10 = sshll.u32 %s5412_s26, 4  ;;  %s2612_s10 = int_to_ptr.vmem [resolvable:$true] %s2611_s10 }
 0x440   : > { %v2524_v49 = vpop.f32.mrf.mxu2  ;;  %s2610_s3 = scalar_lea.hbm %s5544_s7, %s3073_s0  ;;  %s2576_s20 = sand.u32 1, %s3553_s9  }
 0x441   : > { %v2549_v30 = vpack.c.bf16 %v2524_v49, %v2475_v51  ;;  %v2300_v37 = vpop.f32.mrf.mxu0  ;;  %v2477_v56 = vpop.f32.mrf.mxu1  ;;  %s2613_s13 = sshll.u32 %s2610_s3, 4  ;;  %s2628_s23 = scalar_lea.hbm %s5545_s8, %s3072_s18  ;;  %s2614_s13 = int_to_ptr.hbm [resolvable:$true] %s2613_s13 }
 0x442   : > { %v3104_v11 = vpack.c.bf16 %v2300_v37, %v2298_v5  ;;  %s5489_s24 = scalar_lea.sflag [#allocation7], %s2576_s20  ;;  %s3389_s12 = sshra.s32 %s2614_s13, 4  ;;  %s3390_s12 = int_to_ptr.hbm [resolvable:$true] %s3389_s12 }
 0x443   : > { %2565 = vst [vmem:[%s5409_s25 + $0x50] sm:$0xff] %v2549_v30  ;;  %s3391_s0 = scalar_lea.hbm %s3390_s12, 64  ;;  %s3395_s3 = scalar_lea.hbm %s5544_s7, 192 }
 0x444   : > { %3120 = vst [vmem:[%s5412_s26 + $0x28] sm:$0xff] %v3104_v11   ;;  %p3392_p9 = scmp.ne.s32.totalorder %s3390_s12, %s3391_s0  ;;  %p3396_p12 = scmp.lt.s32.totalorder %s3390_s12, %s5544_s7 }
 0x445   : > { %p3397_p13 = scmp.lt.s32.totalorder %s3395_s3, %s3391_s0 }
 0x446   : > { %p3393_p10 = pnand %p3392_p9, %p3572_p5 }
 0x447   : > { %p3398_p0 = por %p3397_p13, %p3396_p12 }
 0x448   : > { %v2526_v3 = vpop.f32.mrf.mxu2  ;;  %p3394_p11 = pneg %p3393_p10 }
 0x449   : > { %v2550_v31 = vpack.c.bf16 %v2526_v3, %v2477_v56  ;;  %v2303_v18 = vpop.f32.mrf.mxu0  ;;  %v2480_v54 = vpop.f32.mrf.mxu1 }
 0x44a   : > { %p3399_p1 = pnand %p3398_p0, %p3394_p11 }
 0x44b   : > { %2566 = vst [vmem:[%s5409_s25 + $0x58] sm:$0xff] %v2550_v31 }
 0x450   : > { %v2529_v29 = vpop.f32.mrf.mxu2 }
 0x451   : > { %v2551_v23 = vpack.c.bf16 %v2529_v29, %v2480_v54  ;;  %v2305_v4 = vpop.f32.mrf.mxu0  ;;  %v2482_v61 = vpop.f32.mrf.mxu1 }
 0x452   : > { %v3109_v35 = vpack.c.bf16 %v2305_v4, %v2303_v18 }
 0x453   : > { %2567 = vst [vmem:[%s5409_s25 + $0x60] sm:$0xff] %v2551_v23 }
 0x454   : > { %3121 = vst [vmem:[%s5412_s26 + $0x30] sm:$0xff] %v3109_v35  }
 0x458   : > { %v2531_v41 = vpop.f32.mrf.mxu2 }
 0x459   : > { %v2552_v17 = vpack.c.bf16 %v2531_v41, %v2482_v61 }
 0x45b   : > { %2568 = vst [vmem:[%s5409_s25 + $0x68] sm:$0xff] %v2552_v17 }
 0x4a3   : > { %v2308_v26 = vpop.f32.mrf.mxu0  ;;  %v2485_v32 = vpop.f32.mrf.mxu1 }
 0x4aa   : > { %v2534_v28 = vpop.f32.mrf.mxu2 }
 0x4ab   : > { %v2553_v24 = vpack.c.bf16 %v2534_v28, %v2485_v32  ;;  %v2310_v34 = vpop.f32.mrf.mxu0 }
 0x4ac   : > { %v3114_v50 = vpack.c.bf16 %v2310_v34, %v2308_v26 }
 0x4ad   : > { %2569 = vst [vmem:[%s5409_s25 + $0x70] sm:$0xff] %v2553_v24 }
 0x4ae   : > { %3122 = vst [vmem:[%s5412_s26 + $0x38] sm:$0xff] %v3114_v50  }
 0x4af   : > { %3402 = shalt.err (!%p3399_p1)
}
 0x4b0   : > { %s3485_s26 = smov 64   ;;  %s3486_s18 = smov 4   ;;  %v2487_v45 = vpop.f32.mrf.mxu1 }
 0x4b1   : > { %3152 = dma.vmem_to_hbm [thread:$0]  (%p3572_p5), %s2612_s10, 1024, %s2614_s13, %s5489_s24, %s3485_s26, %s3485_s26, %s3486_s18  }
 0x4b2   : > { %s2631_s20 = sshll.u32 %s2628_s23, 4  ;;  %s2629_s21 = sshll.u32 %s5409_s25, 4  ;;  %v2536_v14 = vpop.f32.mrf.mxu2  ;;  %s2632_s20 = int_to_ptr.hbm [resolvable:$true] %s2631_s20  ;;  %s2630_s21 = int_to_ptr.vmem [resolvable:$true] %s2629_s21 }
 0x4b3   : > { %v2554_v48 = vpack.c.bf16 %v2536_v14, %v2487_v45  ;;  %s3417_s17 = sshra.s32 %s2632_s20, 4  ;;  %s3423_s1 = scalar_lea.hbm %s5545_s8, 384  ;;  %s3418_s17 = int_to_ptr.hbm [resolvable:$true] %s3417_s17 }
 0x4b4   : > { %s3419_s22 = scalar_lea.hbm %s3418_s17, 128  ;;  %p3424_p7 = scmp.lt.s32.totalorder %s3418_s17, %s5545_s8 }
 0x4b5   : > { %2570 = vst [vmem:[%s5409_s25 + $0x78] sm:$0xff] %v2554_v48  ;;  %p3420_p2 = scmp.ne.s32.totalorder %s3418_s17, %s3419_s22  ;;  %p3425_p8 = scmp.lt.s32.totalorder %s3423_s1, %s3419_s22 }
 0x4b7   : > { %p3421_p3 = pnand %p3420_p2, %p3572_p5  ;;  %p3426_p9 = por %p3425_p8, %p3424_p7 }
 0x4b9   : > { %p3422_p4 = pneg %p3421_p3 }
 0x4bb   : > { %p3427_p10 = pnand %p3426_p9, %p3422_p4 }
 0x4bd   : > { %3430 = shalt.err (!%p3427_p10)
}
 0x4be   : > { %s5560_s25 = smov 128  }
 0x4bf   : > { %3153 = dma.vmem_to_hbm [thread:$0]  (%p3572_p5), %s2630_s21, 2048, %s2632_s20, %s5489_s24, %s5560_s25, %s5560_s25, %s3484_s19  }
 0x4c0 PF: > { %p3173_p11 = scmp.ge.s32.totalorder %s3473_s30, 2  ;;  %s2646_s23 = sand.u32 1, %s3461_s27  }
 0x4c1   : > { %s2647_s2 = scalar_lea.sflag [#allocation4], %s2646_s23 }
 0x4c2   : > { %p3162_p12 = pnand %p3173_p11, %p3576_p6 }
 0x4c4   : > { %p3163_p13 = pneg %p3162_p12 }
 0x4c6   : > { %3452 = dma.done.wait (%p3163_p13), %s2647_s2, 2048  }
 0x4c7   : > { %3454 = vsyncadd (%p3163_p13), %s2647_s2, 4294965248  ;;  %s5561_s3 = sadd.s32 4294967294, %s3473_s30  }
 0x4c8   : > { %s2656_s15 = sand.u32 1, %s5561_s3  }
 0x4c9   : > { %s2657_s9 = scalar_lea.sflag [#allocation7], %s2656_s15 }
 0x4ca   : > { %3456 = dma.done.wait (%p3163_p13), %s2657_s9, 3072  }
 0x4cb   : > { %3458 = vsyncadd (%p3163_p13), %s2657_s9, 4294964224  ;;  %p23_p5 = scmp.ge.s32.totalorder %s3557_s11, 5   ;;  %s5562_s27 = smov %s3465_s28 }
 0x4cc   : > { %s5563_s28 = smov %s3469_s29  ;;  %s5564_s29 = smov %s3570_s14 }
 0x4cd   : > { %s5565_s30 = smov %s3557_s11  ;;  %25 = sbr.rel (!%p23_p5) target bundleno = 11 (0xb), region = 116 }
 0x4d2   :  { %2673 = vsyncpa [#allocation3], 1 }
 0x4d3   :  { %2675 = vsyncpa [#allocation3 + $0x1], 1 }
 0x4d4   :  { %2676 = vsyncpa [#allocation4], 1 }
 0x4d5   :  { %2678 = vsyncpa [#allocation4 + $0x1], 1 }
 0x4d6   :  { %2679 = vsyncpa [#allocation7], 1 }
 0x4d7   :  { %2681 = vsyncpa [#allocation7 + $0x1], 1 }

</bundles_post_ra>
